<compile_context>
chip_gen: v5e
topology: v5e:2x2
jax: 0.10.0
libtpu: 0.0.40
codegen_flags: <defaults>
</compile_context>

<pallas_src>
import functools

import numpy as np
import jax
import jax.numpy as jnp
from jax.experimental import pallas as pl
from jax.experimental.pallas import tpu as pltpu

_ROW_BLK = 128  # MXU-aligned row-block height for the triangular L @ z product.


def _count_params(dim_input, hidden_sizes):
    n = dim_input * hidden_sizes[0]
    for i in range(len(hidden_sizes) - 1):
        n += hidden_sizes[i] + hidden_sizes[i] * hidden_sizes[i + 1]
    n += hidden_sizes[-1] + hidden_sizes[-1] + 1
    return n


def _layer_dims(dim_input, hidden_sizes):
    dims = [(dim_input, hidden_sizes[0])]
    for i in range(len(hidden_sizes) - 1):
        dims.append((hidden_sizes[i], hidden_sizes[i + 1]))
    dims.append((hidden_sizes[-1], 1))
    return tuple(dims)


def _num_tensorcores():
    """v7x has 2 TensorCores per chip; earlier TPU generations have 1."""
    try:
        kind = jax.devices()[0].device_kind.lower()
    except Exception:
        return 1
    return 2 if ("v7" in kind or "7x" in kind) else 1


def _pick_tile_sb(sb, num_cores):
    # Widest lane-dense tile that still gives every TensorCore >= 2 grid steps
    # (so DMA / writeback pipeline); otherwise the widest tile dividing SB;
    # otherwise a single tile.
    for t in (512, 256, 128):
        if sb % t == 0 and sb // t >= 2 * num_cores:
            return t
    for t in (512, 256, 128):
        if sb % t == 0:
            return t
    return sb


def fcvi_forward_kernel(x_ref, mean_ref, L_ref, z_ref, out_ref, params_ref, *,
                        layer_dims, n_row_blocks):
    """One grid step == one SB tile, everything resident in VMEM.

    params[p, sb] = mean[p] + sum_{q <= p} L[p, q] * z[q, sb]
    Then an MLP whose weights differ per (sample, batch) column sb:
      out[o, sb] = sum_i act[i, sb] * W[i*dout + o, sb] + bias[o, sb]
    Flattening order per layer is row-major (din, dout), matching
    FCVI_Net.unpack_samples (weight_vector.view(din, dout, S, B)).
    """
    # --- Triangular, row-blocked L @ z on the MXU (bf16 in, f32 out). -------
    # Block r covers params rows [r*128, (r+1)*128) and, because L is lower
    # triangular (zero-padded past P), only needs z rows [0, (r+1)*128).
    # mean is added here in f32 (exact), per row block.
    for r in range(n_row_blocks):
        r0 = r * _ROW_BLK
        k = r0 + _ROW_BLK
        params_ref[pl.ds(r0, _ROW_BLK), :] = (
            jnp.dot(
                L_ref[pl.ds(r0, _ROW_BLK), pl.ds(0, k)],
                z_ref[pl.ds(0, k), :],
                preferred_element_type=jnp.float32,
            )
            + mean_ref[pl.ds(r0, _ROW_BLK), :]
        )

    # --- Per-column MLP on the VPU (f32). ------------------------------------
    act = x_ref[...]  # (din0, TILE_SB) f32
    start = 0
    n_layers = len(layer_dims)
    for li, (din, dout) in enumerate(layer_dims):
        w_off = start
        b_off = start + din * dout
        start = b_off + dout
        bias = params_ref[pl.ds(b_off, dout), :]  # (dout, TILE_SB)

        if dout == 1:
            # Output layer: W chunk is (din, TILE_SB); XLU sublane reduce.
            w = params_ref[pl.ds(w_off, din), :]
            acc = jnp.sum(w * act, axis=0, keepdims=True) + bias  # (1, TILE_SB)
        else:
            # Hidden layer: 2 independent, *seeded* accumulator chains keep the
            # VALU madd latency hidden while staying well under 64 live vregs.
            # Weight rows are cheap static slices of the VMEM scratch ref.
            # TODO(synk): switch this static unroll to lax.fori_loop(...,
            # unroll=4) once din exceeds ~16 to bound vreg live ranges.
            # TODO(synk): if post-triangular the bundle becomes VALU-bound,
            # replace act[i:i+1, :] with a stride-0 sublane-broadcast load.
            n_par = 2 if din >= 2 else 1
            parts = []
            for j in range(n_par):
                w_j = params_ref[pl.ds(w_off + j * dout, dout), :]
                p = w_j * act[j:j + 1, :]
                if j == 0:
                    p = p + bias
                parts.append(p)
            for i in range(n_par, din):
                w_i = params_ref[pl.ds(w_off + i * dout, dout), :]  # (dout, T)
                parts[i % n_par] = parts[i % n_par] + w_i * act[i:i + 1, :]
            acc = parts[0]
            for p in parts[1:]:
                acc = acc + p

        if li < n_layers - 1:
            act = jnp.maximum(acc, 0.0)  # ReLU activation
        else:
            out_ref[...] = acc  # (1, TILE_SB), lane-dense store


def fcvi_forward(x, mean, L, z, *, dim_input, hidden_sizes, no_samples):
    batch = x.shape[0]
    sb = no_samples * batch
    no_params = _count_params(dim_input, hidden_sizes)
    layer_dims = _layer_dims(dim_input, hidden_sizes)

    p_pad = ((no_params + _ROW_BLK - 1) // _ROW_BLK) * _ROW_BLK
    n_row_blocks = p_pad // _ROW_BLK
    pad_rows = p_pad - no_params

    num_cores = _num_tensorcores()
    tile_sb = _pick_tile_sb(sb, num_cores)
    n_tiles = sb // tile_sb

    # Wrapper-side data prep (kept minimal; ideally L/z would be produced as
    # bf16 and pre-padded upstream so these are zero extra HBM passes):
    #  * L: zero-pad to (P_pad, P_pad) and cast to bf16 for the MXU.
    #  * mean: stays f32, (P_pad, 1); added after the dot inside the kernel.
    #  * z: flatten (P, S, B) -> (P, SB) sample-major, cast bf16, zero-pad rows.
    L_pad = jnp.pad(L.astype(jnp.bfloat16), ((0, pad_rows), (0, pad_rows)))
    mean_pad = jnp.pad(mean.astype(jnp.float32).reshape(no_params, 1),
                       ((0, pad_rows), (0, 0)))
    z_sb = z.reshape(no_params, sb).astype(jnp.bfloat16)
    z_pad = jnp.pad(z_sb, ((0, pad_rows), (0, 0)))

    xt = x.T.astype(jnp.float32)  # (din, batch)
    if tile_sb % batch == 0:
        # SB is sample-major / batch-minor and tiles fall on batch boundaries,
        # so every tile sees the identical batch pattern: replicate x to ONE
        # tile width and keep it VMEM-resident (constant index_map).
        x_in = jnp.tile(xt, (1, tile_sb // batch))              # (din, tile_sb)
        x_spec = pl.BlockSpec((dim_input, tile_sb), lambda i: (0, 0))
    else:
        # Generic fallback: full broadcast over samples, tiled along SB.
        x_in = jnp.broadcast_to(
            xt[:, None, :], (dim_input, no_samples, batch)
        ).reshape(dim_input, sb)
        x_spec = pl.BlockSpec((dim_input, tile_sb), lambda i: (0, i))

    kernel = functools.partial(
        fcvi_forward_kernel, layer_dims=layer_dims, n_row_blocks=n_row_blocks)

    # TODO(synk): for P beyond ~1.5k, single-buffer the resident L/x specs
    # (pipeline_mode=pl.Buffered(1)) and set vmem_limit_bytes for v7x's 64 MiB.
    out = pl.pallas_call(
        kernel,
        out_shape=jax.ShapeDtypeStruct((1, sb), jnp.float32),
        grid=(n_tiles,),
        in_specs=[
            x_spec,                                                    # x (resident)
            pl.BlockSpec((p_pad, 1), lambda i: (0, 0)),                # mean f32 (resident)
            pl.BlockSpec((p_pad, p_pad), lambda i: (0, 0)),            # L bf16 (resident)
            pl.BlockSpec((p_pad, tile_sb), lambda i: (0, i)),          # z tile (pipelined)
        ],
        out_specs=pl.BlockSpec((1, tile_sb), lambda i: (0, i)),
        scratch_shapes=[pltpu.VMEM((p_pad, tile_sb), jnp.float32)],    # params staging
        compiler_params=pltpu.CompilerParams(
            dimension_semantics=("parallel",),
        ),
    )(x_in, mean_pad, L_pad, z_pad)
    return out.reshape(no_samples, batch)


def build_L(cov_vector, no_params):
    """L_init filled on the lower triangle; diagonal exponentiated (as in forward)."""
    L_init = jnp.zeros((no_params, no_params), jnp.float32)
    tril = jnp.tril_indices(no_params)
    L_init = L_init.at[tril].set(cov_vector)
    d = jnp.diag(L_init)
    return L_init - jnp.diag(d) + jnp.diag(jnp.exp(d))


def reference_forward(x, mean, L, z, dim_input, hidden_sizes, no_samples):
    """Pure-JAX mirror of the PyTorch forward(), for correctness checking."""
    hi = jax.lax.Precision.HIGHEST
    batch = x.shape[0]
    samples = mean[:, None, None] + jnp.einsum('ab,bcd->acd', L, z,
                                               precision=hi)     # (P, S, B)
    dims = _layer_dims(dim_input, hidden_sizes)
    act = x.T  # (D, B)
    start = 0
    out = None
    for li, (din, dout) in enumerate(dims):
        W = samples[start:start + din * dout].reshape(din, dout, no_samples, batch)
        start += din * dout
        b = samples[start:start + dout]
        start += dout
        if li == 0:
            z_out = jnp.einsum('ib,iosb->osb', act, W, precision=hi) + b
        else:
            z_out = jnp.einsum('isb,iosb->osb', act, W, precision=hi) + b
        if li < len(dims) - 1:
            act = jnp.maximum(z_out, 0.0)
        else:
            out = z_out
    return out.reshape(no_samples, batch)


if __name__ == "__main__":
    # Small shapes consistent with the module (UCI regression MLP).
    dim_input = 4
    hidden_sizes = [16, 16]
    no_samples = 32         # module's train_samples
    batch = 32              # SB = 32*32 = 1024
    no_params = _count_params(dim_input, hidden_sizes)   # 369

    key = jax.random.PRNGKey(0)
    kx, kmean, kz = jax.random.split(key, 3)
    x = jax.random.normal(kx, (batch, dim_input), jnp.float32)

    # init_params(): cov_vector is zeros with -11.5 at the tril-diagonal slots.
    no_cov = no_params * (no_params + 1) // 2
    vec = np.zeros(no_cov, dtype=np.float32)
    ind = 1
    for i in range(1, no_params + 1):
        vec[ind - 1] = -11.5
        ind += i + 1
    cov_vector = jnp.asarray(vec)
    mean = 0.1 * jax.random.normal(kmean, (no_params,), jnp.float32)  # Normal(0, 0.1)

    L = build_L(cov_vector, no_params)
    z = jax.random.normal(kz, (no_params, no_samples, batch), jnp.float32)

    out = fcvi_forward(
        x, mean, L, z,
        dim_input=dim_input, hidden_sizes=hidden_sizes, no_samples=no_samples,
    )
    out = jax.block_until_ready(out)
    assert out.shape == (no_samples, batch)

    ref = jax.block_until_ready(
        reference_forward(x, mean, L, z, dim_input, hidden_sizes, no_samples)
    )
    # mean now added in f32 post-matmul; only L@z (tiny at init) sees bf16,
    # so the tolerance is much tighter than the previous bf16-mean version.
    np.testing.assert_allclose(np.asarray(out), np.asarray(ref), rtol=2e-3, atol=1e-4)
    print("KERNEL_OK")
</pallas_src>

<mosaic_0001>
module attributes {stable_mosaic.version = 11 : i64} {
  func.func @fcvi_forward_kernel(%arg0: i32, %arg1: memref<4x512xf32, #tpu.memory_space<vmem>>, %arg2: memref<384x1xf32, #tpu.memory_space<vmem>>, %arg3: memref<384x384xbf16, #tpu.memory_space<vmem>>, %arg4: memref<384x512xbf16, #tpu.memory_space<vmem>>, %arg5: memref<1x512xf32, #tpu.memory_space<vmem>>, %arg6: memref<384x512xf32, #tpu.memory_space<vmem>>) attributes {dimension_semantics = [#tpu.dimension_semantics<parallel>], iteration_bounds = array<i64: 2>, scalar_prefetch = 0 : i64, scratch_operands = 1 : i64, tpu.core_type = #tpu.core_type<tc>, window_params = [{pipeline_mode = #tpu.pipeline_mode<synchronous>, transform_indices = @transform_0, window_bounds = array<i64: 4, 512>}, {pipeline_mode = #tpu.pipeline_mode<synchronous>, transform_indices = @transform_1, window_bounds = array<i64: 384, 1>}, {pipeline_mode = #tpu.pipeline_mode<synchronous>, transform_indices = @transform_2, window_bounds = array<i64: 384, 384>}, {transform_indices = @transform_3, window_bounds = array<i64: 384, 512>}, {transform_indices = @transform_4, window_bounds = array<i64: 1, 512>}]} {
    %c0 = arith.constant 0 : index
    %c0_0 = arith.constant 0 : index
    %0 = vector.load %arg3[%c0, %c0_0] : memref<384x384xbf16, #tpu.memory_space<vmem>>, vector<128x128xbf16>
    %c0_1 = arith.constant 0 : index
    %c0_2 = arith.constant 0 : index
    %1 = vector.load %arg4[%c0_1, %c0_2] : memref<384x512xbf16, #tpu.memory_space<vmem>>, vector<128x512xbf16>
    %cst = arith.constant dense<0.000000e+00> : vector<128x512xf32>
    %2 = tpu.matmul %0, %1, %cst {dimension_numbers = #tpu.dot_dimension_numbers<[1], [0], [0], [1], [0, 0, 1, 1], [], []>} : vector<128x128xbf16>, vector<128x512xbf16>, vector<128x512xf32> -> vector<128x512xf32>
    %c0_3 = arith.constant 0 : index
    %c0_4 = arith.constant 0 : index
    %3 = vector.load %arg2[%c0_3, %c0_4] : memref<384x1xf32, #tpu.memory_space<vmem>>, vector<128x1xf32>
    %4 = vector.broadcast %3 : vector<128x1xf32> to vector<128x512xf32>
    %5 = arith.addf %2, %4 : vector<128x512xf32>
    %c0_5 = arith.constant 0 : index
    %c0_6 = arith.constant 0 : index
    %6 = vector.load %arg6[%c0_5, %c0_6] : memref<384x512xf32, #tpu.memory_space<vmem>>, vector<128x512xf32>
    tpu.vector_store %arg6[%c0_5, %c0_6], %5 {strides = array<i32>} : memref<384x512xf32, #tpu.memory_space<vmem>>, vector<128x512xf32>,
    %c128 = arith.constant 128 : index
    %c0_7 = arith.constant 0 : index
    %7 = vector.load %arg3[%c128, %c0_7] : memref<384x384xbf16, #tpu.memory_space<vmem>>, vector<128x256xbf16>
    %c0_8 = arith.constant 0 : index
    %c0_9 = arith.constant 0 : index
    %8 = vector.load %arg4[%c0_8, %c0_9] : memref<384x512xbf16, #tpu.memory_space<vmem>>, vector<256x512xbf16>
    %cst_10 = arith.constant dense<0.000000e+00> : vector<128x512xf32>
    %9 = tpu.matmul %7, %8, %cst_10 {dimension_numbers = #tpu.dot_dimension_numbers<[1], [0], [0], [1], [0, 0, 1, 1], [], []>} : vector<128x256xbf16>, vector<256x512xbf16>, vector<128x512xf32> -> vector<128x512xf32>
    %c128_11 = arith.constant 128 : index
    %c0_12 = arith.constant 0 : index
    %10 = vector.load %arg2[%c128_11, %c0_12] : memref<384x1xf32, #tpu.memory_space<vmem>>, vector<128x1xf32>
    %11 = vector.broadcast %10 : vector<128x1xf32> to vector<128x512xf32>
    %12 = arith.addf %9, %11 : vector<128x512xf32>
    %c128_13 = arith.constant 128 : index
    %c0_14 = arith.constant 0 : index
    %13 = vector.load %arg6[%c128_13, %c0_14] : memref<384x512xf32, #tpu.memory_space<vmem>>, vector<128x512xf32>
    tpu.vector_store %arg6[%c128_13, %c0_14], %12 {strides = array<i32>} : memref<384x512xf32, #tpu.memory_space<vmem>>, vector<128x512xf32>,
    %c256 = arith.constant 256 : index
    %c0_15 = arith.constant 0 : index
    %14 = vector.load %arg3[%c256, %c0_15] : memref<384x384xbf16, #tpu.memory_space<vmem>>, vector<128x384xbf16>
    %c0_16 = arith.constant 0 : index
    %c0_17 = arith.constant 0 : index
    %15 = vector.load %arg4[%c0_16, %c0_17] : memref<384x512xbf16, #tpu.memory_space<vmem>>, vector<384x512xbf16>
    %cst_18 = arith.constant dense<0.000000e+00> : vector<128x512xf32>
    %16 = tpu.matmul %14, %15, %cst_18 {dimension_numbers = #tpu.dot_dimension_numbers<[1], [0], [0], [1], [0, 0, 1, 1], [], []>} : vector<128x384xbf16>, vector<384x512xbf16>, vector<128x512xf32> -> vector<128x512xf32>
    %c256_19 = arith.constant 256 : index
    %c0_20 = arith.constant 0 : index
    %17 = vector.load %arg2[%c256_19, %c0_20] : memref<384x1xf32, #tpu.memory_space<vmem>>, vector<128x1xf32>
    %18 = vector.broadcast %17 : vector<128x1xf32> to vector<128x512xf32>
    %19 = arith.addf %16, %18 : vector<128x512xf32>
    %c256_21 = arith.constant 256 : index
    %c0_22 = arith.constant 0 : index
    %20 = vector.load %arg6[%c256_21, %c0_22] : memref<384x512xf32, #tpu.memory_space<vmem>>, vector<128x512xf32>
    tpu.vector_store %arg6[%c256_21, %c0_22], %19 {strides = array<i32>} : memref<384x512xf32, #tpu.memory_space<vmem>>, vector<128x512xf32>,
    %c0_23 = arith.constant 0 : index
    %c0_24 = arith.constant 0 : index
    %21 = vector.load %arg1[%c0_23, %c0_24] : memref<4x512xf32, #tpu.memory_space<vmem>>, vector<4x512xf32>
    %c64 = arith.constant 64 : index
    %c0_25 = arith.constant 0 : index
    %22 = vector.load %arg6[%c64, %c0_25] : memref<384x512xf32, #tpu.memory_space<vmem>>, vector<16x512xf32>
    %c0_26 = arith.constant 0 : index
    %c0_27 = arith.constant 0 : index
    %23 = vector.load %arg6[%c0_26, %c0_27] : memref<384x512xf32, #tpu.memory_space<vmem>>, vector<16x512xf32>
    %24 = vector.extract_strided_slice %21 {offsets = [0, 0], sizes = [1, 512], strides = [1, 1]} : vector<4x512xf32> to vector<1x512xf32>
    %25 = vector.broadcast %24 : vector<1x512xf32> to vector<16x512xf32>
    %26 = arith.mulf %23, %25 : vector<16x512xf32>
    %27 = arith.addf %26, %22 : vector<16x512xf32>
    %c16 = arith.constant 16 : index
    %c0_28 = arith.constant 0 : index
    %28 = vector.load %arg6[%c16, %c0_28] : memref<384x512xf32, #tpu.memory_space<vmem>>, vector<16x512xf32>
    %29 = vector.extract_strided_slice %21 {offsets = [1, 0], sizes = [1, 512], strides = [1, 1]} : vector<4x512xf32> to vector<1x512xf32>
    %30 = vector.broadcast %29 : vector<1x512xf32> to vector<16x512xf32>
    %31 = arith.mulf %28, %30 : vector<16x512xf32>
    %c32 = arith.constant 32 : index
    %c0_29 = arith.constant 0 : index
    %32 = vector.load %arg6[%c32, %c0_29] : memref<384x512xf32, #tpu.memory_space<vmem>>, vector<16x512xf32>
    %33 = vector.extract_strided_slice %21 {offsets = [2, 0], sizes = [1, 512], strides = [1, 1]} : vector<4x512xf32> to vector<1x512xf32>
    %34 = vector.broadcast %33 : vector<1x512xf32> to vector<16x512xf32>
    %35 = arith.mulf %32, %34 : vector<16x512xf32>
    %36 = arith.addf %27, %35 : vector<16x512xf32>
    %c48 = arith.constant 48 : index
    %c0_30 = arith.constant 0 : index
    %37 = vector.load %arg6[%c48, %c0_30] : memref<384x512xf32, #tpu.memory_space<vmem>>, vector<16x512xf32>
    %38 = vector.extract_strided_slice %21 {offsets = [3, 0], sizes = [1, 512], strides = [1, 1]} : vector<4x512xf32> to vector<1x512xf32>
    %39 = vector.broadcast %38 : vector<1x512xf32> to vector<16x512xf32>
    %40 = arith.mulf %37, %39 : vector<16x512xf32>
    %41 = arith.addf %31, %40 : vector<16x512xf32>
    %42 = arith.addf %36, %41 : vector<16x512xf32>
    %cst_31 = arith.constant 0.000000e+00 : f32
    %43 = vector.broadcast %cst_31 : f32 to vector<16x512xf32>
    %44 = arith.maximumf %42, %43 : vector<16x512xf32>
    %c336 = arith.constant 336 : index
    %c0_32 = arith.constant 0 : index
    %45 = vector.load %arg6[%c336, %c0_32] : memref<384x512xf32, #tpu.memory_space<vmem>>, vector<16x512xf32>
    %c80 = arith.constant 80 : index
    %c0_33 = arith.constant 0 : index
    %46 = vector.load %arg6[%c80, %c0_33] : memref<384x512xf32, #tpu.memory_space<vmem>>, vector<16x512xf32>
    %47 = vector.extract_strided_slice %44 {offsets = [0, 0], sizes = [1, 512], strides = [1, 1]} : vector<16x512xf32> to vector<1x512xf32>
    %48 = vector.broadcast %47 : vector<1x512xf32> to vector<16x512xf32>
    %49 = arith.mulf %46, %48 : vector<16x512xf32>
    %50 = arith.addf %49, %45 : vector<16x512xf32>
    %c96 = arith.constant 96 : index
    %c0_34 = arith.constant 0 : index
    %51 = vector.load %arg6[%c96, %c0_34] : memref<384x512xf32, #tpu.memory_space<vmem>>, vector<16x512xf32>
    %52 = vector.extract_strided_slice %44 {offsets = [1, 0], sizes = [1, 512], strides = [1, 1]} : vector<16x512xf32> to vector<1x512xf32>
    %53 = vector.broadcast %52 : vector<1x512xf32> to vector<16x512xf32>
    %54 = arith.mulf %51, %53 : vector<16x512xf32>
    %c112 = arith.constant 112 : index
    %c0_35 = arith.constant 0 : index
    %55 = vector.load %arg6[%c112, %c0_35] : memref<384x512xf32, #tpu.memory_space<vmem>>, vector<16x512xf32>
    %56 = vector.extract_strided_slice %44 {offsets = [2, 0], sizes = [1, 512], strides = [1, 1]} : vector<16x512xf32> to vector<1x512xf32>
    %57 = vector.broadcast %56 : vector<1x512xf32> to vector<16x512xf32>
    %58 = arith.mulf %55, %57 : vector<16x512xf32>
    %59 = arith.addf %50, %58 : vector<16x512xf32>
    %c128_36 = arith.constant 128 : index
    %c0_37 = arith.constant 0 : index
    %60 = vector.load %arg6[%c128_36, %c0_37] : memref<384x512xf32, #tpu.memory_space<vmem>>, vector<16x512xf32>
    %61 = vector.extract_strided_slice %44 {offsets = [3, 0], sizes = [1, 512], strides = [1, 1]} : vector<16x512xf32> to vector<1x512xf32>
    %62 = vector.broadcast %61 : vector<1x512xf32> to vector<16x512xf32>
    %63 = arith.mulf %60, %62 : vector<16x512xf32>
    %64 = arith.addf %54, %63 : vector<16x512xf32>
    %c144 = arith.constant 144 : index
    %c0_38 = arith.constant 0 : index
    %65 = vector.load %arg6[%c144, %c0_38] : memref<384x512xf32, #tpu.memory_space<vmem>>, vector<16x512xf32>
    %66 = vector.extract_strided_slice %44 {offsets = [4, 0], sizes = [1, 512], strides = [1, 1]} : vector<16x512xf32> to vector<1x512xf32>
    %67 = vector.broadcast %66 : vector<1x512xf32> to vector<16x512xf32>
    %68 = arith.mulf %65, %67 : vector<16x512xf32>
    %69 = arith.addf %59, %68 : vector<16x512xf32>
    %c160 = arith.constant 160 : index
    %c0_39 = arith.constant 0 : index
    %70 = vector.load %arg6[%c160, %c0_39] : memref<384x512xf32, #tpu.memory_space<vmem>>, vector<16x512xf32>
    %71 = vector.extract_strided_slice %44 {offsets = [5, 0], sizes = [1, 512], strides = [1, 1]} : vector<16x512xf32> to vector<1x512xf32>
    %72 = vector.broadcast %71 : vector<1x512xf32> to vector<16x512xf32>
    %73 = arith.mulf %70, %72 : vector<16x512xf32>
    %74 = arith.addf %64, %73 : vector<16x512xf32>
    %c176 = arith.constant 176 : index
    %c0_40 = arith.constant 0 : index
    %75 = vector.load %arg6[%c176, %c0_40] : memref<384x512xf32, #tpu.memory_space<vmem>>, vector<16x512xf32>
    %76 = vector.extract_strided_slice %44 {offsets = [6, 0], sizes = [1, 512], strides = [1, 1]} : vector<16x512xf32> to vector<1x512xf32>
    %77 = vector.broadcast %76 : vector<1x512xf32> to vector<16x512xf32>
    %78 = arith.mulf %75, %77 : vector<16x512xf32>
    %79 = arith.addf %69, %78 : vector<16x512xf32>
    %c192 = arith.constant 192 : index
    %c0_41 = arith.constant 0 : index
    %80 = vector.load %arg6[%c192, %c0_41] : memref<384x512xf32, #tpu.memory_space<vmem>>, vector<16x512xf32>
    %81 = vector.extract_strided_slice %44 {offsets = [7, 0], sizes = [1, 512], strides = [1, 1]} : vector<16x512xf32> to vector<1x512xf32>
    %82 = vector.broadcast %81 : vector<1x512xf32> to vector<16x512xf32>
    %83 = arith.mulf %80, %82 : vector<16x512xf32>
    %84 = arith.addf %74, %83 : vector<16x512xf32>
    %c208 = arith.constant 208 : index
    %c0_42 = arith.constant 0 : index
    %85 = vector.load %arg6[%c208, %c0_42] : memref<384x512xf32, #tpu.memory_space<vmem>>, vector<16x512xf32>
    %86 = vector.extract_strided_slice %44 {offsets = [8, 0], sizes = [1, 512], strides = [1, 1]} : vector<16x512xf32> to vector<1x512xf32>
    %87 = vector.broadcast %86 : vector<1x512xf32> to vector<16x512xf32>
    %88 = arith.mulf %85, %87 : vector<16x512xf32>
    %89 = arith.addf %79, %88 : vector<16x512xf32>
    %c224 = arith.constant 224 : index
    %c0_43 = arith.constant 0 : index
    %90 = vector.load %arg6[%c224, %c0_43] : memref<384x512xf32, #tpu.memory_space<vmem>>, vector<16x512xf32>
    %91 = vector.extract_strided_slice %44 {offsets = [9, 0], sizes = [1, 512], strides = [1, 1]} : vector<16x512xf32> to vector<1x512xf32>
    %92 = vector.broadcast %91 : vector<1x512xf32> to vector<16x512xf32>
    %93 = arith.mulf %90, %92 : vector<16x512xf32>
    %94 = arith.addf %84, %93 : vector<16x512xf32>
    %c240 = arith.constant 240 : index
    %c0_44 = arith.constant 0 : index
    %95 = vector.load %arg6[%c240, %c0_44] : memref<384x512xf32, #tpu.memory_space<vmem>>, vector<16x512xf32>
    %96 = vector.extract_strided_slice %44 {offsets = [10, 0], sizes = [1, 512], strides = [1, 1]} : vector<16x512xf32> to vector<1x512xf32>
    %97 = vector.broadcast %96 : vector<1x512xf32> to vector<16x512xf32>
    %98 = arith.mulf %95, %97 : vector<16x512xf32>
    %99 = arith.addf %89, %98 : vector<16x512xf32>
    %c256_45 = arith.constant 256 : index
    %c0_46 = arith.constant 0 : index
    %100 = vector.load %arg6[%c256_45, %c0_46] : memref<384x512xf32, #tpu.memory_space<vmem>>, vector<16x512xf32>
    %101 = vector.extract_strided_slice %44 {offsets = [11, 0], sizes = [1, 512], strides = [1, 1]} : vector<16x512xf32> to vector<1x512xf32>
    %102 = vector.broadcast %101 : vector<1x512xf32> to vector<16x512xf32>
    %103 = arith.mulf %100, %102 : vector<16x512xf32>
    %104 = arith.addf %94, %103 : vector<16x512xf32>
    %c272 = arith.constant 272 : index
    %c0_47 = arith.constant 0 : index
    %105 = vector.load %arg6[%c272, %c0_47] : memref<384x512xf32, #tpu.memory_space<vmem>>, vector<16x512xf32>
    %106 = vector.extract_strided_slice %44 {offsets = [12, 0], sizes = [1, 512], strides = [1, 1]} : vector<16x512xf32> to vector<1x512xf32>
    %107 = vector.broadcast %106 : vector<1x512xf32> to vector<16x512xf32>
    %108 = arith.mulf %105, %107 : vector<16x512xf32>
    %109 = arith.addf %99, %108 : vector<16x512xf32>
    %c288 = arith.constant 288 : index
    %c0_48 = arith.constant 0 : index
    %110 = vector.load %arg6[%c288, %c0_48] : memref<384x512xf32, #tpu.memory_space<vmem>>, vector<16x512xf32>
    %111 = vector.extract_strided_slice %44 {offsets = [13, 0], sizes = [1, 512], strides = [1, 1]} : vector<16x512xf32> to vector<1x512xf32>
    %112 = vector.broadcast %111 : vector<1x512xf32> to vector<16x512xf32>
    %113 = arith.mulf %110, %112 : vector<16x512xf32>
    %114 = arith.addf %104, %113 : vector<16x512xf32>
    %c304 = arith.constant 304 : index
    %c0_49 = arith.constant 0 : index
    %115 = vector.load %arg6[%c304, %c0_49] : memref<384x512xf32, #tpu.memory_space<vmem>>, vector<16x512xf32>
    %116 = vector.extract_strided_slice %44 {offsets = [14, 0], sizes = [1, 512], strides = [1, 1]} : vector<16x512xf32> to vector<1x512xf32>
    %117 = vector.broadcast %116 : vector<1x512xf32> to vector<16x512xf32>
    %118 = arith.mulf %115, %117 : vector<16x512xf32>
    %119 = arith.addf %109, %118 : vector<16x512xf32>
    %c320 = arith.constant 320 : index
    %c0_50 = arith.constant 0 : index
    %120 = vector.load %arg6[%c320, %c0_50] : memref<384x512xf32, #tpu.memory_space<vmem>>, vector<16x512xf32>
    %121 = vector.extract_strided_slice %44 {offsets = [15, 0], sizes = [1, 512], strides = [1, 1]} : vector<16x512xf32> to vector<1x512xf32>
    %122 = vector.broadcast %121 : vector<1x512xf32> to vector<16x512xf32>
    %123 = arith.mulf %120, %122 : vector<16x512xf32>
    %124 = arith.addf %114, %123 : vector<16x512xf32>
    %125 = arith.addf %119, %124 : vector<16x512xf32>
    %cst_51 = arith.constant 0.000000e+00 : f32
    %126 = vector.broadcast %cst_51 : f32 to vector<16x512xf32>
    %127 = arith.maximumf %125, %126 : vector<16x512xf32>
    %c368 = arith.constant 368 : index
    %c0_52 = arith.constant 0 : index
    %128 = vector.load %arg6[%c368, %c0_52] : memref<384x512xf32, #tpu.memory_space<vmem>>, vector<1x512xf32>
    %c352 = arith.constant 352 : index
    %c0_53 = arith.constant 0 : index
    %129 = vector.load %arg6[%c352, %c0_53] : memref<384x512xf32, #tpu.memory_space<vmem>>, vector<16x512xf32>
    %130 = arith.mulf %129, %127 : vector<16x512xf32>
    %cst_54 = arith.constant dense<0.000000e+00> : vector<512xf32>
    %131 = vector.multi_reduction <add>, %130, %cst_54 [0] : vector<16x512xf32> to vector<512xf32>
    %132 = vector.shape_cast %131 : vector<512xf32> to vector<1x512xf32>
    %133 = arith.addf %132, %128 : vector<1x512xf32>
    %c0_55 = arith.constant 0 : index
    %c0_56 = arith.constant 0 : index
    %134 = vector.load %arg5[%c0_55, %c0_56] : memref<1x512xf32, #tpu.memory_space<vmem>>, vector<1x512xf32>
    tpu.vector_store %arg5[%c0_55, %c0_56], %133 {strides = array<i32>} : memref<1x512xf32, #tpu.memory_space<vmem>>, vector<1x512xf32>,
    return
  }
  func.func @transform_0(%arg0: i32) -> (i32, i32) {
    %c0_i32 = arith.constant 0 : i32
    %c0_i32_0 = arith.constant 0 : i32
    %c0_i32_1 = arith.constant 0 : i32
    return %c0_i32, %c0_i32_0 : i32, i32
  }
  func.func @transform_1(%arg0: i32) -> (i32, i32) {
    %c0_i32 = arith.constant 0 : i32
    %c0_i32_0 = arith.constant 0 : i32
    %c0_i32_1 = arith.constant 0 : i32
    return %c0_i32, %c0_i32_0 : i32, i32
  }
  func.func @transform_2(%arg0: i32) -> (i32, i32) {
    %c0_i32 = arith.constant 0 : i32
    %c0_i32_0 = arith.constant 0 : i32
    %c0_i32_1 = arith.constant 0 : i32
    return %c0_i32, %c0_i32_0 : i32, i32
  }
  func.func @transform_3(%arg0: i32) -> (i32, i32) {
    %c0_i32 = arith.constant 0 : i32
    %c0_i32_0 = arith.constant 0 : i32
    return %c0_i32, %arg0 : i32, i32
  }
  func.func @transform_4(%arg0: i32) -> (i32, i32) {
    %c0_i32 = arith.constant 0 : i32
    %c0_i32_0 = arith.constant 0 : i32
    return %c0_i32, %arg0 : i32, i32
  }
}

</mosaic_0001>

<bundles_post_ra>
// kernel: tpu_custom_call.1
= control target key start
LH: loop header
LB: loop body
LE: loop exit
PB: predicated region body
PF: predicated region fallthrough
CT: control target
= control target key end

     0   :  { %9 = vsyncpa [#allocation4], 0  ;;  %s7428_s0 = inlined_call_operand.vmem [shape: f32[4,512], index: 0, kind: input, shape index: {}]   ;;  %s7429_s1 = inlined_call_operand.vmem [shape: f32[384,1], index: 1, kind: input, shape index: {}]   ;;  %s7430_s2 = inlined_call_operand.hbm [shape: bf16[384,384], index: 2, kind: input, shape index: {}]   ;;  %s7431_s3 = inlined_call_operand.hbm [shape: bf16[384,1024], index: 3, kind: input, shape index: {}]   ;;  %s7432_s4 = inlined_call_operand.hbm [shape: f32[1,1024], index: 4, kind: output, shape index: {}]  }
   0x1   :  { %10 = vsyncpa [#allocation7], 0 }
   0x2   :  { %12 = vsyncpa [#allocation7 + $0x1], 0 }
   0x3   :  { %13 = vsyncpa [#allocation5], 0 }
   0x4   :  { %15 = vsyncpa [#allocation5 + $0x1], 0  ;;  %s5615_s15 = smov 0   ;;  %s5617_s16 = smov 0  }
   0x5   :  { %s5619_s17 = smov 0   ;;  %s5621_s18 = smov 0  }
   0x6 LB: > { %s5636_s19 = sadd.s32 4294967295, %s5581_s18   ;;  %s4169_s20 = sadd.s32 4294967294, %s5581_s18   ;;  %s5581_s18 = sphi %s5621_s18, %s7610_s18   ;;  %s5577_s17 = sphi %s5619_s17, %s7609_s17   ;;  %s5573_s16 = sphi %s5617_s16, %s7608_s16   ;;  %s5569_s15 = sphi %s5615_s15, %s7607_s15  }
   0x7   : > { %p104_p0 = scmp.ne.s32.totalorder %s5573_s16, %s5569_s15  ;;  %p105_p1 = scmp.eq.s32.totalorder %s5636_s19, 0 }
   0x8   : > { %p128_p2 = scmp.eq.s32.totalorder %s5636_s19, 1  ;;  %p134_p3 = scmp.eq.s32.totalorder %s4169_s20, 1 }
   0x9   : > { %p5645_p4 = por %p105_p1, %p104_p0  ;;  %p4170_p5 = scmp.ge.s32.totalorder %s5581_s18, 1 }
   0xa   : > { %p5650_p6 = por %p134_p3, %p104_p0  ;;  %p141_p7 = scmp.lt.s32.totalorder %s5581_s18, 3 }
   0xb   : > { %s158_s25 = sshll.u32 %s7430_s2, 4  ;;  %s5583_s27 = smov [#allocation3]   ;;  %s159_s25 = int_to_ptr.hbm [resolvable:$true] %s158_s25 }
   0xc   : > { %p5658_p8 = pnand %p4170_p5, %p141_p7  ;;  %s160_s28 = sshll.u32 %s5583_s27, 4  ;;  %s161_s28 = int_to_ptr.vmem [resolvable:$true] %s160_s28 }
   0xd   : > { %s5668_s29 = sadd.s32 1, %s5581_s18   ;;  %s5584_s30 = smov 192  }
   0xe   : > { %p5393_p9 = pneg %p5658_p8  ;;  %s5585_s5 = smov 12  }
   0xf   : > { %s88_s6 = ssub.s32 %s5581_s18, %s5668_s29  ;;  %s91_s7 = sadd.s32 1, %s5577_s17 }
  0x10   : > { %p5394_p10 = pnand %p5393_p9, %p105_p1  ;;  %p89_p12 = scmp.eq.s32.totalorder %s88_s6, 0 }
  0x11   : > { %p98_p13 = scmp.ne.s32.totalorder %s5577_s17, %s5573_s16  ;;  %p99_p0 = scmp.eq.s32.totalorder %s5581_s18, 0 }
  0x12   : > { %5396 = dma.hbm_to_vmem [thread:$0]  (!%p5394_p10), %s159_s25, 9216, %s161_s28, [#allocation4], %s5584_s30, %s5584_s30, %s5585_s5  }
  0x13   : > { %p5406_p3 = scmp.lt.s32.totalorder %s5581_s18, 2  ;;  %p100_p5 = por %p99_p0, %p98_p13 }
  0x14   : > { %s5678_s8 = scalar_select %p89_p12, %s5577_s17, %s91_s7  }
  0x15   : > { %p5682_p7 = por %p128_p2, %p98_p13  ;;  %s174_s10 = sand.u32 1, %s5577_s17  }
  0x16   : > { %s5142_s11 = sshll.u32 %s5581_s18, 4  ;;  %s5383_s12 = smul.u32 768, %s174_s10 }
  0x17   : > { %s183_s20 = scalar_lea.hbm %s7431_s3, %s5142_s11  ;;  %p5691_p9 = pnand %p5406_p3, %p100_p5 }
  0x18   : > { %s184_s24 = sshll.u32 %s183_s20, 4  ;;  %s178_s25 = scalar_lea.vmem [#allocation6], %s5383_s12  ;;  %s185_s24 = int_to_ptr.hbm [resolvable:$true] %s184_s24 }
  0x19   : > { %s186_s27 = sshll.u32 %s178_s25, 4  ;;  %s175_s28 = scalar_lea.sflag [#allocation7], %s174_s10  ;;  %s187_s27 = int_to_ptr.vmem [resolvable:$true] %s186_s27 }
  0x1a   : > { %s5481_s30 = sshra.s32 %s185_s24, 4  ;;  %p5485_p10 = pneg %p5691_p9  ;;  %s5482_s30 = int_to_ptr.hbm [resolvable:$true] %s5481_s30 }
  0x1b   : > { %s5483_s5 = scalar_lea.hbm %s5482_s30, 768  ;;  %s5488_s11 = scalar_lea.hbm %s7431_s3, 1536 }
  0x1c   : > { %p5484_p2 = scmp.ne.s32.totalorder %s5482_s30, %s5483_s5  ;;  %p5489_p0 = scmp.lt.s32.totalorder %s5482_s30, %s7431_s3 }
  0x1d   : > { %p5490_p3 = scmp.lt.s32.totalorder %s5488_s11, %s5483_s5 }
  0x1e   : > { %p5486_p12 = pnand %p5485_p10, %p5484_p2 }
  0x1f   : > { %p5491_p5 = por %p5490_p3, %p5489_p0 }
  0x20   : > { %p5487_p13 = pneg %p5486_p12 }
  0x22   : > { %p5492_p11 = pnand %p5491_p5, %p5487_p13 }
  0x24   : > { %5495 = shalt.err (!%p5492_p11)
}
  0x25   : > { %s5586_s10 = smov 512   ;;  %s5587_s12 = smov 256  }
  0x26   : > { %s5588_s20 = smov 16   ;;  %198 = sbr.rel (%p5658_p8) target bundleno = 994 (0x3e2), region = 36 }
  0x27   : > { %5400 = dma.hbm_to_vmem [thread:$0]  (!%p5691_p9), %s185_s24, 12288, %s187_s27, %s175_s28, %s5586_s10, %s5587_s12, %s5588_s20  }
  0x2b   : > { %5556 = dma.done.wait (%p105_p1), [#allocation4], 9216  }
  0x2c   : > { %5558 = vsyncadd (%p105_p1), [#allocation4], 4294958080  ;;  %s5712_s25 = sand.u32 1, %s5573_s16  }
  0x2d   : > { %s5384_s30 = smul.u32 768, %s5712_s25  ;;  %s206_s5 = scalar_lea.sflag [#allocation7], %s5712_s25 }
  0x2f   : > { %s5716_s6 = scalar_lea.vmem [#allocation6], %s5384_s30 }
  0x30   : > { %5560 = dma.done.wait (%p5645_p4), %s206_s5, 12288  }
  0x31   : > { %5562 = vsyncadd (%p5645_p4), %s206_s5, 4294955008  ;;  %v4324_v0 = vld [vmem:[%s5716_s6 + $0xe0] sm:$0xf]  ;;  %v5181_v1 = vld [vmem:[%s5716_s6 + $0xec] sm:$0xf0]  ;;  %s5139_s10 = sshll.u32 %s5636_s19, 2 }
  0x32   : > { %v5179_v2 = vld [vmem:[%s5716_s6 + $0xe4] sm:$0xf]  ;;  %v4325_v3 = vor.u32 %v5181_v1, %v4324_v0  ;;  %v4326_v4 = vld [vmem:[%s5716_s6 + $0xf0] sm:$0xf0]  ;;  %v4332_v5 = vld [vmem:[%s5716_s6 + $0xe8] sm:$0xf]  ;;  %s4082_s30 = scalar_lea.hbm %s7432_s4, %s5139_s10 }
  0x33   : > { %v5182_v6 = vld [vmem:[%s5716_s6 + $0xf4] sm:$0xf0]  ;;  %v4329_v7 = vor.u32 %v5179_v2, %v4326_v4  ;;  %v5180_v9 = vld [vmem:[%s5716_s6 + $0xec] sm:$0xf]  ;;  %v4334_v10 = vld [vmem:[%s5716_s6 + $0xf8] sm:$0xf0] }
  0x34   : > { %v4333_v8 = vor.u32 %v5182_v6, %v4332_v5  ;;  %v4308_v11 = vld [vmem:[%s5716_s6 + $0xc0] sm:$0xf]  ;;  %589 = vmatpush.bf16.msra.mxu0 %v4325_v3  ;;  %v4337_v12 = vor.u32 %v5180_v9, %v4334_v10  ;;  %v5177_v13 = vld [vmem:[%s5716_s6 + $0xcc] sm:$0xf0]  ;;  %v5175_v14 = vld [vmem:[%s5716_s6 + $0xc4] sm:$0xf] }
  0x35   : > { %v4310_v15 = vld [vmem:[%s5716_s6 + $0xd0] sm:$0xf0]  ;;  %638 = vmatpush.bf16.msra.mxu1 %v4329_v7  ;;  %v4309_v16 = vor.u32 %v5177_v13, %v4308_v11  ;;  %v4316_v18 = vld [vmem:[%s5716_s6 + $0xc8] sm:$0xf]  ;;  %v5178_v19 = vld [vmem:[%s5716_s6 + $0xd4] sm:$0xf0] }
  0x36   : > { %687 = vmatpush.bf16.msra.mxu2 %v4333_v8  ;;  %v4313_v17 = vor.u32 %v5175_v14, %v4310_v15  ;;  %v5176_v20 = vld [vmem:[%s5716_s6 + $0xcc] sm:$0xf]  ;;  %736 = vmatpush.bf16.msra.mxu3 %v4337_v12  ;;  %v4317_v21 = vor.u32 %v5178_v19, %v4316_v18  ;;  %v4318_v22 = vld [vmem:[%s5716_s6 + $0xd8] sm:$0xf0]  ;;  %v4292_v23 = vld [vmem:[%s5716_s6 + $0xa0] sm:$0xf] }
  0x37   : > { %v5173_v24 = vld [vmem:[%s5716_s6 + $0xac] sm:$0xf0]  ;;  %v4321_v25 = vor.u32 %v5176_v20, %v4318_v22  ;;  %v5171_v26 = vld [vmem:[%s5716_s6 + $0xa4] sm:$0xf]  ;;  %v4294_v27 = vld [vmem:[%s5716_s6 + $0xb0] sm:$0xf0] }
  0x38   : > { %v4300_v28 = vld [vmem:[%s5716_s6 + $0xa8] sm:$0xf]  ;;  %590 = vmatpush.bf16.msra.mxu0 %v4309_v16  ;;  %v4293_v29 = vor.u32 %v5173_v24, %v4292_v23  ;;  %v5174_v30 = vld [vmem:[%s5716_s6 + $0xb4] sm:$0xf0]  ;;  %v5172_v31 = vld [vmem:[%s5716_s6 + $0xac] sm:$0xf]  ;;  %v4297_v33 = vor.u32 %v5171_v26, %v4294_v27 }
  0x39   : > { %v4302_v32 = vld [vmem:[%s5716_s6 + $0xb8] sm:$0xf0]  ;;  %639 = vmatpush.bf16.msra.mxu1 %v4313_v17  ;;  %v4301_v34 = vor.u32 %v5174_v30, %v4300_v28  ;;  %v4276_v35 = vld [vmem:[%s5716_s6 + $0x80] sm:$0xf]  ;;  %v5169_v36 = vld [vmem:[%s5716_s6 + $0x8c] sm:$0xf0] }
  0x3a   : > { %688 = vmatpush.bf16.msra.mxu2 %v4317_v21  ;;  %v5167_v37 = vld [vmem:[%s5716_s6 + $0x84] sm:$0xf]  ;;  %737 = vmatpush.bf16.msra.mxu3 %v4321_v25  ;;  %v4305_v38 = vor.u32 %v5172_v31, %v4302_v32  ;;  %v4278_v39 = vld [vmem:[%s5716_s6 + $0x90] sm:$0xf0]  ;;  %v4284_v40 = vld [vmem:[%s5716_s6 + $0x88] sm:$0xf]  ;;  %v4277_v44 = vor.u32 %v5169_v36, %v4276_v35 }
  0x3b   : > { %v5170_v41 = vld [vmem:[%s5716_s6 + $0x94] sm:$0xf0]  ;;  %v5168_v42 = vld [vmem:[%s5716_s6 + $0x8c] sm:$0xf]  ;;  %v4286_v43 = vld [vmem:[%s5716_s6 + $0x98] sm:$0xf0]  ;;  %v4281_v45 = vor.u32 %v5167_v37, %v4278_v39 }
  0x3c   : > { %591 = vmatpush.bf16.msra.mxu0 %v4293_v29  ;;  %v4285_v46 = vor.u32 %v5170_v41, %v4284_v40  ;;  %v4260_v47 = vld [vmem:[%s5716_s6 + $0x60] sm:$0xf]  ;;  %v5165_v48 = vld [vmem:[%s5716_s6 + $0x6c] sm:$0xf0]  ;;  %v5163_v49 = vld [vmem:[%s5716_s6 + $0x64] sm:$0xf]  ;;  %v4289_v50 = vor.u32 %v5168_v42, %v4286_v43 }
  0x3d   : > { %640 = vmatpush.bf16.msra.mxu1 %v4297_v33  ;;  %v4262_v51 = vld [vmem:[%s5716_s6 + $0x70] sm:$0xf0]  ;;  %v4268_v52 = vld [vmem:[%s5716_s6 + $0x68] sm:$0xf]  ;;  %v5166_v53 = vld [vmem:[%s5716_s6 + $0x74] sm:$0xf0]  ;;  %v4261_v56 = vor.u32 %v5165_v48, %v4260_v47 }
  0x3e   : > { %689 = vmatpush.bf16.msra.mxu2 %v4301_v34  ;;  %738 = vmatpush.bf16.msra.mxu3 %v4305_v38  ;;  %v5164_v54 = vld [vmem:[%s5716_s6 + $0x6c] sm:$0xf]  ;;  %v4270_v55 = vld [vmem:[%s5716_s6 + $0x78] sm:$0xf0]  ;;  %v4265_v57 = vor.u32 %v5163_v49, %v4262_v51  ;;  %v4269_v58 = vor.u32 %v5166_v53, %v4268_v52  ;;  %v4244_v59 = vld [vmem:[%s5716_s6 + $0x40] sm:$0xf] }
  0x3f   : > { %v5161_v60 = vld [vmem:[%s5716_s6 + $0x4c] sm:$0xf0]  ;;  %v5159_v61 = vld [vmem:[%s5716_s6 + $0x44] sm:$0xf]  ;;  %v4273_v62 = vor.u32 %v5164_v54, %v4270_v55  ;;  %v4246_v63 = vld [vmem:[%s5716_s6 + $0x50] sm:$0xf0] }
  0x40   : > { %592 = vmatpush.bf16.msra.mxu0 %v4277_v44  ;;  %v4252_v0 = vld [vmem:[%s5716_s6 + $0x48] sm:$0xf]  ;;  %v5162_v1 = vld [vmem:[%s5716_s6 + $0x54] sm:$0xf0]  ;;  %v5160_v2 = vld [vmem:[%s5716_s6 + $0x4c] sm:$0xf]  ;;  %v4245_v4 = vor.u32 %v5161_v60, %v4244_v59  ;;  %v4249_v5 = vor.u32 %v5159_v61, %v4246_v63 }
  0x41   : > { %641 = vmatpush.bf16.msra.mxu1 %v4281_v45  ;;  %v4254_v3 = vld [vmem:[%s5716_s6 + $0x58] sm:$0xf0]  ;;  %v4253_v6 = vor.u32 %v5162_v1, %v4252_v0  ;;  %v4228_v7 = vld [vmem:[%s5716_s6 + $0x20] sm:$0xf]  ;;  %v5157_v8 = vld [vmem:[%s5716_s6 + $0x2c] sm:$0xf0] }
  0x42   : > { %690 = vmatpush.bf16.msra.mxu2 %v4285_v46  ;;  %739 = vmatpush.bf16.msra.mxu3 %v4289_v50  ;;  %v5155_v9 = vld [vmem:[%s5716_s6 + $0x24] sm:$0xf]  ;;  %v4257_v10 = vor.u32 %v5160_v2, %v4254_v3  ;;  %v4230_v11 = vld [vmem:[%s5716_s6 + $0x30] sm:$0xf0]  ;;  %v4236_v12 = vld [vmem:[%s5716_s6 + $0x28] sm:$0xf]  ;;  %v4229_v16 = vor.u32 %v5157_v8, %v4228_v7 }
  0x43   : > { %v5158_v13 = vld [vmem:[%s5716_s6 + $0x34] sm:$0xf0]  ;;  %v5156_v14 = vld [vmem:[%s5716_s6 + $0x2c] sm:$0xf]  ;;  %v4238_v15 = vld [vmem:[%s5716_s6 + $0x38] sm:$0xf0]  ;;  %v4233_v20 = vor.u32 %v5155_v9, %v4230_v11 }
  0x44   : > { %593 = vmatpush.bf16.msra.mxu0 %v4261_v56  ;;  %v4212_v17 = vld [vmem:[%s5716_s6] sm:$0xf]  ;;  %v5153_v18 = vld [vmem:[%s5716_s6 + $0xc] sm:$0xf0]  ;;  %v5151_v19 = vld [vmem:[%s5716_s6 + $0x4] sm:$0xf]  ;;  %v4237_v21 = vor.u32 %v5158_v13, %v4236_v12  ;;  %v4241_v25 = vor.u32 %v5156_v14, %v4238_v15 }
  0x45   : > { %642 = vmatpush.bf16.msra.mxu1 %v4265_v57  ;;  %v4214_v22 = vld [vmem:[%s5716_s6 + $0x10] sm:$0xf0]  ;;  %v4220_v23 = vld [vmem:[%s5716_s6 + $0x8] sm:$0xf]  ;;  %v285_v24 = vld [vmem:[%s7429_s1] sm:$0xff]  ;;  %v5589_v29 = vmov 0   ;;  %v4213_v33 = vor.u32 %v5153_v18, %v4212_v17 }
  0x46   : > { %691 = vmatpush.bf16.msra.mxu2 %v4269_v58  ;;  %740 = vmatpush.bf16.msra.mxu3 %v4273_v62  ;;  %v5154_v26 = vld [vmem:[%s5716_s6 + $0x14] sm:$0xf0]  ;;  %v5152_v27 = vld [vmem:[%s5716_s6 + $0xc] sm:$0xf]  ;;  %v4222_v28 = vld [vmem:[%s5716_s6 + $0x18] sm:$0xf0]  ;;  %v4217_v37 = vor.u32 %v5151_v19, %v4214_v22 }
  0x47   : > { %5448 = vset.pattern.permute.xlu0 %v5589_v29  ;;  %v4180_v30 = vld [vmem:[#allocation3] sm:$0xf]  ;;  %v5227_v31 = vld [vmem:[%s5716_s6 + $0xe4] sm:$0xf]  ;;  %v4518_v32 = vld [vmem:[%s5716_s6 + $0xf0] sm:$0xf0]  ;;  %5449 = vset.pattern.permute.xlu1 %v5589_v29  ;;  %v4221_v38 = vor.u32 %v5154_v26, %v4220_v23  ;;  %v4225_v40 = vor.u32 %v5152_v27, %v4222_v28 }
  0x48   : > { %594 = vmatpush.bf16.msra.mxu0 %v4245_v4  ;;  %303 = vperm.xlu0 %5448, %v285_v24   ;;  %v5143_v34 = vld [vmem:[#allocation3 + $0x8] sm:$0xf0]  ;;  %v5259_v35 = vld [vmem:[%s5716_s6 + $0x1e4] sm:$0xf]  ;;  %v4646_v36 = vld [vmem:[%s5716_s6 + $0x1f0] sm:$0xf0]  ;;  %v4521_v41 = vor.u32 %v5227_v31, %v4518_v32 }
  0x49   : > { %643 = vmatpush.bf16.msra.mxu1 %v4249_v5  ;;  %5450 = vset.pattern.permute.xlu2 %v5589_v29  ;;  %v287_v39 = vld [vmem:[%s7429_s1 + $0x10] sm:$0xff]  ;;  %v4644_v42 = vld [vmem:[%s5716_s6 + $0x1e0] sm:$0xf]  ;;  %v4181_v45 = vor.u32 %v5143_v34, %v4180_v30  ;;  %v4649_v46 = vor.u32 %v5259_v35, %v4646_v36  ;;  %v5223_v48 = vld [vmem:[%s5716_s6 + $0xc4] sm:$0xf]  ;;  %vm4059_vm0 = vcmask 1040384  }
  0x4a   : > { %692 = vmatpush.bf16.msra.mxu2 %v4253_v6  ;;  %741 = vmatpush.bf16.msra.mxu3 %v4257_v10  ;;  %v5261_v43 = vld [vmem:[%s5716_s6 + $0x1ec] sm:$0xf0]  ;;  %v4516_v44 = vld [vmem:[%s5716_s6 + $0xe0] sm:$0xf]  ;;  %v4502_v49 = vld [vmem:[%s5716_s6 + $0xd0] sm:$0xf0] }
  0x4b   : > { %313 = vperm.xlu1 %5449, %v287_v39   ;;  %v5229_v47 = vld [vmem:[%s5716_s6 + $0xec] sm:$0xf0]  ;;  %v5255_v50 = vld [vmem:[%s5716_s6 + $0x1c4] sm:$0xf]  ;;  %v4630_v51 = vld [vmem:[%s5716_s6 + $0x1d0] sm:$0xf0]  ;;  %v4645_v52 = vor.u32 %v5261_v43, %v4644_v42  ;;  %v4505_v54 = vor.u32 %v5223_v48, %v4502_v49 }
  0x4c   : > { %595 = vmatpush.bf16.msra.mxu0 %v4229_v16  ;;  %v4517_v53 = vor.u32 %v5229_v47, %v4516_v44  ;;  %v4628_v55 = vld [vmem:[%s5716_s6 + $0x1c0] sm:$0xf]  ;;  %v5257_v56 = vld [vmem:[%s5716_s6 + $0x1cc] sm:$0xf0]  ;;  %v4633_v57 = vor.u32 %v5255_v50, %v4630_v51  ;;  %v286_v60 = vld [vmem:[%s7429_s1 + $0x8] sm:$0xff]  ;;  %vm4061_vm1 = vcmask 1042434  }
  0x4d   : > { %644 = vmatpush.bf16.msra.mxu1 %v4233_v20  ;;  %v4500_v58 = vld [vmem:[%s5716_s6 + $0xc0] sm:$0xf]  ;;  %v5225_v59 = vld [vmem:[%s5716_s6 + $0xcc] sm:$0xf0]  ;;  %v4629_v61 = vor.u32 %v5257_v56, %v4628_v55  ;;  %v5219_v62 = vld [vmem:[%s5716_s6 + $0xa4] sm:$0xf] }
  0x4e   : > { %693 = vmatpush.bf16.msra.mxu2 %v4237_v21  ;;  %742 = vmatpush.bf16.msra.mxu3 %v4241_v25  ;;  %v4486_v63 = vld [vmem:[%s5716_s6 + $0xb0] sm:$0xf0]  ;;  %v5251_v0 = vld [vmem:[%s5716_s6 + $0x1a4] sm:$0xf]  ;;  %v4501_v1 = vor.u32 %v5225_v59, %v4500_v58  ;;  %v288_v4 = vld [vmem:[%s7429_s1 + $0x18] sm:$0xff]  ;;  %s4086_s21 = sshll.u32 %s4082_s30, 4  ;;  %s4087_s21 = int_to_ptr.hbm [resolvable:$true] %s4086_s21 }
  0x4f   : > { %v4489_v2 = vor.u32 %v5219_v62, %v4486_v63  ;;  %v4614_v3 = vld [vmem:[%s5716_s6 + $0x1b0] sm:$0xf0]  ;;  %v4612_v5 = vld [vmem:[%s5716_s6 + $0x1a0] sm:$0xf]  ;;  %v5253_v7 = vld [vmem:[%s5716_s6 + $0x1ac] sm:$0xf0] }
  0x50   : > { %596 = vmatpush.bf16.msra.mxu0 %v4213_v33  ;;  %308 = vperm.xlu0 %5448, %v286_v60   ;;  %v4617_v6 = vor.u32 %v5251_v0, %v4614_v3  ;;  %v4484_v8 = vld [vmem:[%s5716_s6 + $0xa0] sm:$0xf]  ;;  %v5221_v9 = vld [vmem:[%s5716_s6 + $0xac] sm:$0xf0]  ;;  %v4613_v10 = vor.u32 %v5253_v7, %v4612_v5  ;;  %v4184_v12 = vld [vmem:[#allocation3 + $0x18] sm:$0xf] }
  0x51   : > { %645 = vmatpush.bf16.msra.mxu1 %v4217_v37  ;;  %v4485_v11 = vor.u32 %v5221_v9, %v4484_v8  ;;  %v5144_v13 = vld [vmem:[#allocation3 + $0x20] sm:$0xf0]  ;;  %v4470_v16 = vld [vmem:[%s5716_s6 + $0x90] sm:$0xf0]  ;;  %v4596_v20 = vld [vmem:[%s5716_s6 + $0x180] sm:$0xf] }
  0x52   : > { %694 = vmatpush.bf16.msra.mxu2 %v4221_v38  ;;  %743 = vmatpush.bf16.msra.mxu3 %v4225_v40  ;;  %v4185_v14 = vor.u32 %v5144_v13, %v4184_v12  ;;  %v5215_v15 = vld [vmem:[%s5716_s6 + $0x84] sm:$0xf]  ;;  %v4598_v19 = vld [vmem:[%s5716_s6 + $0x190] sm:$0xf0]  ;;  %v5249_v21 = vld [vmem:[%s5716_s6 + $0x18c] sm:$0xf0] }
  0x53   : > { %597 = vmatmul.bf16.vlgmr.msra.gmra.mxu0 %v4181_v45  ;;  %318 = vperm.xlu1 %5449, %v288_v4   ;;  %v5247_v17 = vld [vmem:[%s5716_s6 + $0x184] sm:$0xf]  ;;  %v4473_v18 = vor.u32 %v5215_v15, %v4470_v16  ;;  %v4597_v23 = vor.u32 %v5249_v21, %v4596_v20  ;;  %v4468_v24 = vld [vmem:[%s5716_s6 + $0x80] sm:$0xf]  ;;  %v5217_v25 = vld [vmem:[%s5716_s6 + $0x8c] sm:$0xf0] }
  0x54   : > { %646 = vmatmul.bf16.vlgmr.msra.gmra.mxu1 %v4181_v45  ;;  %1425 = vmatpush.bf16.msrb.mxu0 %v4517_v53  ;;  %v4601_v22 = vor.u32 %v5247_v17, %v4598_v19  ;;  %v291_v26 = vld [vmem:[%s7429_s1 + $0x30] sm:$0xff]  ;;  %v4469_v27 = vor.u32 %v5217_v25, %v4468_v24  ;;  %v5145_v29 = vld [vmem:[#allocation3 + $0x38] sm:$0xf0]  ;;  %v5211_v31 = vld [vmem:[%s5716_s6 + $0x64] sm:$0xf]  ;;  %vm4063_vm2 = vcmask 1041408  }
  0x55   : > { %695 = vmatmul.bf16.vlgmr.msra.gmra.mxu2 %v4181_v45  ;;  %744 = vmatmul.bf16.vlgmr.msra.gmra.mxu3 %v4181_v45  ;;  %v4188_v28 = vld [vmem:[#allocation3 + $0x30] sm:$0xf]  ;;  %v4454_v32 = vld [vmem:[%s5716_s6 + $0x70] sm:$0xf0]  ;;  %v5243_v33 = vld [vmem:[%s5716_s6 + $0x164] sm:$0xf] }
  0x56   : > { %1523 = vmatpush.bf16.msrb.mxu2 %v4521_v41  ;;  %1572 = vmatpush.bf16.msrb.mxu3 %v4649_v46  ;;  %v4189_v30 = vor.u32 %v5145_v29, %v4188_v28  ;;  %v4457_v34 = vor.u32 %v5211_v31, %v4454_v32  ;;  %v4582_v35 = vld [vmem:[%s5716_s6 + $0x170] sm:$0xf0]  ;;  %v289_v36 = vld [vmem:[%s7429_s1 + $0x20] sm:$0xff]  ;;  %v292_v37 = vld [vmem:[%s7429_s1 + $0x38] sm:$0xff]  ;;  %s4072_s26 = scalar_lea.sflag [#allocation5], %s5712_s25  ;;  %s5525_s23 = sshra.s32 %s4087_s21, 4  ;;  %s5526_s23 = int_to_ptr.hbm [resolvable:$true] %s5525_s23 }
  0x57   : > { %1474 = vmatpush.bf16.msrb.mxu1 %v4645_v52  ;;  %v4585_v38 = vor.u32 %v5243_v33, %v4582_v35  ;;  %323 = vperm.xlu2 %5450, %v289_v36   ;;  %v4580_v39 = vld [vmem:[%s5716_s6 + $0x160] sm:$0xf]  ;;  %v5245_v40 = vld [vmem:[%s5716_s6 + $0x16c] sm:$0xf0]  ;;  %v4192_v45 = vld [vmem:[#allocation3 + $0x48] sm:$0xf]  ;;  %p5532_p11 = scmp.lt.s32.totalorder %s5526_s23, %s7432_s4 }
  0x58   : > { %1426 = vmatpush.bf16.msrb.mxu0 %v4501_v1  ;;  %333 = vperm.xlu0 %5448, %v291_v26   ;;  %v4452_v41 = vld [vmem:[%s5716_s6 + $0x60] sm:$0xf]  ;;  %v4581_v42 = vor.u32 %v5245_v40, %v4580_v39  ;;  %v5213_v43 = vld [vmem:[%s5716_s6 + $0x6c] sm:$0xf0]  ;;  %v5146_v46 = vld [vmem:[#allocation3 + $0x50] sm:$0xf0] }
  0x59   : > { %v4453_v44 = vor.u32 %v5213_v43, %v4452_v41  ;;  %v290_v47 = vld [vmem:[%s7429_s1 + $0x28] sm:$0xff]  ;;  %v4193_v48 = vor.u32 %v5146_v46, %v4192_v45  ;;  %v5207_v49 = vld [vmem:[%s5716_s6 + $0x44] sm:$0xf]  ;;  %v4438_v50 = vld [vmem:[%s5716_s6 + $0x50] sm:$0xf0]  ;;  %s5527_s24 = scalar_lea.hbm %s5526_s23, 4 }
  0x5a   : > { %1524 = vmatpush.bf16.msrb.mxu2 %v4505_v54  ;;  %1573 = vmatpush.bf16.msrb.mxu3 %v4633_v57  ;;  %v5239_v51 = vld [vmem:[%s5716_s6 + $0x144] sm:$0xf]  ;;  %v4441_v52 = vor.u32 %v5207_v49, %v4438_v50  ;;  %v4566_v53 = vld [vmem:[%s5716_s6 + $0x150] sm:$0xf0]  ;;  %v294_v54 = vld [vmem:[%s7429_s1 + $0x48] sm:$0xff]  ;;  %p5528_p1 = scmp.ne.s32.totalorder %s5526_s23, %s5527_s24  ;;  %s5531_s7 = scalar_lea.hbm %s7432_s4, 8 }
  0x5b   : > { %1475 = vmatpush.bf16.msrb.mxu1 %v4629_v61  ;;  %338 = vperm.xlu1 %5449, %v292_v37   ;;  %v4564_v55 = vld [vmem:[%s5716_s6 + $0x140] sm:$0xf]  ;;  %v4569_v56 = vor.u32 %v5239_v51, %v4566_v53  ;;  %v5241_v57 = vld [vmem:[%s5716_s6 + $0x14c] sm:$0xf0]  ;;  %v5147_v0 = vld [vmem:[#allocation3 + $0x68] sm:$0xf0]  ;;  %p5533_p9 = scmp.lt.s32.totalorder %s5531_s7, %s5527_s24 }
  0x5c   : > { %1427 = vmatpush.bf16.msrb.mxu0 %v4485_v11  ;;  %v4436_v58 = vld [vmem:[%s5716_s6 + $0x40] sm:$0xf]  ;;  %v5209_v59 = vld [vmem:[%s5716_s6 + $0x4c] sm:$0xf0]  ;;  %v4565_v60 = vor.u32 %v5241_v57, %v4564_v55  ;;  %v4422_v3 = vld [vmem:[%s5716_s6 + $0x30] sm:$0xf0]  ;;  %p5529_p4 = pnand %p5528_p1, %p5682_p7 }
  0x5d   : > { %v4437_v61 = vor.u32 %v5209_v59, %v4436_v58  ;;  %v295_v62 = vld [vmem:[%s7429_s1 + $0x50] sm:$0xff]  ;;  %v4196_v63 = vld [vmem:[#allocation3 + $0x60] sm:$0xf]  ;;  %v5235_v4 = vld [vmem:[%s5716_s6 + $0x124] sm:$0xf]  ;;  %p5534_p2 = por %p5533_p9, %p5532_p11 }
  0x5e   : > { %1525 = vmatpush.bf16.msrb.mxu2 %v4489_v2  ;;  %1574 = vmatpush.bf16.msrb.mxu3 %v4617_v6  ;;  %v4197_v1 = vor.u32 %v5147_v0, %v4196_v63  ;;  %v5203_v2 = vld [vmem:[%s5716_s6 + $0x24] sm:$0xf]  ;;  %v4550_v6 = vld [vmem:[%s5716_s6 + $0x130] sm:$0xf0]  ;;  %v4548_v8 = vld [vmem:[%s5716_s6 + $0x120] sm:$0xf]  ;;  %p5530_p8 = pneg %p5529_p4 }
  0x5f   : > { %1476 = vmatpush.bf16.msrb.mxu1 %v4613_v10  ;;  %328 = vperm.xlu2 %5450, %v290_v47   ;;  %v4425_v5 = vor.u32 %v5203_v2, %v4422_v3  ;;  %v293_v7 = vld [vmem:[%s7429_s1 + $0x40] sm:$0xff]  ;;  %v4553_v9 = vor.u32 %v5235_v4, %v4550_v6  ;;  %v5237_v10 = vld [vmem:[%s5716_s6 + $0x12c] sm:$0xf0]  ;;  %v4200_v16 = vld [vmem:[#allocation3 + $0x78] sm:$0xf] }
  0x60   : > { %1428 = vmatpush.bf16.msrb.mxu0 %v4469_v27  ;;  %348 = vperm.xlu0 %5448, %v294_v54   ;;  %v4420_v11 = vld [vmem:[%s5716_s6 + $0x20] sm:$0xf]  ;;  %v5205_v12 = vld [vmem:[%s5716_s6 + $0x2c] sm:$0xf0]  ;;  %v4549_v13 = vor.u32 %v5237_v10, %v4548_v8  ;;  %v5148_v17 = vld [vmem:[#allocation3 + $0x80] sm:$0xf0]  ;;  %p5535_p10 = pnand %p5534_p2, %p5530_p8 }
  0x61   : > { %v297_v15 = vld [vmem:[%s7429_s1 + $0x60] sm:$0xff]  ;;  %v4406_v20 = vld [vmem:[%s5716_s6 + $0x10] sm:$0xf0]  ;;  %v298_v24 = vld [vmem:[%s7429_s1 + $0x68] sm:$0xff] }
  0x62   : > { %1526 = vmatpush.bf16.msrb.mxu2 %v4473_v18  ;;  %1575 = vmatpush.bf16.msrb.mxu3 %v4601_v22  ;;  %v4201_v18 = vor.u32 %v5148_v17, %v4200_v16  ;;  %v5199_v19 = vld [vmem:[%s5716_s6 + $0x4] sm:$0xf]  ;;  %v4532_v25 = vld [vmem:[%s5716_s6 + $0x100] sm:$0xf]  ;;  %v5233_v27 = vld [vmem:[%s5716_s6 + $0x10c] sm:$0xf0] }
  0x63   : > { %602 = vmatmul.bf16.gmra.mxu0 %v4185_v14  ;;  %1477 = vmatpush.bf16.msrb.mxu1 %v4597_v23  ;;  %v5231_v21 = vld [vmem:[%s5716_s6 + $0x104] sm:$0xf]  ;;  %v4409_v22 = vor.u32 %v5199_v19, %v4406_v20  ;;  %v4534_v23 = vld [vmem:[%s5716_s6 + $0x110] sm:$0xf0]  ;;  %v4404_v28 = vld [vmem:[%s5716_s6] sm:$0xf] }
  0x64   : > { %651 = vmatmul.bf16.gmra.mxu1 %v4185_v14  ;;  %1429 = vmatpush.bf16.msrb.mxu0 %v4453_v44  ;;  %v4537_v26 = vor.u32 %v5231_v21, %v4534_v23  ;;  %v5201_v29 = vld [vmem:[%s5716_s6 + $0xc] sm:$0xf0]  ;;  %v296_v32 = vld [vmem:[%s7429_s1 + $0x58] sm:$0xff]  ;;  %v5228_v36 = vld [vmem:[%s5716_s6 + $0xec] sm:$0xf] }
  0x65   : > { %700 = vmatmul.bf16.gmra.mxu2 %v4185_v14  ;;  %749 = vmatmul.bf16.gmra.mxu3 %v4185_v14  ;;  %v4421_v14 = vor.u32 %v5205_v12, %v4420_v11  ;;  %v4405_v31 = vor.u32 %v5201_v29, %v4404_v28  ;;  %v4204_v33 = vld [vmem:[#allocation3 + $0x90] sm:$0xf]  ;;  %v4526_v37 = vld [vmem:[%s5716_s6 + $0xf8] sm:$0xf0]  ;;  %v4652_v43 = vld [vmem:[%s5716_s6 + $0x1e8] sm:$0xf] }
  0x66   : > { %1527 = vmatpush.bf16.msrb.mxu2 %v4457_v34  ;;  %1576 = vmatpush.bf16.msrb.mxu3 %v4585_v38  ;;  %v5149_v34 = vld [vmem:[#allocation3 + $0x98] sm:$0xf0]  ;;  %v5260_v38 = vld [vmem:[%s5716_s6 + $0x1ec] sm:$0xf]  ;;  %v4529_v39 = vor.u32 %v5228_v36, %v4526_v37  ;;  %v5262_v44 = vld [vmem:[%s5716_s6 + $0x1f4] sm:$0xf0] }
  0x67   : > { %1478 = vmatpush.bf16.msrb.mxu1 %v4581_v42  ;;  %353 = vperm.xlu1 %5449, %v295_v62   ;;  %v4205_v35 = vor.u32 %v5149_v34, %v4204_v33  ;;  %v4654_v40 = vld [vmem:[%s5716_s6 + $0x1f8] sm:$0xf0]  ;;  %v4208_v45 = vld [vmem:[#allocation3 + $0xa8] sm:$0xf]  ;;  %v5150_v46 = vld [vmem:[#allocation3 + $0xb0] sm:$0xf0]  ;;  %v4653_v47 = vor.u32 %v5262_v44, %v4652_v43 }
  0x68   : > { %1430 = vmatpush.bf16.msrb.mxu0 %v4437_v61  ;;  %343 = vperm.xlu2 %5450, %v293_v7   ;;  %v300_v41 = vld [vmem:[%s7429_s1 + $0x78] sm:$0xff]  ;;  %v4657_v42 = vor.u32 %v5260_v38, %v4654_v40  ;;  %v929_v50 = vld [vmem:[%s7429_s1 + $0x80] sm:$0xff]  ;;  %v5224_v53 = vld [vmem:[%s5716_s6 + $0xcc] sm:$0xf] }
  0x69   : > { %363 = vperm.xlu0 %5448, %v297_v15   ;;  %v5230_v49 = vld [vmem:[%s5716_s6 + $0xf4] sm:$0xf0]  ;;  %v4510_v54 = vld [vmem:[%s5716_s6 + $0xd8] sm:$0xf0]  ;;  %v299_v55 = vld [vmem:[%s7429_s1 + $0x70] sm:$0xff] }
  0x6a   : > { %1528 = vmatpush.bf16.msrb.mxu2 %v4441_v52  ;;  %1577 = vmatpush.bf16.msrb.mxu3 %v4569_v56  ;;  %v4209_v52 = vor.u32 %v5150_v46, %v4208_v45  ;;  %v4513_v56 = vor.u32 %v5224_v53, %v4510_v54  ;;  %v5256_v57 = vld [vmem:[%s5716_s6 + $0x1cc] sm:$0xf]  ;;  %v4638_v58 = vld [vmem:[%s5716_s6 + $0x1d8] sm:$0xf0]  ;;  %v4636_v61 = vld [vmem:[%s5716_s6 + $0x1c8] sm:$0xf] }
  0x6b   : > { %1479 = vmatpush.bf16.msrb.mxu1 %v4565_v60  ;;  %v4641_v59 = vor.u32 %v5256_v57, %v4638_v58  ;;  %v4340_v60 = vld [vmem:[#allocation3 + $0xc0] sm:$0xf]  ;;  %v5258_v62 = vld [vmem:[%s5716_s6 + $0x1d4] sm:$0xf0]  ;;  %v5184_v0 = vld [vmem:[#allocation3 + $0xc8] sm:$0xf0] }
  0x6c   : > { %1431 = vmatpush.bf16.msrb.mxu0 %v4421_v14  ;;  %v4342_v2 = vld [vmem:[#allocation3 + $0xcc] sm:$0xf0]  ;;  %v4637_v3 = vor.u32 %v5258_v62, %v4636_v61  ;;  %v4508_v4 = vld [vmem:[%s5716_s6 + $0xc8] sm:$0xf]  ;;  %v5920_v8 = vor.u32 %v5184_v0, %v4340_v60  ;;  %v5220_v14 = vld [vmem:[%s5716_s6 + $0xac] sm:$0xf] }
  0x6d   : > { %v931_v6 = vld [vmem:[%s7429_s1 + $0x90] sm:$0xff]  ;;  %v4494_v15 = vld [vmem:[%s5716_s6 + $0xb8] sm:$0xf0]  ;;  %v5252_v19 = vld [vmem:[%s5716_s6 + $0x1ac] sm:$0xf] }
  0x6e   : > { %1529 = vmatpush.bf16.msrb.mxu2 %v4425_v5  ;;  %1578 = vmatpush.bf16.msrb.mxu3 %v4553_v9  ;;  %v5226_v5 = vld [vmem:[%s5716_s6 + $0xd4] sm:$0xf0]  ;;  %v4622_v20 = vld [vmem:[%s5716_s6 + $0x1b8] sm:$0xf0]  ;;  %v4350_v36 = vld [vmem:[#allocation3 + $0xe4] sm:$0xf0] }
  0x6f   : > { %1480 = vmatpush.bf16.msrb.mxu1 %v4549_v13  ;;  %368 = vperm.xlu1 %5449, %v298_v24   ;;  %v4509_v7 = vor.u32 %v5226_v5, %v4508_v4  ;;  %v932_v16 = vld [vmem:[%s7429_s1 + $0x98] sm:$0xff]  ;;  %v4492_v38 = vld [vmem:[%s5716_s6 + $0xa8] sm:$0xf]  ;;  %v5216_v53 = vld [vmem:[%s5716_s6 + $0x8c] sm:$0xf] }
  0x70   : > { %358 = vperm.xlu2 %5450, %v296_v32   ;;  %1432 = vmatpush.bf16.msrb.mxu0 %v4405_v31  ;;  %v5186_v31 = vld [vmem:[#allocation3 + $0xe0] sm:$0xf0]  ;;  %v4620_v32 = vld [vmem:[%s5716_s6 + $0x1a8] sm:$0xf]  ;;  %v5254_v33 = vld [vmem:[%s5716_s6 + $0x1b4] sm:$0xf0] }
  0x71   : > { %378 = vperm.xlu0 %5448, %v300_v41   ;;  %v4621_v37 = vor.u32 %v5254_v33, %v4620_v32  ;;  %v930_v40 = vld [vmem:[%s7429_s1 + $0x88] sm:$0xff]  ;;  %v4478_v54 = vld [vmem:[%s5716_s6 + $0x98] sm:$0xf0]  ;;  %v4356_v4 = vld [vmem:[#allocation3 + $0xf0] sm:$0xf] }
  0x72   : > { %1530 = vmatpush.bf16.msrb.mxu2 %v4409_v22  ;;  %1579 = vmatpush.bf16.msrb.mxu3 %v4537_v26  ;;  %v4625_v22 = vor.u32 %v5252_v19, %v4622_v20  ;;  %v4481_v57 = vor.u32 %v5216_v53, %v4478_v54  ;;  %v4606_v58 = vld [vmem:[%s5716_s6 + $0x198] sm:$0xf0]  ;;  %v5212_v53 = vld [vmem:[%s5716_s6 + $0x6c] sm:$0xf] }
  0x73   : > { %607 = vmatmul.bf16.gmra.mxu0 %v4189_v30  ;;  %v5188_v5 = vld [vmem:[#allocation3 + $0xf8] sm:$0xf0] }
  0x74   : > { %656 = vmatmul.bf16.gmra.mxu1 %v4189_v30  ;;  %v5992_v20 = vor.u32 %v5188_v5, %v4356_v4  ;;  %v4462_v54 = vld [vmem:[%s5716_s6 + $0x78] sm:$0xf0]  ;;  %v4366_v4 = vld [vmem:[#allocation3 + $0x114] sm:$0xf0] }
  0x75   : > { %705 = vmatmul.bf16.gmra.mxu2 %v4189_v30  ;;  %754 = vmatmul.bf16.gmra.mxu3 %v4189_v30  ;;  %v4533_v30 = vor.u32 %v5233_v27, %v4532_v25 }
  0x76   : > { %1719 = vmatpush.bf16.msra.mxu2 %v4529_v39  ;;  %1768 = vmatpush.bf16.msra.mxu3 %v4657_v42  ;;  %v5222_v39 = vld [vmem:[%s5716_s6 + $0xb4] sm:$0xf0]  ;;  %7470 = vst [vmem:[#allocation12_spill] sm:$0xff] %v5992_v20 }
  0x77   : > { %1481 = vmatpush.bf16.msrb.mxu1 %v4533_v30  ;;  %947 = vperm.xlu1 %5449, %v929_v50   ;;  %v4348_v30 = vld [vmem:[#allocation3 + $0xd8] sm:$0xf]  ;;  %v4493_v41 = vor.u32 %v5222_v39, %v4492_v38 }
  0x78   : > { %373 = vperm.xlu2 %5450, %v299_v55   ;;  %v5954_v43 = vor.u32 %v5186_v31, %v4348_v30  ;;  %v5248_v55 = vld [vmem:[%s5716_s6 + $0x18c] sm:$0xf] }
  0x79   : > { %957 = vperm.xlu0 %5448, %v931_v6  }
  0x7a   : > { %1720 = vmatpush.bf16.msra.mxu2 %v4513_v56  ;;  %1769 = vmatpush.bf16.msra.mxu3 %v4641_v59  ;;  %v934_v59 = vld [vmem:[%s7429_s1 + $0xa8] sm:$0xff] }
  0x7b   : > { %1670 = vmatpush.bf16.msra.mxu1 %v4653_v47 }
  0x7e   : > { %1770 = vmatpush.bf16.msra.mxu3 %v4625_v22 }
  0x7f   : > { %1671 = vmatpush.bf16.msra.mxu1 %v4637_v3  ;;  %962 = vperm.xlu1 %5449, %v932_v16   ;;  %v4476_v16 = vld [vmem:[%s5716_s6 + $0x88] sm:$0xf] }
  0x80   : > { %952 = vperm.xlu2 %5450, %v930_v40  }
  0x81   : > { %972 = vperm.xlu0 %5448, %v934_v59  }
  0x83   : > { %612 = vmatmul.bf16.gmra.mxu0 %v4193_v48  ;;  %1672 = vmatpush.bf16.msra.mxu1 %v4621_v37  ;;  %v6014_v37 = vld [vmem:[%s7428_s0] sm:$0xff] }
  0x84   : > { %661 = vmatmul.bf16.gmra.mxu1 %v4193_v48  ;;  %v3486_v59 = vperm.slane %v6014_v37, 7  ;;  %v3385_v5 = vperm.slane %v6014_v37, 0 }
  0x85   : > { %710 = vmatmul.bf16.gmra.mxu2 %v4193_v48  ;;  %759 = vmatmul.bf16.gmra.mxu3 %v4193_v48  ;;  %v4524_v48 = vld [vmem:[%s5716_s6 + $0xe8] sm:$0xf] }
  0x86   : > { %v4525_v51 = vor.u32 %v5230_v49, %v4524_v48 }
  0x88   : > { %1621 = vmatpush.bf16.msra.mxu0 %v4525_v51 }
  0x8c   : > { %1622 = vmatpush.bf16.msra.mxu0 %v4509_v7  ;;  %v5187_v7 = vld [vmem:[#allocation3 + $0xf4] sm:$0xf] }
  0x90   : > { %1623 = vmatpush.bf16.msra.mxu0 %v4493_v41  ;;  %v3421_v41 = vperm.slane %v6014_v37, 1 }
  0x93   : > { %617 = vmatmul.bf16.gmra.mxu0 %v4197_v1 }
  0x94   : > { %666 = vmatmul.bf16.gmra.mxu1 %v4197_v1 }
  0x95   : > { %715 = vmatmul.bf16.gmra.mxu2 %v4197_v1  ;;  %764 = vmatmul.bf16.gmra.mxu3 %v4197_v1  ;;  %v5183_v1 = vld [vmem:[#allocation3 + $0xc4] sm:$0xf] }
  0x96   : > { %v5922_v10 = vor.u32 %v5183_v1, %v4342_v2 }
  0xa3   : > { %622 = vmatmul.bf16.gmra.mxu0 %v4201_v18 }
  0xa4   : > { %671 = vmatmul.bf16.gmra.mxu1 %v4201_v18 }
  0xa5   : > { %720 = vmatmul.bf16.gmra.mxu2 %v4201_v18  ;;  %769 = vmatmul.bf16.gmra.mxu3 %v4201_v18  ;;  %v4497_v18 = vor.u32 %v5220_v14, %v4494_v15  ;;  %v5250_v14 = vld [vmem:[%s5716_s6 + $0x194] sm:$0xf0] }
  0xa7   : > { %1721 = vmatpush.bf16.msra.mxu2 %v4497_v18  ;;  %v935_v18 = vld [vmem:[%s7429_s1 + $0xb0] sm:$0xff] }
  0xa8   : > { %977 = vperm.xlu1 %5449, %v935_v18  }
  0xab   : > { %1722 = vmatpush.bf16.msra.mxu2 %v4481_v57  ;;  %v5244_v57 = vld [vmem:[%s5716_s6 + $0x16c] sm:$0xf] }
  0xb1   : > { %v324_v6 = vpop.permute.xlu2 %323 }
  0xb3   : > { %627 = vmatmul.bf16.gmra.mxu0 %v4205_v35 }
  0xb4   : > { %676 = vmatmul.bf16.gmra.mxu1 %v4205_v35 }
  0xb5   : > { %725 = vmatmul.bf16.gmra.mxu2 %v4205_v35  ;;  %774 = vmatmul.bf16.gmra.mxu3 %v4205_v35  ;;  %v5185_v35 = vld [vmem:[#allocation3 + $0xdc] sm:$0xf] }
  0xb6   : > { %v5958_v47 = vor.u32 %v5185_v35, %v4350_v36  ;;  %v933_v36 = vld [vmem:[%s7429_s1 + $0xa0] sm:$0xff] }
  0xb7   : > { %967 = vperm.xlu2 %5450, %v933_v36  }
  0xba   : > { %v304_v63 = vpop.permute.xlu0 %303 }
  0xbd   : > { %v314_v34 = vpop.permute.xlu1 %313 }
  0xc2   : > { %v309_v17 = vpop.permute.xlu0 %308 }
  0xc3   : > { %632 = vmatmul.bf16.gmra.mxu0 %v4209_v52 }
  0xc4   : > { %681 = vmatmul.bf16.gmra.mxu1 %v4209_v52 }
  0xc5   : > { %730 = vmatmul.bf16.gmra.mxu2 %v4209_v52  ;;  %779 = vmatmul.bf16.gmra.mxu3 %v4209_v52  ;;  %v319_v52 = vpop.permute.xlu1 %318 }
  0xd0   : > { %v598_v9 = vpop.f32.mrf.mxu0 }
  0xd1   : > { %v5924_v11 = vadd.f32 %v598_v9, %v304_v63  ;;  %v647_v12 = vpop.f32.mrf.mxu1  ;;  %v4358_v9 = vld [vmem:[#allocation3 + $0xfc] sm:$0xf0] }
  0xd2   : > { %v5926_v13 = vadd.f32 %v647_v12, %v304_v63  ;;  %v4604_v12 = vld [vmem:[%s5716_s6 + $0x188] sm:$0xf] }
  0xd3   : > { %1433 = vmatmul.bf16.vlgmr.msrb.gmra.mxu0 %v5920_v8  ;;  %v4605_v15 = vor.u32 %v5250_v14, %v4604_v12 }
  0xd4   : > { %1482 = vmatmul.bf16.vlgmr.msrb.gmra.mxu1 %v5922_v10 }
  0xd5   : > { %1531 = vmatmul.bf16.vlgmr.msrb.gmra.mxu2 %v5920_v8  ;;  %1580 = vmatmul.bf16.vlgmr.msrb.gmra.mxu3 %v5922_v10 }
  0xd6   : > { %1673 = vmatpush.bf16.msra.mxu1 %v4605_v15 }
  0xd8   : > { %v696_v21 = vpop.f32.mrf.mxu2  ;;  %v745_v24 = vpop.f32.mrf.mxu3 }
  0xd9   : > { %v5939_v23 = vadd.f32 %v696_v21, %v304_v63  ;;  %v600_v25 = vpop.f32.mrf.mxu0  ;;  %v5941_v26 = vadd.f32 %v745_v24, %v304_v63  ;;  %v649_v28 = vpop.f32.mrf.mxu1  ;;  %v4609_v63 = vor.u32 %v5248_v55, %v4606_v58  ;;  %v3485_v55 = vperm.slane %v6014_v37, 3  ;;  %v4590_v58 = vld [vmem:[%s5716_s6 + $0x178] sm:$0xf0] }
  0xda   : > { %v5943_v27 = vadd.f32 %v600_v25, %v309_v17  ;;  %v5945_v29 = vadd.f32 %v649_v28, %v309_v17  ;;  %v5996_v28 = vor.u32 %v5187_v7, %v4358_v9  ;;  %v3386_v7 = vperm.slane %v6014_v37, 4 }
  0xdb   : > { %1771 = vmatpush.bf16.msra.mxu3 %v4609_v63  ;;  %v4593_v63 = vor.u32 %v5244_v57, %v4590_v58  ;;  %v6034_v9 = vperm.slane %v3421_v41, 1  ;;  %v6036_v14 = vperm.slane %v3485_v55, 3  ;;  %v5214_v57 = vld [vmem:[%s5716_s6 + $0x74] sm:$0xf0] }
  0xdc   : > { %7471 = vst [vmem:[#allocation13_spill] sm:$0xff] %v5996_v28 }
  0xdf   : > { %1772 = vmatpush.bf16.msra.mxu3 %v4593_v63 }
  0xe0   : > { %v698_v42 = vpop.f32.mrf.mxu2  ;;  %v747_v45 = vpop.f32.mrf.mxu3 }
  0xe1   : > { %v5956_v44 = vadd.f32 %v698_v42, %v309_v17  ;;  %v603_v46 = vpop.f32.mrf.mxu0  ;;  %v5960_v48 = vadd.f32 %v747_v45, %v309_v17  ;;  %v652_v50 = vpop.f32.mrf.mxu1  ;;  %v5218_v17 = vld [vmem:[%s5716_s6 + $0x94] sm:$0xf0] }
  0xe2   : > { %v5962_v49 = vadd.f32 %v603_v46, %v314_v34  ;;  %v5964_v51 = vadd.f32 %v652_v50, %v314_v34  ;;  %v4477_v21 = vor.u32 %v5218_v17, %v4476_v16  ;;  %v3422_v50 = vperm.slane %v6014_v37, 5  ;;  %v937_v16 = vld [vmem:[%s7429_s1 + $0xc0] sm:$0xff]  ;;  %v6046_v17 = vld [vmem:[%s7428_s0 + $0x8] sm:$0xff] }
  0xe3   : > { %1438 = vmatmul.bf16.gmra.mxu0 %v5954_v43  ;;  %987 = vperm.xlu0 %5448, %v937_v16   ;;  %v3424_v36 = vperm.slane %v6046_v17, 5 }
  0xe4   : > { %1487 = vmatmul.bf16.gmra.mxu1 %v5958_v47  ;;  %1624 = vmatpush.bf16.msra.mxu0 %v4477_v21  ;;  %v6048_v18 = vperm.slane %v3422_v50, 1  ;;  %v5246_v50 = vld [vmem:[%s5716_s6 + $0x174] sm:$0xf0]  ;;  %v3433_v58 = vmul.f32 %v6034_v9, %v5962_v49 }
  0xe5   : > { %1536 = vmatmul.bf16.gmra.mxu2 %v5954_v43  ;;  %1585 = vmatmul.bf16.gmra.mxu3 %v5958_v47 }
  0xe8   : > { %v701_v56 = vpop.f32.mrf.mxu2  ;;  %v750_v61 = vpop.f32.mrf.mxu3 }
  0xe9   : > { %v5977_v60 = vadd.f32 %v701_v56, %v314_v34  ;;  %v605_v62 = vpop.f32.mrf.mxu0  ;;  %v5979_v0 = vadd.f32 %v750_v61, %v314_v34  ;;  %v654_v2 = vpop.f32.mrf.mxu1  ;;  %v4465_v56 = vor.u32 %v5212_v53, %v4462_v54  ;;  %v4364_v61 = vld [vmem:[#allocation3 + $0x108] sm:$0xf]  ;;  %v3487_v54 = vperm.slane %v6046_v17, 3 }
  0xea   : > { %v5981_v1 = vadd.f32 %v605_v62, %v319_v52  ;;  %v5983_v3 = vadd.f32 %v654_v2, %v319_v52  ;;  %v329_v34 = vpop.permute.xlu2 %328  ;;  %v5190_v62 = vld [vmem:[#allocation3 + $0x110] sm:$0xf0]  ;;  %v5189_v2 = vld [vmem:[#allocation3 + $0x10c] sm:$0xf] }
  0xeb   : > { %1723 = vmatpush.bf16.msra.mxu2 %v4465_v56  ;;  %v6038_v15 = vor.u32 %v5190_v62, %v4364_v61  ;;  %v4460_v56 = vld [vmem:[%s5716_s6 + $0x68] sm:$0xf]  ;;  %v3434_v62 = vmul.f32 %v6048_v18, %v5964_v51  ;;  %v6084_v16 = vperm.slane %v3487_v54, 3  ;;  %v6086_v51 = vpop.permute.xlu1 %338 }
  0xec   : > { %v4461_v61 = vor.u32 %v5214_v57, %v4460_v56 }
  0xed   : > { %7472 = vst [vmem:[#allocation14_spill] sm:$0xff] %v6038_v15 }
  0xee   : > { %1625 = vmatpush.bf16.msra.mxu0 %v4461_v61  ;;  %v5240_v61 = vld [vmem:[%s5716_s6 + $0x14c] sm:$0xf] }
  0xf0   : > { %v703_v19 = vpop.f32.mrf.mxu2  ;;  %v752_v24 = vpop.f32.mrf.mxu3 }
  0xf1   : > { %v5994_v22 = vadd.f32 %v703_v19, %v319_v52  ;;  %v608_v25 = vpop.f32.mrf.mxu0  ;;  %v5998_v30 = vadd.f32 %v752_v24, %v319_v52  ;;  %v657_v32 = vpop.f32.mrf.mxu1 }
  0xf2   : > { %v6000_v31 = vadd.f32 %v608_v25, %v324_v6  ;;  %v6002_v33 = vadd.f32 %v657_v32, %v324_v6  ;;  %v6052_v25 = vperm.slane %v3486_v59, 3  ;;  %v6054_v32 = vor.u32 %v5189_v2, %v4366_v4 }
  0xf3   : > { %1443 = vmatmul.bf16.gmra.mxu0 %v5992_v20  ;;  %v6077_v4 = vperm.slane %v3424_v36, 1 }
  0xf4   : > { %1492 = vmatmul.bf16.gmra.mxu1 %v5996_v28  ;;  %7473 = vst [vmem:[#allocation15_spill] sm:$0xff] %v6054_v32 }
  0xf5   : > { %1541 = vmatmul.bf16.gmra.mxu2 %v5992_v20  ;;  %1590 = vmatmul.bf16.gmra.mxu3 %v5996_v28  ;;  %v4572_v28 = vld [vmem:[%s5716_s6 + $0x148] sm:$0xf] }
  0xf8   : > { %v706_v35 = vpop.f32.mrf.mxu2  ;;  %v755_v39 = vpop.f32.mrf.mxu3 }
  0xf9   : > { %v6016_v38 = vadd.f32 %v706_v35, %v324_v6  ;;  %v610_v40 = vpop.f32.mrf.mxu0  ;;  %v6019_v42 = vadd.f32 %v755_v39, %v324_v6  ;;  %v659_v46 = vpop.f32.mrf.mxu1  ;;  %v3423_v35 = vperm.slane %v6046_v17, 1 }
  0xfa   : > { %v6021_v45 = vadd.f32 %v610_v40, %v329_v34  ;;  %v6024_v52 = vadd.f32 %v659_v46, %v329_v34  ;;  %v334_v6 = vpop.permute.xlu0 %333  ;;  %v4588_v46 = vld [vmem:[%s5716_s6 + $0x168] sm:$0xf] }
  0xfb   : > { %v4589_v55 = vor.u32 %v5246_v50, %v4588_v46  ;;  %v6075_v2 = vperm.slane %v3423_v35, 1  ;;  %v3388_v46 = vperm.slane %v6046_v17, 4  ;;  %v3449_v50 = vperm.slane %v6014_v37, 2 }
  0xfd   : > { %1674 = vmatpush.bf16.msra.mxu1 %v4589_v55  ;;  %v3435_v54 = vmul.f32 %v6075_v2, %v5977_v60  ;;  %v3436_v55 = vmul.f32 %v6077_v4, %v5979_v0  ;;  %v4372_v60 = vld [vmem:[#allocation3 + $0x120] sm:$0xf]  ;;  %v4574_v0 = vld [vmem:[%s5716_s6 + $0x158] sm:$0xf0] }
 0x100   : > { %v708_v12 = vpop.f32.mrf.mxu2  ;;  %v757_v21 = vpop.f32.mrf.mxu3 }
 0x101   : > { %v6050_v19 = vadd.f32 %v708_v12, %v329_v34  ;;  %v613_v24 = vpop.f32.mrf.mxu0  ;;  %v6058_v39 = vadd.f32 %v757_v21, %v329_v34  ;;  %v662_v41 = vpop.f32.mrf.mxu1  ;;  %v3488_v34 = vperm.slane %v6046_v17, 7  ;;  %v6088_v21 = vperm.slane %v3385_v5, 0 }
 0x102   : > { %v614_v40 = vadd.f32 %v613_v24, %v334_v6  ;;  %v663_v53 = vadd.f32 %v662_v41, %v334_v6  ;;  %v6090_v24 = vperm.slane %v3386_v7, 0  ;;  %v3387_v41 = vperm.slane %v6046_v17, 0 }
 0x103   : > { %1448 = vmatmul.bf16.gmra.mxu0 %v6038_v15  ;;  %v6092_v36 = vperm.slane %v3488_v34, 3  ;;  %v4446_v34 = vld [vmem:[%s5716_s6 + $0x58] sm:$0xf0] }
 0x104   : > { %v3497_v59 = vmul.f32 %v6036_v14, %v614_v40  ;;  %v3498_v63 = vmul.f32 %v6052_v25, %v663_v53  ;;  %1497 = vmatmul.bf16.gmra.mxu1 %v6054_v32  ;;  %v938_v40 = vld [vmem:[%s7429_s1 + $0xc8] sm:$0xff] }
 0x105   : > { %1546 = vmatmul.bf16.gmra.mxu2 %v6038_v15  ;;  %1595 = vmatmul.bf16.gmra.mxu3 %v6054_v32  ;;  %v4577_v15 = vor.u32 %v5240_v61, %v4574_v0  ;;  %v6134_v61 = vperm.slane %v3387_v41, 0  ;;  %v3398_v41 = vmul.f32 %v6090_v24, %v5926_v13 }
 0x106   : > { %v6079_v49 = vadd.f32 %v3497_v59, %v3433_v58  ;;  %v6082_v12 = vadd.f32 %v3498_v63, %v3434_v62  ;;  %992 = vperm.xlu1 %5449, %v938_v40   ;;  %v5208_v59 = vld [vmem:[%s5716_s6 + $0x4c] sm:$0xf]  ;;  %v3437_v62 = vmul.f32 %v6034_v9, %v5981_v1  ;;  %v5242_v1 = vld [vmem:[%s5716_s6 + $0x154] sm:$0xf0]  ;;  %v3450_v9 = vperm.slane %v6014_v37, 6 }
 0x107   : > { %v5192_v40 = vld [vmem:[#allocation3 + $0x128] sm:$0xf0]  ;;  %v4449_v32 = vor.u32 %v5208_v59, %v4446_v34  ;;  %v5191_v59 = vld [vmem:[#allocation3 + $0x124] sm:$0xf]  ;;  %v4374_v34 = vld [vmem:[#allocation3 + $0x12c] sm:$0xf0]  ;;  %v4573_v20 = vor.u32 %v5242_v1, %v4572_v28  ;;  %1773 = vmatpush.bf16.msra.mxu3 %v4577_v15 }
 0x108   : > { %v711_v35 = vpop.f32.mrf.mxu2  ;;  %v760_v53 = vpop.f32.mrf.mxu3  ;;  %v6136_v28 = vperm.slane %v3388_v46, 0  ;;  %v6140_v15 = vor.u32 %v5192_v40, %v4372_v60  ;;  %v3451_v46 = vperm.slane %v6046_v17, 2 }
 0x109   : > { %v712_v5 = vadd.f32 %v711_v35, %v334_v6  ;;  %v615_v7 = vpop.f32.mrf.mxu0  ;;  %v761_v56 = vadd.f32 %v760_v53, %v334_v6  ;;  %v664_v58 = vpop.f32.mrf.mxu1  ;;  %v3438_v6 = vmul.f32 %v6048_v18, %v5983_v3  ;;  %1724 = vmatpush.bf16.msra.mxu2 %v4449_v32  ;;  %1675 = vmatpush.bf16.msra.mxu1 %v4573_v20  ;;  %v6138_v32 = vperm.slane %v3449_v50, 2 }
 0x10a   : > { %v616_v57 = vadd.f32 %v615_v7, %v6086_v51  ;;  %v665_v35 = vadd.f32 %v664_v58, %v6086_v51 }
 0x10b   : > { %v3499_v63 = vmul.f32 %v6084_v16, %v712_v5  ;;  %v3500_v53 = vmul.f32 %v6092_v36, %v761_v56  ;;  %v4444_v56 = vld [vmem:[%s5716_s6 + $0x48] sm:$0xf]  ;;  %v3461_v13 = vmul.f32 %v6138_v32, %v6000_v31 }
 0x10c   : > { %v3501_v7 = vmul.f32 %v6036_v14, %v616_v57  ;;  %v3502_v58 = vmul.f32 %v6052_v25, %v665_v35  ;;  %v5210_v14 = vld [vmem:[%s5716_s6 + $0x54] sm:$0xf0] }
 0x10d   : > { %v6120_v5 = vadd.f32 %v3499_v63, %v3435_v54  ;;  %v6123_v3 = vadd.f32 %v3500_v53, %v3436_v55  ;;  %v936_v57 = vld [vmem:[%s7429_s1 + $0xb8] sm:$0xff]  ;;  %v344_v54 = vpop.permute.xlu2 %343  ;;  %v4445_v25 = vor.u32 %v5210_v14, %v4444_v56  ;;  %v6144_v63 = vperm.slane %v3450_v9, 2  ;;  %v5236_v14 = vld [vmem:[%s5716_s6 + $0x12c] sm:$0xf] }
 0x10e   : > { %v6125_v18 = vadd.f32 %v3501_v7, %v3437_v62  ;;  %v6132_v37 = vadd.f32 %v3502_v58, %v3438_v6  ;;  %982 = vperm.xlu2 %5450, %v936_v57   ;;  %v3397_v62 = vmul.f32 %v6088_v21, %v5924_v11  ;;  %v6147_v6 = vor.u32 %v5191_v59, %v4374_v34  ;;  %v6179_v34 = vpop.permute.xlu0 %348  ;;  %v4558_v57 = vld [vmem:[%s5716_s6 + $0x138] sm:$0xf0] }
 0x10f   : > { %1626 = vmatpush.bf16.msra.mxu0 %v4445_v25  ;;  %v3439_v11 = vmul.f32 %v6075_v2, %v5994_v22  ;;  %v3440_v53 = vmul.f32 %v6077_v4, %v5998_v30  ;;  %v3452_v9 = vperm.slane %v6046_v17, 6  ;;  %v3462_v22 = vmul.f32 %v6144_v63, %v6002_v33  ;;  %v5204_v4 = vld [vmem:[%s5716_s6 + $0x2c] sm:$0xf] }
 0x110   : > { %v713_v55 = vpop.f32.mrf.mxu2  ;;  %v762_v0 = vpop.f32.mrf.mxu3  ;;  %v6177_v33 = vperm.slane %v3451_v46, 2 }
 0x111   : > { %v714_v35 = vadd.f32 %v713_v55, %v6086_v51  ;;  %v618_v20 = vpop.f32.mrf.mxu0  ;;  %v763_v50 = vadd.f32 %v762_v0, %v6086_v51  ;;  %v667_v40 = vpop.f32.mrf.mxu1  ;;  %v6183_v25 = vperm.slane %v3452_v9, 2  ;;  %v3399_v0 = vmul.f32 %v6134_v61, %v5939_v23 }
 0x112   : > { %v619_v60 = vadd.f32 %v618_v20, %v344_v54  ;;  %v668_v1 = vadd.f32 %v667_v40, %v344_v54  ;;  %v3401_v40 = vmul.f32 %v6088_v21, %v5943_v27  ;;  %v3402_v23 = vmul.f32 %v6090_v24, %v5945_v29  ;;  %v5193_v29 = vld [vmem:[#allocation3 + $0x13c] sm:$0xf]  ;;  %v4556_v24 = vld [vmem:[%s5716_s6 + $0x128] sm:$0xf] }
 0x113   : > { %v3503_v7 = vmul.f32 %v6084_v16, %v714_v35  ;;  %v3504_v51 = vmul.f32 %v6092_v36, %v763_v50  ;;  %1453 = vmatmul.bf16.gmra.mxu0 %v6140_v15  ;;  %v4430_v16 = vld [vmem:[%s5716_s6 + $0x38] sm:$0xf0]  ;;  %v4561_v35 = vor.u32 %v5236_v14, %v4558_v57  ;;  %v3464_v27 = vmul.f32 %v6183_v25, %v6019_v42 }
 0x114   : > { %v3405_v58 = vadd.f32 %v3397_v62, %v619_v60  ;;  %v3406_v2 = vadd.f32 %v3398_v41, %v668_v1  ;;  %1502 = vmatmul.bf16.gmra.mxu1 %v6147_v6  ;;  %v940_v36 = vld [vmem:[%s7429_s1 + $0xd8] sm:$0xff]  ;;  %v4433_v56 = vor.u32 %v5204_v4, %v4430_v16  ;;  %v3400_v60 = vmul.f32 %v6136_v28, %v5941_v26 }
 0x115   : > { %v6165_v30 = vadd.f32 %v3503_v7, %v3439_v11  ;;  %1551 = vmatmul.bf16.gmra.mxu2 %v6140_v15  ;;  %v6169_v31 = vadd.f32 %v3504_v51, %v3440_v53  ;;  %1600 = vmatmul.bf16.gmra.mxu3 %v6147_v6  ;;  %v4380_v26 = vld [vmem:[#allocation3 + $0x138] sm:$0xf]  ;;  %v3465_v21 = vmul.f32 %v6138_v32, %v6021_v45  ;;  %v941_v45 = vld [vmem:[%s7429_s1 + $0xe0] sm:$0xff] }
 0x116   : > { %v3469_v17 = vadd.f32 %v3461_v13, %v3405_v58  ;;  %v3470_v59 = vadd.f32 %v3462_v22, %v3406_v2  ;;  %1002 = vperm.xlu0 %5448, %v940_v36   ;;  %1725 = vmatpush.bf16.msra.mxu2 %v4433_v56  ;;  %v5194_v13 = vld [vmem:[#allocation3 + $0x140] sm:$0xf0]  ;;  %v4382_v2 = vld [vmem:[#allocation3 + $0x144] sm:$0xf0] }
 0x117   : > { %1774 = vmatpush.bf16.msra.mxu3 %v4561_v35  ;;  %v4428_v36 = vld [vmem:[%s5716_s6 + $0x28] sm:$0xf]  ;;  %1007 = vperm.xlu1 %5449, %v941_v45   ;;  %v6221_v35 = vor.u32 %v5194_v13, %v4380_v26  ;;  %v4414_v26 = vld [vmem:[%s5716_s6 + $0x18] sm:$0xf0]  ;;  %v5232_v13 = vld [vmem:[%s5716_s6 + $0x10c] sm:$0xf] }
 0x118   : > { %v3513_v55 = vadd.f32 %v6079_v49, %v3469_v17  ;;  %v716_v62 = vpop.f32.mrf.mxu2  ;;  %v3514_v20 = vadd.f32 %v6082_v12, %v3470_v59  ;;  %v765_v46 = vpop.f32.mrf.mxu3  ;;  %v3463_v12 = vmul.f32 %v6177_v33, %v6016_v38  ;;  %v3466_v38 = vmul.f32 %v6144_v63, %v6024_v52  ;;  %v5238_v17 = vld [vmem:[%s5716_s6 + $0x134] sm:$0xf0] }
 0x119   : > { %v717_v41 = vadd.f32 %v716_v62, %v344_v54  ;;  %v620_v50 = vpop.f32.mrf.mxu0  ;;  %v766_v11 = vadd.f32 %v765_v46, %v344_v54  ;;  %v669_v53 = vpop.f32.mrf.mxu1  ;;  %v4557_v42 = vor.u32 %v5238_v17, %v4556_v24  ;;  %v5206_v59 = vld [vmem:[%s5716_s6 + $0x34] sm:$0xf0] }
 0x11a   : > { %v621_v49 = vadd.f32 %v620_v50, %v6179_v34  ;;  %v670_v1 = vadd.f32 %v669_v53, %v6179_v34  ;;  %v6206_v51 = vmax.f32 %v3513_v55, 0.0  ;;  %v6214_v32 = vmax.f32 %v3514_v20, 0.0  ;;  %v354_v63 = vpop.permute.xlu1 %353 }
 0x11b   : > { %v3407_v7 = vadd.f32 %v3399_v0, %v717_v41  ;;  %v3408_v54 = vadd.f32 %v3400_v60, %v766_v11  ;;  %v4429_v14 = vor.u32 %v5206_v59, %v4428_v36  ;;  %1676 = vmatpush.bf16.msra.mxu1 %v4557_v42  ;;  %v3403_v0 = vmul.f32 %v6134_v61, %v5956_v44  ;;  %v4388_v42 = vld [vmem:[#allocation3 + $0x150] sm:$0xf]  ;;  %v5196_v36 = vld [vmem:[#allocation3 + $0x158] sm:$0xf0] }
 0x11c   : > { %v3409_v9 = vadd.f32 %v3401_v40, %v621_v49  ;;  %v3410_v22 = vadd.f32 %v3402_v23, %v670_v1  ;;  %v6229_v50 = vor.u32 %v5193_v29, %v4382_v2  ;;  %v3545_v40 = vperm.slane %v6206_v51, 0  ;;  %v5200_v1 = vld [vmem:[%s5716_s6 + $0xc] sm:$0xf] }
 0x11d   : > { %v3471_v58 = vadd.f32 %v3463_v12, %v3407_v7  ;;  %v3472_v4 = vadd.f32 %v3464_v27, %v3408_v54  ;;  %1627 = vmatpush.bf16.msra.mxu0 %v4429_v14  ;;  %v3467_v44 = vmul.f32 %v6177_v33, %v6050_v19  ;;  %v3546_v49 = vperm.slane %v6214_v32, 0  ;;  %v939_v33 = vld [vmem:[%s7429_s1 + $0xd0] sm:$0xff]  ;;  %v359_v7 = vpop.permute.xlu2 %358 }
 0x11e   : > { %v3473_v16 = vadd.f32 %v3465_v21, %v3409_v9  ;;  %v3474_v52 = vadd.f32 %v3466_v38, %v3410_v22  ;;  %v3468_v53 = vmul.f32 %v6183_v25, %v6058_v39  ;;  %997 = vperm.xlu2 %5450, %v939_v33   ;;  %v4417_v54 = vor.u32 %v5200_v1, %v4414_v26  ;;  %v4542_v9 = vld [vmem:[%s5716_s6 + $0x118] sm:$0xf0]  ;;  %v5195_v14 = vld [vmem:[#allocation3 + $0x154] sm:$0xf] }
 0x11f   : > { %v3515_v56 = vadd.f32 %v6120_v5, %v3471_v58  ;;  %v3516_v57 = vadd.f32 %v6123_v3, %v3472_v4  ;;  %v3404_v3 = vmul.f32 %v6136_v28, %v5960_v48  ;;  %v3574_v33 = vperm.slane %v6214_v32, 1 }
 0x120   : > { %v6219_v55 = vadd.f32 %v6125_v18, %v3473_v16  ;;  %v718_v62 = vpop.f32.mrf.mxu2  ;;  %v6226_v20 = vadd.f32 %v6132_v37, %v3474_v52  ;;  %v767_v41 = vpop.f32.mrf.mxu3  ;;  %1726 = vmatpush.bf16.msra.mxu2 %v4417_v54  ;;  %v5234_v52 = vld [vmem:[%s5716_s6 + $0x114] sm:$0xf0]  ;;  %v5124_v54 = vld [vmem:[%s5716_s6 + $0x2e0] sm:$0xf] }
 0x121   : > { %v719_v5 = vadd.f32 %v718_v62, %v6179_v34  ;;  %v623_v46 = vpop.f32.mrf.mxu0  ;;  %v768_v18 = vadd.f32 %v767_v41, %v6179_v34  ;;  %v672_v11 = vpop.f32.mrf.mxu1  ;;  %v6243_v28 = vmax.f32 %v3515_v56, 0.0  ;;  %v6249_v19 = vmax.f32 %v3516_v57, 0.0  ;;  %v4540_v56 = vld [vmem:[%s5716_s6 + $0x108] sm:$0xf]  ;;  %v4390_v57 = vld [vmem:[#allocation3 + $0x15c] sm:$0xf0] }
 0x122   : > { %v624_v60 = vadd.f32 %v623_v46, %v354_v63  ;;  %v673_v61 = vadd.f32 %v672_v11, %v354_v63  ;;  %v4541_v62 = vor.u32 %v5234_v52, %v4540_v56  ;;  %v943_v41 = vld [vmem:[%s7429_s1 + $0xf0] sm:$0xff]  ;;  %v364_v46 = vpop.permute.xlu0 %363 }
 0x123   : > { %v3411_v37 = vadd.f32 %v3403_v0, %v719_v5  ;;  %v3412_v23 = vadd.f32 %v3404_v3, %v768_v18  ;;  %1458 = vmatmul.bf16.gmra.mxu0 %v6221_v35  ;;  %v3547_v24 = vperm.slane %v6243_v28, 0  ;;  %v3548_v2 = vperm.slane %v6249_v19, 0  ;;  %v4412_v0 = vld [vmem:[%s5716_s6 + $0x8] sm:$0xf]  ;;  %v5202_v5 = vld [vmem:[%s5716_s6 + $0x14] sm:$0xf0]  ;;  %1017 = vperm.xlu0 %5448, %v943_v41  }
 0x124   : > { %v6240_v48 = vmul.f32 %v3545_v40, %v624_v60  ;;  %v6245_v12 = vmul.f32 %v3546_v49, %v673_v61  ;;  %1507 = vmatmul.bf16.gmra.mxu1 %v6229_v50  ;;  %v4413_v3 = vor.u32 %v5202_v5, %v4412_v0  ;;  %v6282_v60 = vor.u32 %v5196_v36, %v4388_v42  ;;  %v4396_v5 = vld [vmem:[#allocation3 + $0x168] sm:$0xf]  ;;  %v5198_v41 = vld [vmem:[#allocation3 + $0x170] sm:$0xf0] }
 0x125   : > { %v3475_v34 = vadd.f32 %v3467_v44, %v3411_v37  ;;  %1556 = vmatmul.bf16.gmra.mxu2 %v6221_v35  ;;  %v3476_v39 = vadd.f32 %v3468_v53, %v3412_v23  ;;  %1605 = vmatmul.bf16.gmra.mxu3 %v6229_v50  ;;  %v6284_v37 = vor.u32 %v5195_v14, %v4390_v57  ;;  %v3573_v53 = vperm.slane %v6206_v51, 1 }
 0x126   : > { %7474 = vst [vmem:[#allocation16_spill] sm:$0xff] %v6245_v12  ;;  %1677 = vmatpush.bf16.msra.mxu1 %v4541_v62  ;;  %1628 = vmatpush.bf16.msra.mxu0 %v4413_v3  ;;  %v4398_v3 = vld [vmem:[#allocation3 + $0x174] sm:$0xf0] }
 0x127   : > { %v6256_v25 = vadd.f32 %v6165_v30, %v3475_v34  ;;  %v6262_v27 = vadd.f32 %v6169_v31, %v3476_v39  ;;  %v4545_v30 = vor.u32 %v5232_v13, %v4542_v9  ;;  %v369_v13 = vpop.permute.xlu1 %368  ;;  %v5381_v9 = vld [vmem:[%s5716_s6 + $0x2ec] sm:$0xf0] }
 0x128   : > { %v721_v21 = vpop.f32.mrf.mxu2  ;;  %v770_v38 = vpop.f32.mrf.mxu3 }
 0x129   : > { %v722_v29 = vadd.f32 %v721_v21, %v354_v63  ;;  %v625_v58 = vpop.f32.mrf.mxu0  ;;  %v771_v22 = vadd.f32 %v770_v38, %v354_v63  ;;  %v674_v4 = vpop.f32.mrf.mxu1  ;;  %1775 = vmatpush.bf16.msra.mxu3 %v4545_v30  ;;  %v3575_v38 = vperm.slane %v6243_v28, 1 }
 0x12a   : > { %v626_v17 = vadd.f32 %v625_v58, %v359_v7  ;;  %v675_v16 = vadd.f32 %v674_v4, %v359_v7 }
 0x12b   : > { %v6267_v31 = vmul.f32 %v3547_v24, %v722_v29  ;;  %v6269_v59 = vmul.f32 %v3548_v2, %v771_v22  ;;  %v5315_v29 = vld [vmem:[%s5716_s6 + $0xe4] sm:$0xf]  ;;  %v5125_v22 = vor.u32 %v5381_v9, %v5124_v54 }
 0x12c   : > { %v6271_v45 = vmul.f32 %v3545_v40, %v626_v17  ;;  %v6275_v63 = vmul.f32 %v3546_v49, %v675_v16  ;;  %v944_v17 = vld [vmem:[%s7429_s1 + $0xf8] sm:$0xff]  ;;  %v3576_v16 = vperm.slane %v6249_v19, 1 }
 0x12d   : > { %7475 = vst [vmem:[#allocation17_spill] sm:$0xff] %v6267_v31  ;;  %1022 = vperm.xlu1 %5449, %v944_v17   ;;  %2811 = vmatpush.bf16.msrb.mxu2 %v5125_v22  ;;  %v4788_v31 = vld [vmem:[%s5716_s6 + $0x40] sm:$0xf] }
 0x12e   : > { %7476 = vst [vmem:[#allocation18_spill] sm:$0xff] %v6269_v59 }
 0x12f   : > { %7477 = vst [vmem:[#allocation19_spill] sm:$0xff] %v6275_v63 }
 0x130   : > { %v723_v18 = vpop.f32.mrf.mxu2  ;;  %v772_v11 = vpop.f32.mrf.mxu3 }
 0x131   : > { %v724_v40 = vadd.f32 %v723_v18, %v359_v7  ;;  %v628_v44 = vpop.f32.mrf.mxu0  ;;  %v773_v61 = vadd.f32 %v772_v11, %v359_v7  ;;  %v677_v23 = vpop.f32.mrf.mxu1  ;;  %v5349_v11 = vld [vmem:[%s5716_s6 + $0x1ec] sm:$0xf0] }
 0x132   : > { %v629_v49 = vadd.f32 %v628_v44, %v364_v46  ;;  %v678_v39 = vadd.f32 %v677_v23, %v364_v46  ;;  %v374_v18 = vpop.permute.xlu2 %373  ;;  %v4868_v23 = vld [vmem:[%s5716_s6 + $0xe0] sm:$0xf] }
 0x133   : > { %v6287_v34 = vmul.f32 %v3547_v24, %v724_v40  ;;  %v6290_v1 = vmul.f32 %v3548_v2, %v773_v61  ;;  %1463 = vmatmul.bf16.gmra.mxu0 %v6282_v60  ;;  %v4870_v2 = vld [vmem:[%s5716_s6 + $0xf0] sm:$0xf0]  ;;  %v4996_v40 = vld [vmem:[%s5716_s6 + $0x1e0] sm:$0xf]  ;;  %v6319_v61 = vor.u32 %v5198_v41, %v4396_v5  ;;  %v5311_v5 = vld [vmem:[%s5716_s6 + $0xc4] sm:$0xf] }
 0x134   : > { %v6292_v26 = vmul.f32 %v3573_v53, %v629_v49  ;;  %v6295_v7 = vmul.f32 %v3574_v33, %v678_v39  ;;  %1512 = vmatmul.bf16.gmra.mxu1 %v6284_v37  ;;  %v4873_v56 = vor.u32 %v5315_v29, %v4870_v2  ;;  %v4997_v49 = vor.u32 %v5349_v11, %v4996_v40  ;;  %v5317_v39 = vld [vmem:[%s5716_s6 + $0xec] sm:$0xf0] }
 0x135   : > { %7478 = vst [vmem:[#allocation20_spill] sm:$0xff] %v6287_v34  ;;  %1561 = vmatmul.bf16.gmra.mxu2 %v6282_v60  ;;  %1610 = vmatmul.bf16.gmra.mxu3 %v6284_v37  ;;  %v4869_v29 = vor.u32 %v5317_v39, %v4868_v23  ;;  %v3595_v40 = vperm.slane %v6243_v28, 2  ;;  %v3596_v39 = vperm.slane %v6249_v19, 2 }
 0x136   : > { %7479 = vst [vmem:[#allocation21_spill] sm:$0xff] %v6290_v1  ;;  %2860 = vmatpush.bf16.msrb.mxu3 %v4873_v56  ;;  %2762 = vmatpush.bf16.msrb.mxu1 %v4997_v49  ;;  %v5108_v56 = vld [vmem:[%s5716_s6 + $0x2c0] sm:$0xf] }
 0x137   : > { %2713 = vmatpush.bf16.msrb.mxu0 %v4869_v29 }
 0x138   : > { %v726_v21 = vpop.f32.mrf.mxu2  ;;  %v775_v58 = vpop.f32.mrf.mxu3 }
 0x139   : > { %v727_v24 = vadd.f32 %v726_v21, %v364_v46  ;;  %v630_v30 = vpop.f32.mrf.mxu0  ;;  %v776_v4 = vadd.f32 %v775_v58, %v364_v46  ;;  %v679_v36 = vpop.f32.mrf.mxu1  ;;  %v5197_v46 = vld [vmem:[#allocation3 + $0x16c] sm:$0xf] }
 0x13a   : > { %v631_v42 = vadd.f32 %v630_v30, %v369_v13  ;;  %v680_v14 = vadd.f32 %v679_v36, %v369_v13  ;;  %v6326_v9 = vor.u32 %v5197_v46, %v4398_v3  ;;  %v3593_v30 = vperm.slane %v6206_v51, 2 }
 0x13b   : > { %v6309_v52 = vmul.f32 %v3575_v38, %v727_v24  ;;  %v6311_v57 = vmul.f32 %v3576_v16, %v776_v4  ;;  %v3594_v4 = vperm.slane %v6214_v32, 2 }
 0x13c   : > { %v6313_v62 = vmul.f32 %v3573_v53, %v631_v42  ;;  %v6315_v0 = vmul.f32 %v3574_v33, %v680_v14  ;;  %v942_v53 = vld [vmem:[%s7429_s1 + $0xe8] sm:$0xff]  ;;  %v5377_v14 = vld [vmem:[%s5716_s6 + $0x2cc] sm:$0xf0] }
 0x13d   : > { %1012 = vperm.xlu2 %5450, %v942_v53   ;;  %v5109_v46 = vor.u32 %v5377_v14, %v5108_v56  ;;  %v4852_v14 = vld [vmem:[%s5716_s6 + $0xc0] sm:$0xf] }
 0x13f   : > { %2812 = vmatpush.bf16.msrb.mxu2 %v5109_v46 }
 0x140   : > { %v728_v44 = vpop.f32.mrf.mxu2  ;;  %v777_v33 = vpop.f32.mrf.mxu3 }
 0x141   : > { %v729_v21 = vadd.f32 %v728_v44, %v369_v13  ;;  %v633_v54 = vpop.f32.mrf.mxu0  ;;  %v778_v24 = vadd.f32 %v777_v33, %v369_v13  ;;  %v682_v22 = vpop.f32.mrf.mxu1 }
 0x142   : > { %v634_v58 = vadd.f32 %v633_v54, %v374_v18  ;;  %v683_v17 = vadd.f32 %v682_v22, %v374_v18  ;;  %v4980_v22 = vld [vmem:[%s5716_s6 + $0x1c0] sm:$0xf] }
 0x143   : > { %v6329_v2 = vmul.f32 %v3575_v38, %v729_v21  ;;  %v6332_v42 = vmul.f32 %v3576_v16, %v778_v24  ;;  %1468 = vmatmul.bf16.gmra.mxu0 %v6319_v61  ;;  %v379_v38 = vpop.permute.xlu0 %378  ;;  %v4854_v16 = vld [vmem:[%s5716_s6 + $0xd0] sm:$0xf0] }
 0x144   : > { %v6334_v36 = vmul.f32 %v3593_v30, %v634_v58  ;;  %v6337_v13 = vmul.f32 %v3594_v4, %v683_v17  ;;  %1517 = vmatmul.bf16.gmra.mxu1 %v6326_v9  ;;  %v4857_v49 = vor.u32 %v5311_v5, %v4854_v16  ;;  %v5345_v17 = vld [vmem:[%s5716_s6 + $0x1cc] sm:$0xf0]  ;;  %v6360_v5 = vpop.permute.xlu1 %947 }
 0x145   : > { %1566 = vmatmul.bf16.gmra.mxu2 %v6319_v61  ;;  %1615 = vmatmul.bf16.gmra.mxu3 %v6326_v9  ;;  %v4981_v56 = vor.u32 %v5345_v17, %v4980_v22  ;;  %v5092_v22 = vld [vmem:[%s5716_s6 + $0x2a0] sm:$0xf]  ;;  %v5373_v17 = vld [vmem:[%s5716_s6 + $0x2ac] sm:$0xf0] }
 0x146   : > { %7480 = vst [vmem:[#allocation22_spill] sm:$0xff] %v6337_v13  ;;  %2861 = vmatpush.bf16.msrb.mxu3 %v4857_v49 }
 0x147   : > { %2763 = vmatpush.bf16.msrb.mxu1 %v4981_v56  ;;  %v5307_v56 = vld [vmem:[%s5716_s6 + $0xa4] sm:$0xf] }
 0x148   : > { %v731_v41 = vpop.f32.mrf.mxu2  ;;  %v780_v11 = vpop.f32.mrf.mxu3 }
 0x149   : > { %v732_v3 = vadd.f32 %v731_v41, %v374_v18  ;;  %v635_v44 = vpop.f32.mrf.mxu0  ;;  %v781_v23 = vadd.f32 %v780_v11, %v374_v18  ;;  %v684_v21 = vpop.f32.mrf.mxu1  ;;  %v5313_v18 = vld [vmem:[%s5716_s6 + $0xcc] sm:$0xf0] }
 0x14a   : > { %v636_v53 = vadd.f32 %v635_v44, %v379_v38  ;;  %v685_v54 = vadd.f32 %v684_v21, %v379_v38  ;;  %v4853_v41 = vor.u32 %v5313_v18, %v4852_v14  ;;  %v3621_v21 = vperm.slane %v6206_v51, 3 }
 0x14b   : > { %v6348_v33 = vmul.f32 %v3595_v40, %v732_v3  ;;  %v6350_v29 = vmul.f32 %v3596_v39, %v781_v23 }
 0x14c   : > { %v6352_v24 = vmul.f32 %v3593_v30, %v636_v53  ;;  %v6354_v58 = vmul.f32 %v3594_v4, %v685_v54  ;;  %2714 = vmatpush.bf16.msrb.mxu0 %v4853_v41  ;;  %v6372_v54 = vpop.permute.xlu2 %952 }
 0x14d   : > { %7481 = vst [vmem:[#allocation23_spill] sm:$0xff] %v6348_v33 }
 0x14e   : > { %7482 = vst [vmem:[#allocation24_spill] sm:$0xff] %v6350_v29 }
 0x14f   : > { %7483 = vst [vmem:[#allocation25_spill] sm:$0xff] %v6354_v58 }
 0x150   : > { %v733_v16 = vpop.f32.mrf.mxu2  ;;  %v782_v3 = vpop.f32.mrf.mxu3 }
 0x151   : > { %v734_v46 = vadd.f32 %v733_v16, %v379_v38  ;;  %v1434_v11 = vpop.f32.mrf.mxu0  ;;  %v783_v44 = vadd.f32 %v782_v3, %v379_v38  ;;  %v1483_v4 = vpop.f32.mrf.mxu1  ;;  %v5093_v16 = vor.u32 %v5373_v17, %v5092_v22  ;;  %v5341_v22 = vld [vmem:[%s5716_s6 + $0x1ac] sm:$0xf0] }
 0x152   : > { %v1435_v30 = vadd.f32 %v1434_v11, %v6360_v5  ;;  %v3622_v11 = vperm.slane %v6214_v32, 3 }
 0x153   : > { %v6363_v49 = vmul.f32 %v3595_v40, %v734_v46  ;;  %v6365_v23 = vmul.f32 %v3596_v39, %v783_v44  ;;  %1629 = vmatmul.bf16.vlgmr.msra.gmra.mxu0 %v5920_v8  ;;  %2813 = vmatpush.bf16.msrb.mxu2 %v5093_v16 }
 0x154   : > { %v1484_v53 = vadd.f32 %v1483_v4, %v1435_v30  ;;  %1678 = vmatmul.bf16.vlgmr.msra.gmra.mxu1 %v5922_v10  ;;  %v6425_v1 = vpop.permute.xlu2 %967 }
 0x155   : > { %7484 = vst [vmem:[#allocation26_spill] sm:$0xff] %v6363_v49  ;;  %1727 = vmatmul.bf16.vlgmr.msra.gmra.mxu2 %v5920_v8  ;;  %1776 = vmatmul.bf16.vlgmr.msra.gmra.mxu3 %v5922_v10  ;;  %v4838_v8 = vld [vmem:[%s5716_s6 + $0xb0] sm:$0xf0] }
 0x156   : > { %7485 = vst [vmem:[#allocation27_spill] sm:$0xff] %v6365_v23  ;;  %v3625_v38 = vmul.f32 %v3621_v21, %v1484_v53  ;;  %v4841_v3 = vor.u32 %v5307_v56, %v4838_v8  ;;  %v5305_v23 = vld [vmem:[%s5716_s6 + $0x8c] sm:$0xf0] }
 0x158   : > { %v6375_v40 = vadd.f32 %v3625_v38, %v6292_v26  ;;  %v1532_v39 = vpop.f32.mrf.mxu2  ;;  %v1581_v18 = vpop.f32.mrf.mxu3  ;;  %2862 = vmatpush.bf16.msrb.mxu3 %v4841_v3 }
 0x159   : > { %v1533_v14 = vadd.f32 %v1532_v39, %v6360_v5  ;;  %v1436_v41 = vpop.f32.mrf.mxu0  ;;  %v1485_v10 = vpop.f32.mrf.mxu1  ;;  %v4964_v39 = vld [vmem:[%s5716_s6 + $0x1a0] sm:$0xf] }
 0x15a   : > { %v1437_v46 = vadd.f32 %v1436_v41, %v6372_v54  ;;  %v6387_v38 = vpop.permute.xlu0 %957  ;;  %v4965_v41 = vor.u32 %v5341_v22, %v4964_v39  ;;  %v6408_v39 = vpop.permute.xlu1 %962  ;;  %v5076_v22 = vld [vmem:[%s5716_s6 + $0x280] sm:$0xf] }
 0x15b   : > { %v1582_v26 = vadd.f32 %v1581_v18, %v1533_v14  ;;  %v4836_v14 = vld [vmem:[%s5716_s6 + $0xa0] sm:$0xf]  ;;  %v5309_v18 = vld [vmem:[%s5716_s6 + $0xac] sm:$0xf0] }
 0x15c   : > { %v1486_v44 = vadd.f32 %v1485_v10, %v1437_v46  ;;  %v4837_v10 = vor.u32 %v5309_v18, %v4836_v14  ;;  %2764 = vmatpush.bf16.msrb.mxu1 %v4965_v41  ;;  %v5303_v41 = vld [vmem:[%s5716_s6 + $0x84] sm:$0xf]  ;;  %v4822_v18 = vld [vmem:[%s5716_s6 + $0x90] sm:$0xf0] }
 0x15d   : > { %v3626_v30 = vmul.f32 %v3622_v11, %v1582_v26  ;;  %v3649_v26 = vperm.slane %v6206_v51, 4 }
 0x15e   : > { %v3629_v4 = vmul.f32 %v3621_v21, %v1486_v44  ;;  %2715 = vmatpush.bf16.msrb.mxu0 %v4837_v10 }
 0x15f   : > { %v6385_v53 = vadd.f32 %v3626_v30, %v6295_v7 }
 0x160   : > { %v6392_v17 = vadd.f32 %v3629_v4, %v6313_v62  ;;  %v1534_v56 = vpop.f32.mrf.mxu2  ;;  %v1583_v8 = vpop.f32.mrf.mxu3 }
 0x161   : > { %v1535_v16 = vadd.f32 %v1534_v56, %v6372_v54  ;;  %v1439_v46 = vpop.f32.mrf.mxu0  ;;  %v1488_v21 = vpop.f32.mrf.mxu1  ;;  %v5369_v56 = vld [vmem:[%s5716_s6 + $0x28c] sm:$0xf0] }
 0x162   : > { %v1440_v7 = vadd.f32 %v1439_v46, %v6387_v38  ;;  %v6451_v59 = vpop.permute.xlu1 %977 }
 0x163   : > { %v1584_v3 = vadd.f32 %v1583_v8, %v1535_v16  ;;  %1634 = vmatmul.bf16.gmra.mxu0 %v5954_v43 }
 0x164   : > { %v1489_v62 = vadd.f32 %v1488_v21, %v1440_v7  ;;  %1683 = vmatmul.bf16.gmra.mxu1 %v5958_v47  ;;  %v3650_v7 = vperm.slane %v6214_v32, 4 }
 0x165   : > { %v3630_v44 = vmul.f32 %v3622_v11, %v1584_v3  ;;  %1732 = vmatmul.bf16.gmra.mxu2 %v5954_v43  ;;  %1781 = vmatmul.bf16.gmra.mxu3 %v5958_v47  ;;  %v5077_v11 = vor.u32 %v5369_v56, %v5076_v22  ;;  %v4825_v47 = vor.u32 %v5303_v41, %v4822_v18 }
 0x166   : > { %v6402_v30 = vmul.f32 %v3649_v26, %v1489_v62  ;;  %v4948_v62 = vld [vmem:[%s5716_s6 + $0x180] sm:$0xf] }
 0x167   : > { %v6406_v4 = vadd.f32 %v3630_v44, %v6315_v0  ;;  %2814 = vmatpush.bf16.msrb.mxu2 %v5077_v11  ;;  %2863 = vmatpush.bf16.msrb.mxu3 %v4825_v47  ;;  %v5337_v44 = vld [vmem:[%s5716_s6 + $0x18c] sm:$0xf0] }
 0x168   : > { %v1537_v14 = vpop.f32.mrf.mxu2  ;;  %v1586_v43 = vpop.f32.mrf.mxu3  ;;  %v4949_v56 = vor.u32 %v5337_v44, %v4948_v62 }
 0x169   : > { %v1538_v16 = vadd.f32 %v1537_v14, %v6387_v38  ;;  %v1441_v8 = vpop.f32.mrf.mxu0  ;;  %v1490_v46 = vpop.f32.mrf.mxu1  ;;  %v4820_v14 = vld [vmem:[%s5716_s6 + $0x80] sm:$0xf] }
 0x16a   : > { %v1442_v0 = vadd.f32 %v1441_v8, %v6408_v39  ;;  %v4821_v41 = vor.u32 %v5305_v23, %v4820_v14  ;;  %2765 = vmatpush.bf16.msrb.mxu1 %v4949_v56  ;;  %v6436_v44 = vpop.permute.xlu0 %972 }
 0x16b   : > { %v1587_v10 = vadd.f32 %v1586_v43, %v1538_v16 }
 0x16c   : > { %v1491_v21 = vadd.f32 %v1490_v46, %v1442_v0  ;;  %2716 = vmatpush.bf16.msrb.mxu0 %v4821_v41  ;;  %v3677_v46 = vperm.slane %v6206_v51, 5  ;;  %v5060_v41 = vld [vmem:[%s5716_s6 + $0x260] sm:$0xf] }
 0x16d   : > { %v6417_v3 = vmul.f32 %v3650_v7, %v1587_v10  ;;  %v7488_v10 = vld [vmem:[#allocation12_spill] sm:$0xff] }
 0x16e   : > { %v6421_v22 = vmul.f32 %v3649_v26, %v1491_v21  ;;  %v7490_v21 = vld [vmem:[#allocation13_spill] sm:$0xff] }
 0x16f   : > { %7486 = vst [vmem:[#allocation28_spill] sm:$0xff] %v6417_v3  ;;  %v4998_v3 = vld [vmem:[%s5716_s6 + $0x1f0] sm:$0xf0] }
 0x170   : > { %7487 = vst [vmem:[#allocation29_spill] sm:$0xff] %v6421_v22  ;;  %v1539_v18 = vpop.f32.mrf.mxu2  ;;  %v1588_v16 = vpop.f32.mrf.mxu3 }
 0x171   : > { %v1540_v11 = vadd.f32 %v1539_v18, %v6408_v39  ;;  %v1444_v43 = vpop.f32.mrf.mxu0  ;;  %v1493_v26 = vpop.f32.mrf.mxu1  ;;  %v5365_v18 = vld [vmem:[%s5716_s6 + $0x26c] sm:$0xf0] }
 0x172   : > { %v1445_v8 = vadd.f32 %v1444_v43, %v6425_v1  ;;  %v6489_v58 = vpop.permute.xlu0 %987 }
 0x173   : > { %v1589_v47 = vadd.f32 %v1588_v16, %v1540_v11  ;;  %1639 = vmatmul.bf16.gmra.mxu0 %v7488_v10  ;;  %v5299_v11 = vld [vmem:[%s5716_s6 + $0x64] sm:$0xf] }
 0x174   : > { %v1494_v0 = vadd.f32 %v1493_v26, %v1445_v8  ;;  %1688 = vmatmul.bf16.gmra.mxu1 %v7490_v21  ;;  %v5061_v8 = vor.u32 %v5365_v18, %v5060_v41  ;;  %v4806_v26 = vld [vmem:[%s5716_s6 + $0x70] sm:$0xf0]  ;;  %v4932_v41 = vld [vmem:[%s5716_s6 + $0x160] sm:$0xf]  ;;  %v5333_v18 = vld [vmem:[%s5716_s6 + $0x16c] sm:$0xf0] }
 0x175   : > { %v6431_v23 = vmul.f32 %v3650_v7, %v1589_v47  ;;  %1737 = vmatmul.bf16.gmra.mxu2 %v7488_v10  ;;  %1786 = vmatmul.bf16.gmra.mxu3 %v7490_v21  ;;  %v4809_v10 = vor.u32 %v5299_v11, %v4806_v26  ;;  %v3678_v21 = vperm.slane %v6214_v32, 5  ;;  %v4933_v26 = vor.u32 %v5333_v18, %v4932_v41  ;;  %v7492_v41 = vld [vmem:[#allocation15_spill] sm:$0xff] }
 0x176   : > { %v3681_v62 = vmul.f32 %v3677_v46, %v1494_v0  ;;  %2815 = vmatpush.bf16.msrb.mxu2 %v5061_v8 }
 0x177   : > { %7489 = vst [vmem:[#allocation12_spill] sm:$0xff] %v6431_v23  ;;  %2864 = vmatpush.bf16.msrb.mxu3 %v4809_v10  ;;  %2766 = vmatpush.bf16.msrb.mxu1 %v4933_v26  ;;  %v6472_v26 = vpop.permute.xlu2 %982  ;;  %v5297_v23 = vld [vmem:[%s5716_s6 + $0x4c] sm:$0xf0] }
 0x178   : > { %v6439_v56 = vadd.f32 %v3681_v62, %v6375_v40  ;;  %v1542_v14 = vpop.f32.mrf.mxu2  ;;  %v1591_v7 = vpop.f32.mrf.mxu3 }
 0x179   : > { %v1543_v16 = vadd.f32 %v1542_v14, %v6425_v1  ;;  %v1446_v43 = vpop.f32.mrf.mxu0  ;;  %v1495_v0 = vpop.f32.mrf.mxu1 }
 0x17a   : > { %v1447_v47 = vadd.f32 %v1446_v43, %v6436_v44 }
 0x17b   : > { %v1592_v40 = vadd.f32 %v1591_v7, %v1543_v16  ;;  %v4804_v16 = vld [vmem:[%s5716_s6 + $0x60] sm:$0xf]  ;;  %v5301_v7 = vld [vmem:[%s5716_s6 + $0x6c] sm:$0xf0] }
 0x17c   : > { %v1496_v62 = vadd.f32 %v1495_v0, %v1447_v47  ;;  %v4805_v10 = vor.u32 %v5301_v7, %v4804_v16  ;;  %v5044_v16 = vld [vmem:[%s5716_s6 + $0x240] sm:$0xf]  ;;  %v5361_v7 = vld [vmem:[%s5716_s6 + $0x24c] sm:$0xf0] }
 0x17d   : > { %v3682_v29 = vmul.f32 %v3678_v21, %v1592_v40  ;;  %v3705_v40 = vperm.slane %v6206_v51, 6 }
 0x17e   : > { %v3685_v14 = vmul.f32 %v3677_v46, %v1496_v62  ;;  %2717 = vmatpush.bf16.msrb.mxu0 %v4805_v10  ;;  %v7491_v62 = vld [vmem:[#allocation14_spill] sm:$0xff] }
 0x17f   : > { %v6449_v49 = vadd.f32 %v3682_v29, %v6385_v53 }
 0x180   : > { %v6456_v43 = vadd.f32 %v3685_v14, %v6392_v17  ;;  %v1544_v11 = vpop.f32.mrf.mxu2  ;;  %v1593_v47 = vpop.f32.mrf.mxu3 }
 0x181   : > { %v1545_v8 = vadd.f32 %v1544_v11, %v6436_v44  ;;  %v1449_v0 = vpop.f32.mrf.mxu0  ;;  %v1498_v53 = vpop.f32.mrf.mxu1 }
 0x182   : > { %v1450_v29 = vadd.f32 %v1449_v0, %v6451_v59  ;;  %v4790_v0 = vld [vmem:[%s5716_s6 + $0x50] sm:$0xf0] }
 0x183   : > { %v1594_v46 = vadd.f32 %v1593_v47, %v1545_v8  ;;  %1644 = vmatmul.bf16.gmra.mxu0 %v7491_v62  ;;  %v5295_v8 = vld [vmem:[%s5716_s6 + $0x44] sm:$0xf] }
 0x184   : > { %v1499_v17 = vadd.f32 %v1498_v53, %v1450_v29  ;;  %1693 = vmatmul.bf16.gmra.mxu1 %v7492_v41 }
 0x185   : > { %v3686_v14 = vmul.f32 %v3678_v21, %v1594_v46  ;;  %1742 = vmatmul.bf16.gmra.mxu2 %v7491_v62  ;;  %1791 = vmatmul.bf16.gmra.mxu3 %v7492_v41  ;;  %v5045_v21 = vor.u32 %v5361_v7, %v5044_v16  ;;  %v4793_v46 = vor.u32 %v5295_v8, %v4790_v0  ;;  %v4916_v16 = vld [vmem:[%s5716_s6 + $0x140] sm:$0xf]  ;;  %v5329_v7 = vld [vmem:[%s5716_s6 + $0x14c] sm:$0xf0] }
 0x186   : > { %v6466_v18 = vmul.f32 %v3705_v40, %v1499_v17  ;;  %v4789_v8 = vor.u32 %v5297_v23, %v4788_v31 }
 0x187   : > { %v6470_v11 = vadd.f32 %v3686_v14, %v6406_v4  ;;  %2816 = vmatpush.bf16.msrb.mxu2 %v5045_v21  ;;  %v3706_v14 = vperm.slane %v6214_v32, 6  ;;  %2865 = vmatpush.bf16.msrb.mxu3 %v4793_v46 }
 0x188   : > { %v1547_v47 = vpop.f32.mrf.mxu2  ;;  %v1596_v29 = vpop.f32.mrf.mxu3  ;;  %2718 = vmatpush.bf16.msrb.mxu0 %v4789_v8  ;;  %v4774_v8 = vld [vmem:[%s5716_s6 + $0x30] sm:$0xf0] }
 0x189   : > { %v1548_v10 = vadd.f32 %v1547_v47, %v6451_v59  ;;  %v1451_v53 = vpop.f32.mrf.mxu0  ;;  %v1500_v17 = vpop.f32.mrf.mxu1  ;;  %v4917_v47 = vor.u32 %v5329_v7, %v4916_v16 }
 0x18a   : > { %v1452_v4 = vadd.f32 %v1451_v53, %v6472_v26  ;;  %v6502_v16 = vpop.permute.xlu1 %992 }
 0x18b   : > { %v1597_v62 = vadd.f32 %v1596_v29, %v1548_v10  ;;  %2767 = vmatpush.bf16.msrb.mxu1 %v4917_v47  ;;  %v5291_v47 = vld [vmem:[%s5716_s6 + $0x24] sm:$0xf] }
 0x18c   : > { %v1501_v41 = vadd.f32 %v1500_v17, %v1452_v4  ;;  %v3733_v17 = vperm.slane %v6206_v51, 7 }
 0x18d   : > { %v6481_v34 = vmul.f32 %v3706_v14, %v1597_v62  ;;  %v5028_v62 = vld [vmem:[%s5716_s6 + $0x220] sm:$0xf] }
 0x18e   : > { %v6485_v33 = vmul.f32 %v3705_v40, %v1501_v41  ;;  %v5357_v41 = vld [vmem:[%s5716_s6 + $0x22c] sm:$0xf0] }
 0x18f   : > { %7493 = vst [vmem:[#allocation13_spill] sm:$0xff] %v6481_v34  ;;  %v5029_v7 = vor.u32 %v5357_v41, %v5028_v62  ;;  %v5347_v34 = vld [vmem:[%s5716_s6 + $0x1e4] sm:$0xf] }
 0x190   : > { %7494 = vst [vmem:[#allocation14_spill] sm:$0xff] %v6485_v33  ;;  %v1549_v0 = vpop.f32.mrf.mxu2  ;;  %v1598_v10 = vpop.f32.mrf.mxu3 }
 0x191   : > { %v1550_v21 = vadd.f32 %v1549_v0, %v6472_v26  ;;  %v1454_v29 = vpop.f32.mrf.mxu0  ;;  %v1503_v40 = vpop.f32.mrf.mxu1  ;;  %v4777_v0 = vor.u32 %v5291_v47, %v4774_v8  ;;  %2817 = vmatpush.bf16.msrb.mxu2 %v5029_v7  ;;  %v4772_v47 = vld [vmem:[%s5716_s6 + $0x20] sm:$0xf]  ;;  %v5293_v8 = vld [vmem:[%s5716_s6 + $0x2c] sm:$0xf0] }
 0x192   : > { %v1455_v53 = vadd.f32 %v1454_v29, %v6489_v58  ;;  %v4773_v7 = vor.u32 %v5293_v8, %v4772_v47  ;;  %v4758_v8 = vld [vmem:[%s5716_s6 + $0x10] sm:$0xf0] }
 0x193   : > { %v1599_v46 = vadd.f32 %v1598_v10, %v1550_v21  ;;  %1649 = vmatmul.bf16.gmra.mxu0 %v6140_v15  ;;  %2866 = vmatpush.bf16.msrb.mxu3 %v4777_v0 }
 0x194   : > { %v1504_v4 = vadd.f32 %v1503_v40, %v1455_v53  ;;  %1698 = vmatmul.bf16.gmra.mxu1 %v6147_v6  ;;  %v3734_v40 = vperm.slane %v6214_v32, 7  ;;  %2719 = vmatpush.bf16.msrb.mxu0 %v4773_v7 }
 0x195   : > { %v6495_v31 = vmul.f32 %v3706_v14, %v1599_v46  ;;  %1747 = vmatmul.bf16.gmra.mxu2 %v6140_v15  ;;  %1796 = vmatmul.bf16.gmra.mxu3 %v6147_v6 }
 0x196   : > { %v3737_v23 = vmul.f32 %v3733_v17, %v1504_v4 }
 0x197   : > { %7495 = vst [vmem:[#allocation15_spill] sm:$0xff] %v6495_v31  ;;  %v6519_v31 = vpop.permute.xlu2 %997 }
 0x198   : > { %v6507_v51 = vadd.f32 %v3737_v23, %v6439_v56  ;;  %v1552_v14 = vpop.f32.mrf.mxu2  ;;  %v1601_v21 = vpop.f32.mrf.mxu3  ;;  %v4900_v56 = vld [vmem:[%s5716_s6 + $0x120] sm:$0xf]  ;;  %v5325_v23 = vld [vmem:[%s5716_s6 + $0x12c] sm:$0xf0] }
 0x199   : > { %v1553_v15 = vadd.f32 %v1552_v14, %v6489_v58  ;;  %v1456_v6 = vpop.f32.mrf.mxu0  ;;  %v1505_v29 = vpop.f32.mrf.mxu1  ;;  %v4901_v41 = vor.u32 %v5325_v23, %v4900_v56  ;;  %v5353_v56 = vld [vmem:[%s5716_s6 + $0x20c] sm:$0xf0]  ;;  %v6539_v23 = vmax.f32 %v6226_v20, 0.0 }
 0x19a   : > { %v1457_v10 = vadd.f32 %v1456_v6, %v6502_v16  ;;  %v6522_v6 = vmax.f32 %v6219_v55, 0.0 }
 0x19b   : > { %v1602_v53 = vadd.f32 %v1601_v21, %v1553_v15  ;;  %2768 = vmatpush.bf16.msrb.mxu1 %v4901_v41  ;;  %7496 = vst [vmem:[#allocation30_spill] sm:$0xff] %v6539_v23  ;;  %v6544_v41 = vpop.permute.xlu0 %1002 }
 0x19c   : > { %v1506_v46 = vadd.f32 %v1505_v29, %v1457_v10 }
 0x19d   : > { %v3738_v4 = vmul.f32 %v3734_v40, %v1602_v53  ;;  %v3761_v53 = vperm.slane %v6522_v6, 0 }
 0x19e   : > { %v3741_v62 = vmul.f32 %v3733_v17, %v1506_v46 }
 0x19f   : > { %v6517_v14 = vadd.f32 %v3738_v4, %v6449_v49  ;;  %v5012_v4 = vld [vmem:[%s5716_s6 + $0x200] sm:$0xf] }
 0x1a0   : > { %v6525_v0 = vadd.f32 %v3741_v62, %v6456_v43  ;;  %v1554_v32 = vpop.f32.mrf.mxu2  ;;  %v1603_v15 = vpop.f32.mrf.mxu3  ;;  %v5013_v47 = vor.u32 %v5353_v56, %v5012_v4  ;;  %v4756_v56 = vld [vmem:[%s5716_s6] sm:$0xf] }
 0x1a1   : > { %v1555_v17 = vadd.f32 %v1554_v32, %v6502_v16  ;;  %v1459_v21 = vpop.f32.mrf.mxu0  ;;  %v1508_v10 = vpop.f32.mrf.mxu1 }
 0x1a2   : > { %v1460_v49 = vadd.f32 %v1459_v21, %v6519_v31  ;;  %2818 = vmatpush.bf16.msrb.mxu2 %v5013_v47  ;;  %v3762_v21 = vperm.slane %v6539_v23, 0 }
 0x1a3   : > { %v1604_v29 = vadd.f32 %v1603_v15, %v1555_v17  ;;  %1654 = vmatmul.bf16.gmra.mxu0 %v6221_v35 }
 0x1a4   : > { %v1509_v55 = vadd.f32 %v1508_v10, %v1460_v49  ;;  %1703 = vmatmul.bf16.gmra.mxu1 %v6229_v50 }
 0x1a5   : > { %v3742_v43 = vmul.f32 %v3734_v40, %v1604_v29  ;;  %1752 = vmatmul.bf16.gmra.mxu2 %v6221_v35  ;;  %1801 = vmatmul.bf16.gmra.mxu3 %v6229_v50  ;;  %v5287_v40 = vld [vmem:[%s5716_s6 + $0x4] sm:$0xf]  ;;  %v4884_v29 = vld [vmem:[%s5716_s6 + $0x100] sm:$0xf] }
 0x1a6   : > { %v6533_v46 = vmul.f32 %v3761_v53, %v1509_v55  ;;  %v4761_v7 = vor.u32 %v5287_v40, %v4758_v8  ;;  %v5321_v55 = vld [vmem:[%s5716_s6 + $0x10c] sm:$0xf0]  ;;  %v6559_v8 = vpop.permute.xlu1 %1007 }
 0x1a7   : > { %v6542_v62 = vadd.f32 %v3742_v43, %v6470_v11  ;;  %v4885_v4 = vor.u32 %v5321_v55, %v4884_v29  ;;  %v5289_v40 = vld [vmem:[%s5716_s6 + $0xc] sm:$0xf0]  ;;  %v6570_v55 = vpop.permute.xlu2 %1012 }
 0x1a8   : > { %v1557_v35 = vpop.f32.mrf.mxu2  ;;  %v1606_v32 = vpop.f32.mrf.mxu3  ;;  %2867 = vmatpush.bf16.msrb.mxu3 %v4761_v7  ;;  %v4757_v47 = vor.u32 %v5289_v40, %v4756_v56 }
 0x1a9   : > { %v1558_v50 = vadd.f32 %v1557_v35, %v6519_v31  ;;  %v1461_v17 = vpop.f32.mrf.mxu0  ;;  %v1510_v11 = vpop.f32.mrf.mxu1  ;;  %2769 = vmatpush.bf16.msrb.mxu1 %v4885_v4 }
 0x1aa   : > { %v1462_v20 = vadd.f32 %v1461_v17, %v6544_v41  ;;  %2720 = vmatpush.bf16.msrb.mxu0 %v4757_v47 }
 0x1ab   : > { %v1607_v15 = vadd.f32 %v1606_v32, %v1558_v50 }
 0x1ac   : > { %v1511_v49 = vadd.f32 %v1510_v11, %v1462_v20 }
 0x1ad   : > { %v6551_v10 = vmul.f32 %v3762_v21, %v1607_v15 }
 0x1ae   : > { %v6555_v43 = vmul.f32 %v3761_v53, %v1511_v49  ;;  %v3789_v53 = vperm.slane %v6522_v6, 1 }
 0x1af   : > { %7497 = vst [vmem:[#allocation31_spill] sm:$0xff] %v6551_v10  ;;  %v5126_v10 = vld [vmem:[%s5716_s6 + $0x2f0] sm:$0xf0] }
 0x1b0   : > { %7498 = vst [vmem:[#allocation32_spill] sm:$0xff] %v6555_v43  ;;  %v1559_v35 = vpop.f32.mrf.mxu2  ;;  %v1608_v50 = vpop.f32.mrf.mxu3  ;;  %v4950_v43 = vld [vmem:[%s5716_s6 + $0x190] sm:$0xf0] }
 0x1b1   : > { %v1560_v7 = vadd.f32 %v1559_v35, %v6544_v41  ;;  %v1464_v32 = vpop.f32.mrf.mxu0  ;;  %v1513_v20 = vpop.f32.mrf.mxu1 }
 0x1b2   : > { %v1465_v17 = vadd.f32 %v1464_v32, %v6559_v8  ;;  %v5004_v32 = vld [vmem:[%s5716_s6 + $0x1e8] sm:$0xf] }
 0x1b3   : > { %v1609_v11 = vadd.f32 %v1608_v50, %v1560_v7  ;;  %1659 = vmatmul.bf16.gmra.mxu0 %v6282_v60  ;;  %v5318_v50 = vld [vmem:[%s5716_s6 + $0xf4] sm:$0xf0] }
 0x1b4   : > { %v1514_v15 = vadd.f32 %v1513_v20, %v1465_v17  ;;  %1708 = vmatmul.bf16.gmra.mxu1 %v6284_v37 }
 0x1b5   : > { %v6565_v49 = vmul.f32 %v3762_v21, %v1609_v11  ;;  %1757 = vmatmul.bf16.gmra.mxu2 %v6282_v60  ;;  %1806 = vmatmul.bf16.gmra.mxu3 %v6284_v37  ;;  %v4876_v60 = vld [vmem:[%s5716_s6 + $0xe8] sm:$0xf]  ;;  %v3790_v37 = vperm.slane %v6539_v23, 1 }
 0x1b6   : > { %v3793_v29 = vmul.f32 %v3789_v53, %v1514_v15  ;;  %v4877_v20 = vor.u32 %v5318_v50, %v4876_v60 }
 0x1b7   : > { %7499 = vst [vmem:[#allocation33_spill] sm:$0xff] %v6565_v49  ;;  %v5379_v49 = vld [vmem:[%s5716_s6 + $0x2e4] sm:$0xf] }
 0x1b8   : > { %v1562_v4 = vpop.f32.mrf.mxu2  ;;  %v6573_v56 = vadd.f32 %v3793_v29, %v6507_v51  ;;  %v1611_v47 = vpop.f32.mrf.mxu3  ;;  %v5350_v51 = vld [vmem:[%s5716_s6 + $0x1f4] sm:$0xf0]  ;;  %3007 = vmatpush.bf16.msra.mxu2 %v4877_v20 }
 0x1b9   : > { %v1563_v40 = vadd.f32 %v1562_v4, %v6559_v8  ;;  %v1466_v35 = vpop.f32.mrf.mxu0  ;;  %v1515_v7 = vpop.f32.mrf.mxu1  ;;  %v5005_v15 = vor.u32 %v5350_v51, %v5004_v32 }
 0x1ba   : > { %v1467_v21 = vadd.f32 %v1466_v35, %v6570_v55  ;;  %v6582_v35 = vpop.permute.xlu0 %1017 }
 0x1bb   : > { %v1612_v17 = vadd.f32 %v1611_v47, %v1563_v40  ;;  %3056 = vmatpush.bf16.msra.mxu3 %v5005_v15  ;;  %v5129_v47 = vor.u32 %v5379_v49, %v5126_v10  ;;  %v3817_v10 = vperm.slane %v6522_v6, 2  ;;  %v2009_v49 = vld [vmem:[%s7429_s1 + $0x100] sm:$0xff] }
 0x1bc   : > { %v1516_v11 = vadd.f32 %v1515_v7, %v1467_v21  ;;  %2027 = vperm.xlu1 %5449, %v2009_v49   ;;  %v4668_v49 = vld [vmem:[#allocation3 + $0x188] sm:$0xf] }
 0x1bd   : > { %v3794_v29 = vmul.f32 %v3790_v37, %v1612_v17  ;;  %2958 = vmatpush.bf16.msra.mxu1 %v5129_v47 }
 0x1be   : > { %v3797_v4 = vmul.f32 %v3789_v53, %v1516_v11  ;;  %v5001_v53 = vor.u32 %v5347_v34, %v4998_v3  ;;  %v6603_v3 = vpop.permute.xlu1 %1022 }
 0x1bf   : > { %v6587_v63 = vadd.f32 %v3794_v29, %v6517_v14  ;;  %v4860_v29 = vld [vmem:[%s5716_s6 + $0xc8] sm:$0xf] }
 0x1c0   : > { %v1564_v40 = vpop.f32.mrf.mxu2  ;;  %v6592_v60 = vadd.f32 %v3797_v4, %v6525_v0  ;;  %v1613_v7 = vpop.f32.mrf.mxu3  ;;  %2909 = vmatpush.bf16.msra.mxu0 %v5001_v53  ;;  %v5314_v4 = vld [vmem:[%s5716_s6 + $0xd4] sm:$0xf0]  ;;  %v4660_v53 = vld [vmem:[#allocation3 + $0x180] sm:$0xf] }
 0x1c1   : > { %7500 = vst [vmem:[#allocation34_spill] sm:$0xff] %v6587_v63  ;;  %v1565_v21 = vadd.f32 %v1564_v40, %v6570_v55  ;;  %v1469_v50 = vpop.f32.mrf.mxu0  ;;  %v1518_v17 = vpop.f32.mrf.mxu1  ;;  %v4861_v47 = vor.u32 %v5314_v4, %v4860_v29  ;;  %v5375_v29 = vld [vmem:[%s5716_s6 + $0x2c4] sm:$0xf]  ;;  %v5110_v4 = vld [vmem:[%s5716_s6 + $0x2d0] sm:$0xf0] }
 0x1c2   : > { %v1470_v32 = vadd.f32 %v1469_v50, %v6582_v35  ;;  %v5113_v13 = vor.u32 %v5375_v29, %v5110_v4 }
 0x1c3   : > { %v1614_v20 = vadd.f32 %v1613_v7, %v1565_v21  ;;  %1664 = vmatmul.bf16.gmra.mxu0 %v6319_v61  ;;  %v4988_v21 = vld [vmem:[%s5716_s6 + $0x1c8] sm:$0xf]  ;;  %v5346_v7 = vld [vmem:[%s5716_s6 + $0x1d4] sm:$0xf0]  ;;  %3008 = vmatpush.bf16.msra.mxu2 %v4861_v47 }
 0x1c4   : > { %v1519_v14 = vadd.f32 %v1518_v17, %v1470_v32  ;;  %1713 = vmatmul.bf16.gmra.mxu1 %v6326_v9  ;;  %v5264_v32 = vld [vmem:[#allocation3 + $0x188] sm:$0xf0]  ;;  %v4989_v17 = vor.u32 %v5346_v7, %v4988_v21  ;;  %v5343_v21 = vld [vmem:[%s5716_s6 + $0x1c4] sm:$0xf] }
 0x1c5   : > { %v3798_v0 = vmul.f32 %v3790_v37, %v1614_v20  ;;  %1762 = vmatmul.bf16.gmra.mxu2 %v6319_v61  ;;  %1811 = vmatmul.bf16.gmra.mxu3 %v6326_v9  ;;  %v6629_v12 = vor.u32 %v5264_v32, %v4660_v53  ;;  %v2011_v53 = vld [vmem:[%s7429_s1 + $0x110] sm:$0xff] }
 0x1c6   : > { %v6600_v34 = vmul.f32 %v3817_v10, %v1519_v14  ;;  %v5263_v14 = vld [vmem:[#allocation3 + $0x184] sm:$0xf]  ;;  %3057 = vmatpush.bf16.msra.mxu3 %v4989_v17  ;;  %2959 = vmatpush.bf16.msra.mxu1 %v5113_v13 }
 0x1c7   : > { %v6609_v51 = vadd.f32 %v3798_v0, %v6542_v62  ;;  %v3818_v62 = vperm.slane %v6539_v23, 2  ;;  %v4662_v0 = vld [vmem:[#allocation3 + $0x18c] sm:$0xf0] }
 0x1c8   : > { %7501 = vst [vmem:[#allocation35_spill] sm:$0xff] %v6600_v34  ;;  %v1567_v37 = vpop.f32.mrf.mxu2  ;;  %v1616_v61 = vpop.f32.mrf.mxu3 }
 0x1c9   : > { %7502 = vst [vmem:[#allocation36_spill] sm:$0xff] %v6609_v51  ;;  %v1568_v11 = vadd.f32 %v1567_v37, %v6582_v35  ;;  %v1471_v15 = vpop.f32.mrf.mxu0  ;;  %v1520_v9 = vpop.f32.mrf.mxu1  ;;  %v5265_v37 = vld [vmem:[#allocation3 + $0x190] sm:$0xf0] }
 0x1ca   : > { %v1472_v40 = vadd.f32 %v1471_v15, %v6603_v3  ;;  %v6634_v51 = vor.u32 %v5265_v37, %v4668_v49 }
 0x1cb   : > { %v1617_v50 = vadd.f32 %v1616_v61, %v1568_v11  ;;  %v2020_v11 = vld [vmem:[%s7429_s1 + $0x158] sm:$0xff] }
 0x1cc   : > { %v1521_v20 = vadd.f32 %v1520_v9, %v1472_v40  ;;  %2082 = vperm.xlu0 %5448, %v2020_v11   ;;  %v4982_v40 = vld [vmem:[%s5716_s6 + $0x1d0] sm:$0xf0]  ;;  %v3623_v11 = vperm.slane %v6243_v28, 3 }
 0x1cd   : > { %v6618_v15 = vmul.f32 %v3818_v62, %v1617_v50  ;;  %v4985_v9 = vor.u32 %v5343_v21, %v4982_v40 }
 0x1ce   : > { %v6625_v61 = vmul.f32 %v3817_v10, %v1521_v20 }
 0x1cf   : > { %7503 = vst [vmem:[#allocation37_spill] sm:$0xff] %v6618_v15  ;;  %v6632_v15 = vor.u32 %v5263_v14, %v4662_v0  ;;  %2910 = vmatpush.bf16.msra.mxu0 %v4985_v9  ;;  %v4844_v9 = vld [vmem:[%s5716_s6 + $0xa8] sm:$0xf] }
 0x1d0   : > { %7504 = vst [vmem:[#allocation38_spill] sm:$0xff] %v6625_v61  ;;  %v1569_v7 = vpop.f32.mrf.mxu2  ;;  %v1618_v50 = vpop.f32.mrf.mxu3  ;;  %v5335_v61 = vld [vmem:[%s5716_s6 + $0x184] sm:$0xf] }
 0x1d1   : > { %v1570_v47 = vadd.f32 %v1569_v7, %v6603_v3  ;;  %v1630_v17 = vpop.f32.mrf.mxu0  ;;  %v1679_v20 = vpop.f32.mrf.mxu1  ;;  %v5310_v7 = vld [vmem:[%s5716_s6 + $0xb4] sm:$0xf0]  ;;  %v4953_v33 = vor.u32 %v5335_v61, %v4950_v43  ;;  %v3679_v43 = vperm.slane %v6243_v28, 5 }
 0x1d2   : > { %v1631_v10 = vadd.f32 %v1630_v17, %v6360_v5  ;;  %v3624_v17 = vperm.slane %v6249_v19, 3 }
 0x1d3   : > { %v1619_v29 = vadd.f32 %v1618_v50, %v1570_v47  ;;  %2721 = vmatmul.bf16.vlgmr.msrb.gmra.mxu0 %v6629_v12  ;;  %v4972_v47 = vld [vmem:[%s5716_s6 + $0x1a8] sm:$0xf] }
 0x1d4   : > { %v1680_v4 = vadd.f32 %v1679_v20, %v1631_v10  ;;  %2770 = vmatmul.bf16.vlgmr.msrb.gmra.mxu1 %v6632_v15  ;;  %2037 = vperm.xlu0 %5448, %v2011_v53   ;;  %v4845_v10 = vor.u32 %v5310_v7, %v4844_v9  ;;  %v5342_v20 = vld [vmem:[%s5716_s6 + $0x1b4] sm:$0xf0]  ;;  %v5267_v53 = vld [vmem:[#allocation3 + $0x1a0] sm:$0xf0]  ;;  %v4680_v9 = vld [vmem:[#allocation3 + $0x1a0] sm:$0xf] }
 0x1d5   : > { %v6639_v13 = vmul.f32 %v3818_v62, %v1619_v29  ;;  %2819 = vmatmul.bf16.vlgmr.msrb.gmra.mxu2 %v6634_v51  ;;  %2868 = vmatmul.bf16.vlgmr.msrb.gmra.mxu3 %v6629_v12  ;;  %v5268_v7 = vld [vmem:[#allocation3 + $0x1a8] sm:$0xf0] }
 0x1d6   : > { %v3627_v32 = vmul.f32 %v3623_v11, %v1680_v4  ;;  %v4672_v4 = vld [vmem:[#allocation3 + $0x198] sm:$0xf]  ;;  %3009 = vmatpush.bf16.msra.mxu2 %v4845_v10 }
 0x1d7   : > { %7505 = vst [vmem:[#allocation39_spill] sm:$0xff] %v6639_v13 }
 0x1d8   : > { %v6648_v14 = vadd.f32 %v3627_v32, %v6309_v52  ;;  %v1728_v0 = vpop.f32.mrf.mxu2  ;;  %v1777_v49 = vpop.f32.mrf.mxu3  ;;  %v2019_v52 = vld [vmem:[%s7429_s1 + $0x150] sm:$0xff]  ;;  %v4973_v32 = vor.u32 %v5342_v20, %v4972_v47  ;;  %v6671_v20 = vor.u32 %v5267_v53, %v4672_v4 }
 0x1d9   : > { %v1729_v62 = vadd.f32 %v1728_v0, %v6360_v5  ;;  %v1632_v37 = vpop.f32.mrf.mxu0  ;;  %v1681_v40 = vpop.f32.mrf.mxu1  ;;  %v2012_v5 = vld [vmem:[%s7429_s1 + $0x118] sm:$0xff]  ;;  %2077 = vperm.xlu2 %5450, %v2019_v52   ;;  %v5339_v52 = vld [vmem:[%s5716_s6 + $0x1a4] sm:$0xf] }
 0x1da   : > { %v1633_v21 = vadd.f32 %v1632_v37, %v6372_v54  ;;  %2042 = vperm.xlu1 %5449, %v2012_v5   ;;  %3058 = vmatpush.bf16.msra.mxu3 %v4973_v32  ;;  %v4966_v5 = vld [vmem:[%s5716_s6 + $0x1b0] sm:$0xf0]  ;;  %v6678_v32 = vor.u32 %v5268_v7, %v4680_v9 }
 0x1db   : > { %v1778_v50 = vadd.f32 %v1777_v49, %v1729_v62  ;;  %v5266_v62 = vld [vmem:[#allocation3 + $0x19c] sm:$0xf]  ;;  %v4674_v49 = vld [vmem:[#allocation3 + $0x1a4] sm:$0xf0] }
 0x1dc   : > { %v1682_v29 = vadd.f32 %v1681_v40, %v1633_v21  ;;  %v5371_v21 = vld [vmem:[%s5716_s6 + $0x2a4] sm:$0xf]  ;;  %v5094_v40 = vld [vmem:[%s5716_s6 + $0x2b0] sm:$0xf0]  ;;  %v6676_v23 = vor.u32 %v5266_v62, %v4674_v49  ;;  %v3651_v62 = vperm.slane %v6243_v28, 4 }
 0x1dd   : > { %v3628_v0 = vmul.f32 %v3624_v17, %v1778_v50  ;;  %v5097_v50 = vor.u32 %v5371_v21, %v5094_v40 }
 0x1de   : > { %v3631_v37 = vmul.f32 %v3623_v11, %v1682_v29 }
 0x1df   : > { %v6664_v13 = vadd.f32 %v3628_v0, %v6311_v57  ;;  %v4969_v57 = vor.u32 %v5339_v52, %v4966_v5  ;;  %2960 = vmatpush.bf16.msra.mxu1 %v5097_v50  ;;  %v4828_v50 = vld [vmem:[%s5716_s6 + $0x88] sm:$0xf]  ;;  %v5306_v52 = vld [vmem:[%s5716_s6 + $0x94] sm:$0xf0] }
 0x1e0   : > { %v6669_v63 = vadd.f32 %v3631_v37, %v6329_v2  ;;  %v1730_v47 = vpop.f32.mrf.mxu2  ;;  %v1779_v11 = vpop.f32.mrf.mxu3  ;;  %v2010_v2 = vld [vmem:[%s7429_s1 + $0x108] sm:$0xff] }
 0x1e1   : > { %v1731_v10 = vadd.f32 %v1730_v47, %v6372_v54  ;;  %v1635_v29 = vpop.f32.mrf.mxu0  ;;  %v1684_v4 = vpop.f32.mrf.mxu1  ;;  %2911 = vmatpush.bf16.msra.mxu0 %v4969_v57  ;;  %2032 = vperm.xlu2 %5450, %v2010_v2   ;;  %v2014_v57 = vld [vmem:[%s7429_s1 + $0x128] sm:$0xff]  ;;  %v3652_v2 = vperm.slane %v6249_v19, 4 }
 0x1e2   : > { %v1636_v0 = vadd.f32 %v1635_v29, %v6387_v38  ;;  %v5338_v29 = vld [vmem:[%s5716_s6 + $0x194] sm:$0xf0]  ;;  %2052 = vperm.xlu0 %5448, %v2014_v57  }
 0x1e3   : > { %v1780_v53 = vadd.f32 %v1779_v11, %v1731_v10  ;;  %2726 = vmatmul.bf16.gmra.mxu0 %v6671_v20  ;;  %v4829_v11 = vor.u32 %v5306_v52, %v4828_v50  ;;  %v5367_v52 = vld [vmem:[%s5716_s6 + $0x284] sm:$0xf] }
 0x1e4   : > { %v1685_v54 = vadd.f32 %v1684_v4, %v1636_v0  ;;  %2775 = vmatmul.bf16.gmra.mxu1 %v6676_v23  ;;  %v5270_v0 = vld [vmem:[#allocation3 + $0x1b8] sm:$0xf0] }
 0x1e5   : > { %v3632_v49 = vmul.f32 %v3624_v17, %v1780_v53  ;;  %2824 = vmatmul.bf16.gmra.mxu2 %v6678_v32  ;;  %2873 = vmatmul.bf16.gmra.mxu3 %v6671_v20  ;;  %v4956_v17 = vld [vmem:[%s5716_s6 + $0x188] sm:$0xf] }
 0x1e6   : > { %v6688_v37 = vmul.f32 %v3651_v62, %v1685_v54  ;;  %v4957_v4 = vor.u32 %v5338_v29, %v4956_v17  ;;  %v5269_v54 = vld [vmem:[#allocation3 + $0x1b4] sm:$0xf]  ;;  %3010 = vmatpush.bf16.msra.mxu2 %v4829_v11  ;;  %2912 = vmatpush.bf16.msra.mxu0 %v4953_v33 }
 0x1e7   : > { %v6692_v9 = vadd.f32 %v3632_v49, %v6332_v42  ;;  %v4686_v49 = vld [vmem:[#allocation3 + $0x1bc] sm:$0xf0]  ;;  %v2015_v33 = vld [vmem:[%s7429_s1 + $0x130] sm:$0xff] }
 0x1e8   : > { %7506 = vst [vmem:[#allocation40_spill] sm:$0xff] %v6688_v37  ;;  %v1733_v7 = vpop.f32.mrf.mxu2  ;;  %v1782_v40 = vpop.f32.mrf.mxu3  ;;  %3059 = vmatpush.bf16.msra.mxu3 %v4957_v4  ;;  %v5078_v37 = vld [vmem:[%s5716_s6 + $0x290] sm:$0xf0]  ;;  %v6715_v11 = vor.u32 %v5269_v54, %v4686_v49  ;;  %2057 = vperm.xlu1 %5449, %v2015_v33   ;;  %v4698_v33 = vld [vmem:[#allocation3 + $0x1d4] sm:$0xf0] }
 0x1e9   : > { %v1734_v21 = vadd.f32 %v1733_v7, %v6387_v38  ;;  %v1637_v47 = vpop.f32.mrf.mxu0  ;;  %v1686_v10 = vpop.f32.mrf.mxu1  ;;  %v4684_v38 = vld [vmem:[#allocation3 + $0x1b0] sm:$0xf]  ;;  %v4692_v7 = vld [vmem:[#allocation3 + $0x1b8] sm:$0xf] }
 0x1ea   : > { %v1638_v5 = vadd.f32 %v1637_v47, %v6408_v39  ;;  %v5271_v47 = vld [vmem:[#allocation3 + $0x1c0] sm:$0xf0]  ;;  %v6712_v17 = vor.u32 %v5270_v0, %v4684_v38  ;;  %7510 = vst [vmem:[#allocation44_spill] sm:$0xff] %v6715_v11 }
 0x1eb   : > { %v1783_v42 = vadd.f32 %v1782_v40, %v1734_v21  ;;  %v5081_v40 = vor.u32 %v5367_v52, %v5078_v37  ;;  %v6717_v57 = vor.u32 %v5271_v47, %v4692_v7  ;;  %v4812_v7 = vld [vmem:[%s5716_s6 + $0x68] sm:$0xf]  ;;  %v5302_v47 = vld [vmem:[%s5716_s6 + $0x74] sm:$0xf0] }
 0x1ec   : > { %v1687_v53 = vadd.f32 %v1686_v10, %v1638_v5  ;;  %7509 = vst [vmem:[#allocation43_spill] sm:$0xff] %v6712_v17  ;;  %v4940_v52 = vld [vmem:[%s5716_s6 + $0x168] sm:$0xf] }
 0x1ed   : > { %v6704_v50 = vmul.f32 %v3652_v2, %v1783_v42  ;;  %2961 = vmatpush.bf16.msra.mxu1 %v5081_v40  ;;  %7511 = vst [vmem:[#allocation45_spill] sm:$0xff] %v6717_v57 }
 0x1ee   : > { %v6708_v21 = vmul.f32 %v3651_v62, %v1687_v53 }
 0x1ef   : > { %7507 = vst [vmem:[#allocation41_spill] sm:$0xff] %v6704_v50 }
 0x1f0   : > { %7508 = vst [vmem:[#allocation42_spill] sm:$0xff] %v6708_v21  ;;  %v1735_v22 = vpop.f32.mrf.mxu2  ;;  %v1784_v10 = vpop.f32.mrf.mxu3  ;;  %v5327_v21 = vld [vmem:[%s5716_s6 + $0x144] sm:$0xf] }
 0x1f1   : > { %v1736_v5 = vadd.f32 %v1735_v22, %v6408_v39  ;;  %v1640_v29 = vpop.f32.mrf.mxu0  ;;  %v1689_v42 = vpop.f32.mrf.mxu1 }
 0x1f2   : > { %v1641_v62 = vadd.f32 %v1640_v29, %v6425_v1  ;;  %v5334_v29 = vld [vmem:[%s5716_s6 + $0x174] sm:$0xf0] }
 0x1f3   : > { %v1785_v37 = vadd.f32 %v1784_v10, %v1736_v5  ;;  %2731 = vmatmul.bf16.gmra.mxu0 %v6712_v17  ;;  %v3680_v5 = vperm.slane %v6249_v19, 5  ;;  %v4813_v10 = vor.u32 %v5302_v47, %v4812_v7  ;;  %v5062_v7 = vld [vmem:[%s5716_s6 + $0x270] sm:$0xf0] }
 0x1f4   : > { %v1690_v4 = vadd.f32 %v1689_v42, %v1641_v62  ;;  %2780 = vmatmul.bf16.gmra.mxu1 %v6715_v11  ;;  %v4696_v62 = vld [vmem:[#allocation3 + $0x1c8] sm:$0xf]  ;;  %v5273_v42 = vld [vmem:[#allocation3 + $0x1d0] sm:$0xf0] }
 0x1f5   : > { %v6722_v61 = vmul.f32 %v3652_v2, %v1785_v37  ;;  %2829 = vmatmul.bf16.gmra.mxu2 %v6717_v57  ;;  %2878 = vmatmul.bf16.gmra.mxu3 %v6712_v17  ;;  %v4941_v37 = vor.u32 %v5334_v29, %v4940_v52  ;;  %v6751_v52 = vor.u32 %v5273_v42, %v4696_v62  ;;  %v3707_v42 = vperm.slane %v6243_v28, 6 }
 0x1f6   : > { %v3683_v39 = vmul.f32 %v3679_v43, %v1690_v4  ;;  %v5272_v4 = vld [vmem:[#allocation3 + $0x1cc] sm:$0xf]  ;;  %3011 = vmatpush.bf16.msra.mxu2 %v4813_v10  ;;  %v4934_v10 = vld [vmem:[%s5716_s6 + $0x170] sm:$0xf0] }
 0x1f7   : > { %7512 = vst [vmem:[#allocation46_spill] sm:$0xff] %v6722_v61  ;;  %3060 = vmatpush.bf16.msra.mxu3 %v4941_v37  ;;  %v6756_v37 = vor.u32 %v5272_v4, %v4698_v33 }
 0x1f8   : > { %v6731_v22 = vadd.f32 %v3683_v39, %v6648_v14  ;;  %v1738_v38 = vpop.f32.mrf.mxu2  ;;  %v1787_v0 = vpop.f32.mrf.mxu3  ;;  %7513 = vst [vmem:[#allocation47_spill] sm:$0xff] %v6751_v52 }
 0x1f9   : > { %v1739_v2 = vadd.f32 %v1738_v38, %v6425_v1  ;;  %v1642_v53 = vpop.f32.mrf.mxu0  ;;  %v1691_v49 = vpop.f32.mrf.mxu1  ;;  %v4704_v38 = vld [vmem:[#allocation3 + $0x1d0] sm:$0xf]  ;;  %7514 = vst [vmem:[#allocation48_spill] sm:$0xff] %v6756_v37 }
 0x1fa   : > { %v1643_v54 = vadd.f32 %v1642_v53, %v6436_v44  ;;  %v5274_v53 = vld [vmem:[#allocation3 + $0x1d8] sm:$0xf0] }
 0x1fb   : > { %v1788_v40 = vadd.f32 %v1787_v0, %v1739_v2  ;;  %v5363_v0 = vld [vmem:[%s5716_s6 + $0x264] sm:$0xf] }
 0x1fc   : > { %v1692_v14 = vadd.f32 %v1691_v49, %v1643_v54  ;;  %v2013_v54 = vld [vmem:[%s7429_s1 + $0x120] sm:$0xff] }
 0x1fd   : > { %v3684_v1 = vmul.f32 %v3680_v5, %v1788_v40  ;;  %v5065_v40 = vor.u32 %v5363_v0, %v5062_v7  ;;  %2047 = vperm.xlu2 %5450, %v2013_v54   ;;  %v4796_v0 = vld [vmem:[%s5716_s6 + $0x48] sm:$0xf]  ;;  %v5298_v7 = vld [vmem:[%s5716_s6 + $0x54] sm:$0xf0] }
 0x1fe   : > { %v3687_v39 = vmul.f32 %v3679_v43, %v1692_v14  ;;  %v5331_v43 = vld [vmem:[%s5716_s6 + $0x164] sm:$0xf] }
 0x1ff   : > { %v6741_v2 = vadd.f32 %v3684_v1, %v6664_v13  ;;  %v6758_v1 = vor.u32 %v5274_v53, %v4704_v38  ;;  %v4937_v61 = vor.u32 %v5331_v43, %v4934_v10  ;;  %2962 = vmatpush.bf16.msra.mxu1 %v5065_v40  ;;  %v4797_v40 = vor.u32 %v5298_v7, %v4796_v0  ;;  %v4924_v43 = vld [vmem:[%s5716_s6 + $0x148] sm:$0xf]  ;;  %v5330_v10 = vld [vmem:[%s5716_s6 + $0x154] sm:$0xf0]  ;;  %v5359_v0 = vld [vmem:[%s5716_s6 + $0x244] sm:$0xf] }
 0x200   : > { %v6749_v49 = vadd.f32 %v3687_v39, %v6669_v63  ;;  %v1740_v47 = vpop.f32.mrf.mxu2  ;;  %v1789_v13 = vpop.f32.mrf.mxu3  ;;  %v5046_v7 = vld [vmem:[%s5716_s6 + $0x250] sm:$0xf0] }
 0x201   : > { %v1741_v29 = vadd.f32 %v1740_v47, %v6436_v44  ;;  %v1645_v14 = vpop.f32.mrf.mxu0  ;;  %7515 = vst [vmem:[#allocation49_spill] sm:$0xff] %v6758_v1  ;;  %v1694_v63 = vpop.f32.mrf.mxu1  ;;  %2913 = vmatpush.bf16.msra.mxu0 %v4937_v61  ;;  %3012 = vmatpush.bf16.msra.mxu2 %v4797_v40 }
 0x202   : > { %v1646_v50 = vadd.f32 %v1645_v14, %v6451_v59  ;;  %v5276_v14 = vld [vmem:[#allocation3 + $0x1e8] sm:$0xf0] }
 0x203   : > { %v1790_v39 = vadd.f32 %v1789_v13, %v1741_v29  ;;  %2736 = vmatmul.bf16.gmra.mxu0 %v6751_v52  ;;  %v3708_v13 = vperm.slane %v6249_v19, 6 }
 0x204   : > { %v1695_v62 = vadd.f32 %v1694_v63, %v1646_v50  ;;  %2785 = vmatmul.bf16.gmra.mxu1 %v6756_v37  ;;  %v2017_v50 = vld [vmem:[%s7429_s1 + $0x140] sm:$0xff]  ;;  %v4925_v63 = vor.u32 %v5330_v10, %v4924_v43  ;;  %v2016_v43 = vld [vmem:[%s7429_s1 + $0x138] sm:$0xff] }
 0x205   : > { %v3688_v44 = vmul.f32 %v3680_v5, %v1790_v39  ;;  %2834 = vmatmul.bf16.gmra.mxu2 %v6758_v1  ;;  %2883 = vmatmul.bf16.gmra.mxu3 %v6751_v52 }
 0x206   : > { %v6765_v4 = vmul.f32 %v3707_v42, %v1695_v62  ;;  %2067 = vperm.xlu0 %5448, %v2017_v50   ;;  %v5275_v62 = vld [vmem:[#allocation3 + $0x1e4] sm:$0xf]  ;;  %v4716_v50 = vld [vmem:[#allocation3 + $0x1e8] sm:$0xf]  ;;  %3061 = vmatpush.bf16.msra.mxu3 %v4925_v63 }
 0x207   : > { %v6769_v61 = vadd.f32 %v3688_v44, %v6692_v9  ;;  %v2018_v9 = vld [vmem:[%s7429_s1 + $0x148] sm:$0xff]  ;;  %v4710_v44 = vld [vmem:[#allocation3 + $0x1ec] sm:$0xf0]  ;;  %2062 = vperm.xlu2 %5450, %v2016_v43  }
 0x208   : > { %7516 = vst [vmem:[#allocation50_spill] sm:$0xff] %v6765_v4  ;;  %v1743_v33 = vpop.f32.mrf.mxu2  ;;  %v1792_v38 = vpop.f32.mrf.mxu3  ;;  %2072 = vperm.xlu1 %5449, %v2018_v9   ;;  %v4918_v4 = vld [vmem:[%s5716_s6 + $0x150] sm:$0xf0]  ;;  %v6798_v63 = vor.u32 %v5275_v62, %v4710_v44 }
 0x209   : > { %v1744_v5 = vadd.f32 %v1743_v33, %v6451_v59  ;;  %v1647_v53 = vpop.f32.mrf.mxu0  ;;  %v1696_v47 = vpop.f32.mrf.mxu1  ;;  %v4708_v59 = vld [vmem:[#allocation3 + $0x1e0] sm:$0xf]  ;;  %v5277_v33 = vld [vmem:[#allocation3 + $0x1f0] sm:$0xf0] }
 0x20a   : > { %v1648_v54 = vadd.f32 %v1647_v53, %v6472_v26  ;;  %v6795_v10 = vor.u32 %v5276_v14, %v4708_v59  ;;  %7520 = vst [vmem:[#allocation54_spill] sm:$0xff] %v6798_v63  ;;  %v3735_v59 = vperm.slane %v6243_v28, 7 }
 0x20b   : > { %v1793_v29 = vadd.f32 %v1792_v38, %v1744_v5  ;;  %v5049_v38 = vor.u32 %v5359_v0, %v5046_v7 }
 0x20c   : > { %v1697_v39 = vadd.f32 %v1696_v47, %v1648_v54  ;;  %v4921_v54 = vor.u32 %v5327_v21, %v4918_v4  ;;  %7519 = vst [vmem:[#allocation53_spill] sm:$0xff] %v6795_v10 }
 0x20d   : > { %v6784_v53 = vmul.f32 %v3708_v13, %v1793_v29  ;;  %2963 = vmatpush.bf16.msra.mxu1 %v5049_v38 }
 0x20e   : > { %v6788_v5 = vmul.f32 %v3707_v42, %v1697_v39  ;;  %v6800_v42 = vor.u32 %v5277_v33, %v4716_v50  ;;  %2914 = vmatpush.bf16.msra.mxu0 %v4921_v54  ;;  %v4780_v50 = vld [vmem:[%s5716_s6 + $0x28] sm:$0xf]  ;;  %v5294_v33 = vld [vmem:[%s5716_s6 + $0x34] sm:$0xf0] }
 0x20f   : > { %7517 = vst [vmem:[#allocation51_spill] sm:$0xff] %v6784_v53  ;;  %v4781_v43 = vor.u32 %v5294_v33, %v4780_v50  ;;  %v5326_v54 = vld [vmem:[%s5716_s6 + $0x134] sm:$0xf0]  ;;  %v5355_v33 = vld [vmem:[%s5716_s6 + $0x224] sm:$0xf] }
 0x210   : > { %7518 = vst [vmem:[#allocation52_spill] sm:$0xff] %v6788_v5  ;;  %v1745_v47 = vpop.f32.mrf.mxu2  ;;  %v1794_v9 = vpop.f32.mrf.mxu3 }
 0x211   : > { %v1746_v40 = vadd.f32 %v1745_v47, %v6472_v26  ;;  %v1650_v29 = vpop.f32.mrf.mxu0  ;;  %7521 = vst [vmem:[#allocation55_spill] sm:$0xff] %v6800_v42  ;;  %v1699_v0 = vpop.f32.mrf.mxu1  ;;  %3013 = vmatpush.bf16.msra.mxu2 %v4781_v43 }
 0x212   : > { %v1651_v39 = vadd.f32 %v1650_v29, %v6489_v58 }
 0x213   : > { %v1795_v21 = vadd.f32 %v1794_v9, %v1746_v40  ;;  %2741 = vmatmul.bf16.gmra.mxu0 %v6795_v10 }
 0x214   : > { %v1700_v4 = vadd.f32 %v1699_v0, %v1651_v39  ;;  %2790 = vmatmul.bf16.gmra.mxu1 %v6798_v63  ;;  %v4720_v39 = vld [vmem:[#allocation3 + $0x1f8] sm:$0xf]  ;;  %v5279_v0 = vld [vmem:[#allocation3 + $0x200] sm:$0xf0] }
 0x215   : > { %v6805_v26 = vmul.f32 %v3708_v13, %v1795_v21  ;;  %2839 = vmatmul.bf16.gmra.mxu2 %v6800_v42  ;;  %2888 = vmatmul.bf16.gmra.mxu3 %v6795_v10  ;;  %v4908_v13 = vld [vmem:[%s5716_s6 + $0x128] sm:$0xf]  ;;  %v5278_v21 = vld [vmem:[#allocation3 + $0x1fc] sm:$0xf] }
 0x216   : > { %v3739_v14 = vmul.f32 %v3735_v59, %v1700_v4  ;;  %v4909_v9 = vor.u32 %v5326_v54, %v4908_v13  ;;  %v4722_v4 = vld [vmem:[#allocation3 + $0x204] sm:$0xf0]  ;;  %v5323_v13 = vld [vmem:[%s5716_s6 + $0x124] sm:$0xf]  ;;  %v6828_v54 = vmax.f32 %v6256_v25, 0.0 }
 0x217   : > { %7522 = vst [vmem:[#allocation56_spill] sm:$0xff] %v6805_v26 }
 0x218   : > { %v6811_v62 = vadd.f32 %v3739_v14, %v6731_v22  ;;  %v1748_v44 = vpop.f32.mrf.mxu2  ;;  %v1797_v7 = vpop.f32.mrf.mxu3  ;;  %v3736_v22 = vperm.slane %v6249_v19, 7  ;;  %v4728_v14 = vld [vmem:[#allocation3 + $0x200] sm:$0xf]  ;;  %3062 = vmatpush.bf16.msra.mxu3 %v4909_v9  ;;  %7523 = vst [vmem:[#allocation57_spill] sm:$0xff] %v6828_v54 }
 0x219   : > { %v1749_v28 = vadd.f32 %v1748_v44, %v6489_v58  ;;  %v1652_v38 = vpop.f32.mrf.mxu0  ;;  %v1701_v40 = vpop.f32.mrf.mxu1  ;;  %v5280_v44 = vld [vmem:[#allocation3 + $0x208] sm:$0xf0] }
 0x21a   : > { %v1653_v47 = vadd.f32 %v1652_v38, %v6502_v16  ;;  %v5030_v38 = vld [vmem:[%s5716_s6 + $0x230] sm:$0xf0] }
 0x21b   : > { %v1798_v29 = vadd.f32 %v1797_v7, %v1749_v28  ;;  %v5033_v53 = vor.u32 %v5355_v33, %v5030_v38  ;;  %v4902_v28 = vld [vmem:[%s5716_s6 + $0x130] sm:$0xf0]  ;;  %v6838_v33 = vor.u32 %v5280_v44, %v4728_v14  ;;  %v4764_v14 = vld [vmem:[%s5716_s6 + $0x8] sm:$0xf]  ;;  %v5290_v44 = vld [vmem:[%s5716_s6 + $0x14] sm:$0xf0] }
 0x21c   : > { %v1702_v58 = vadd.f32 %v1701_v40, %v1653_v47  ;;  %v4905_v19 = vor.u32 %v5323_v13, %v4902_v28  ;;  %v6833_v40 = vor.u32 %v5279_v0, %v4720_v39  ;;  %v3763_v39 = vperm.slane %v6828_v54, 0  ;;  %v2022_v0 = vld [vmem:[%s7429_s1 + $0x168] sm:$0xff] }
 0x21d   : > { %v3740_v50 = vmul.f32 %v3736_v22, %v1798_v29  ;;  %2964 = vmatpush.bf16.msra.mxu1 %v5033_v53  ;;  %7526 = vst [vmem:[#allocation60_spill] sm:$0xff] %v6838_v33  ;;  %2092 = vperm.xlu0 %5448, %v2022_v0   ;;  %v4765_v28 = vor.u32 %v5290_v44, %v4764_v14  ;;  %v5283_v0 = vld [vmem:[#allocation3 + $0x220] sm:$0xf0]  ;;  %v5014_v44 = vld [vmem:[%s5716_s6 + $0x210] sm:$0xf0] }
 0x21e   : > { %v3743_v26 = vmul.f32 %v3735_v59, %v1702_v58  ;;  %7524 = vst [vmem:[#allocation58_spill] sm:$0xff] %v6833_v40  ;;  %v6836_v58 = vor.u32 %v5278_v21, %v4722_v4  ;;  %2915 = vmatpush.bf16.msra.mxu0 %v4905_v19  ;;  %v6852_v21 = vmax.f32 %v6262_v27, 0.0  ;;  %v4892_v19 = vld [vmem:[%s5716_s6 + $0x108] sm:$0xf]  ;;  %v5351_v14 = vld [vmem:[%s5716_s6 + $0x204] sm:$0xf] }
 0x21f   : > { %v6825_v7 = vadd.f32 %v3740_v50, %v6741_v2  ;;  %3014 = vmatpush.bf16.msra.mxu2 %v4765_v28 }
 0x220   : > { %v6831_v43 = vadd.f32 %v3743_v26, %v6749_v49  ;;  %v1750_v47 = vpop.f32.mrf.mxu2  ;;  %v1799_v59 = vpop.f32.mrf.mxu3  ;;  %7525 = vst [vmem:[#allocation59_spill] sm:$0xff] %v6836_v58 }
 0x221   : > { %v1751_v9 = vadd.f32 %v1750_v47, %v6502_v16  ;;  %v1655_v29 = vpop.f32.mrf.mxu0  ;;  %v1704_v25 = vpop.f32.mrf.mxu1  ;;  %7528 = vst [vmem:[#allocation62_spill] sm:$0xff] %v6852_v21  ;;  %v5322_v47 = vld [vmem:[%s5716_s6 + $0x114] sm:$0xf0] }
 0x222   : > { %v1656_v2 = vadd.f32 %v1655_v29, %v6519_v31 }
 0x223   : > { %v1800_v49 = vadd.f32 %v1799_v59, %v1751_v9  ;;  %2746 = vmatmul.bf16.gmra.mxu0 %v6833_v40  ;;  %v4893_v59 = vor.u32 %v5322_v47, %v4892_v19  ;;  %v4886_v19 = vld [vmem:[%s5716_s6 + $0x110] sm:$0xf0] }
 0x224   : > { %v1705_v26 = vadd.f32 %v1704_v25, %v1656_v2  ;;  %2795 = vmatmul.bf16.gmra.mxu1 %v6836_v58  ;;  %v4732_v2 = vld [vmem:[#allocation3 + $0x210] sm:$0xf]  ;;  %v5282_v25 = vld [vmem:[#allocation3 + $0x218] sm:$0xf0] }
 0x225   : > { %v3744_v53 = vmul.f32 %v3736_v22, %v1800_v49  ;;  %2844 = vmatmul.bf16.gmra.mxu2 %v6838_v33  ;;  %2893 = vmatmul.bf16.gmra.mxu3 %v6833_v40  ;;  %v5281_v49 = vld [vmem:[#allocation3 + $0x214] sm:$0xf] }
 0x226   : > { %v6845_v16 = vmul.f32 %v3763_v39, %v1705_v26  ;;  %v4734_v26 = vld [vmem:[#allocation3 + $0x21c] sm:$0xf0]  ;;  %3063 = vmatpush.bf16.msra.mxu3 %v4893_v59 }
 0x227   : > { %v6855_v4 = vadd.f32 %v3744_v53, %v6769_v61  ;;  %v3764_v61 = vperm.slane %v6852_v21, 0  ;;  %v4740_v53 = vld [vmem:[#allocation3 + $0x218] sm:$0xf]  ;;  %v6875_v34 = vor.u32 %v5281_v49, %v4734_v26  ;;  %v5348_v26 = vld [vmem:[%s5716_s6 + $0x1ec] sm:$0xf] }
 0x228   : > { %7527 = vst [vmem:[#allocation61_spill] sm:$0xff] %v6845_v16  ;;  %v1753_v22 = vpop.f32.mrf.mxu2  ;;  %v1802_v38 = vpop.f32.mrf.mxu3  ;;  %v6872_v16 = vor.u32 %v5282_v25, %v4732_v2  ;;  %v6877_v59 = vor.u32 %v5283_v0, %v4740_v53  ;;  %v3791_v25 = vperm.slane %v6828_v54, 1  ;;  %v5006_v53 = vld [vmem:[%s5716_s6 + $0x1f8] sm:$0xf0] }
 0x229   : > { %v1754_v50 = vadd.f32 %v1753_v22, %v6519_v31  ;;  %v1657_v13 = vpop.f32.mrf.mxu0  ;;  %v1706_v27 = vpop.f32.mrf.mxu1  ;;  %v5009_v0 = vor.u32 %v5348_v26, %v5006_v53  ;;  %v5132_v53 = vld [vmem:[%s5716_s6 + $0x2e8] sm:$0xf] }
 0x22a   : > { %v1658_v9 = vadd.f32 %v1657_v13, %v6544_v41 }
 0x22b   : > { %v1803_v29 = vadd.f32 %v1802_v38, %v1754_v50  ;;  %v5017_v50 = vor.u32 %v5351_v14, %v5014_v44  ;;  %v5319_v38 = vld [vmem:[%s5716_s6 + $0x104] sm:$0xf]  ;;  %v5380_v14 = vld [vmem:[%s5716_s6 + $0x2ec] sm:$0xf]  ;;  %3203 = vmatpush.bf16.msrb.mxu2 %v5009_v0  ;;  %v5382_v0 = vld [vmem:[%s5716_s6 + $0x2f4] sm:$0xf0] }
 0x22c   : > { %v1707_v31 = vadd.f32 %v1706_v27, %v1658_v9  ;;  %v4889_v47 = vor.u32 %v5319_v38, %v4886_v19 }
 0x22d   : > { %v6864_v22 = vmul.f32 %v3764_v61, %v1803_v29  ;;  %2965 = vmatpush.bf16.msra.mxu1 %v5017_v50 }
 0x22e   : > { %v6868_v13 = vmul.f32 %v3763_v39, %v1707_v31  ;;  %2916 = vmatpush.bf16.msra.mxu0 %v4889_v47 }
 0x22f   : > { %7529 = vst [vmem:[#allocation63_spill] sm:$0xff] %v6864_v22 }
 0x230   : > { %7530 = vst [vmem:[#allocation64_spill] sm:$0xff] %v6868_v13  ;;  %v1755_v5 = vpop.f32.mrf.mxu2  ;;  %v1804_v9 = vpop.f32.mrf.mxu3 }
 0x231   : > { %v1756_v28 = vadd.f32 %v1755_v5, %v6544_v41  ;;  %v1660_v27 = vpop.f32.mrf.mxu0  ;;  %v1709_v29 = vpop.f32.mrf.mxu1  ;;  %v2023_v5 = vld [vmem:[%s7429_s1 + $0x170] sm:$0xff] }
 0x232   : > { %v1661_v39 = vadd.f32 %v1660_v27, %v6559_v8  ;;  %2097 = vperm.xlu1 %5449, %v2023_v5   ;;  %v4878_v5 = vld [vmem:[%s5716_s6 + $0xf8] sm:$0xf0] }
 0x233   : > { %v1805_v31 = vadd.f32 %v1804_v9, %v1756_v28  ;;  %2751 = vmatmul.bf16.gmra.mxu0 %v6872_v16 }
 0x234   : > { %v1710_v2 = vadd.f32 %v1709_v29, %v1661_v39  ;;  %2800 = vmatmul.bf16.gmra.mxu1 %v6875_v34  ;;  %v3792_v29 = vperm.slane %v6852_v21, 1 }
 0x235   : > { %v6882_v41 = vmul.f32 %v3764_v61, %v1805_v31  ;;  %2849 = vmatmul.bf16.gmra.mxu2 %v6877_v59  ;;  %2898 = vmatmul.bf16.gmra.mxu3 %v6872_v16  ;;  %v5134_v61 = vld [vmem:[%s5716_s6 + $0x2f8] sm:$0xf0]  ;;  %v4744_v31 = vld [vmem:[#allocation3 + $0x228] sm:$0xf] }
 0x236   : > { %v3795_v49 = vmul.f32 %v3791_v25, %v1710_v2  ;;  %v5137_v50 = vor.u32 %v5380_v14, %v5134_v61  ;;  %v5316_v2 = vld [vmem:[%s5716_s6 + $0xec] sm:$0xf] }
 0x237   : > { %7531 = vst [vmem:[#allocation65_spill] sm:$0xff] %v6882_v41  ;;  %v4881_v26 = vor.u32 %v5316_v2, %v4878_v5  ;;  %v5284_v61 = vld [vmem:[#allocation3 + $0x22c] sm:$0xf] }
 0x238   : > { %v1758_v44 = vpop.f32.mrf.mxu2  ;;  %v6895_v38 = vadd.f32 %v3795_v49, %v6811_v62  ;;  %v1807_v47 = vpop.f32.mrf.mxu3  ;;  %3252 = vmatpush.bf16.msrb.mxu3 %v5137_v50  ;;  %v2021_v62 = vld [vmem:[%s7429_s1 + $0x160] sm:$0xff]  ;;  %v5285_v49 = vld [vmem:[#allocation3 + $0x230] sm:$0xf0]  ;;  %v5133_v50 = vor.u32 %v5382_v0, %v5132_v53  ;;  %v5376_v0 = vld [vmem:[%s5716_s6 + $0x2cc] sm:$0xf] }
 0x239   : > { %v1759_v19 = vadd.f32 %v1758_v44, %v6559_v8  ;;  %v1662_v28 = vpop.f32.mrf.mxu0  ;;  %v1711_v27 = vpop.f32.mrf.mxu1  ;;  %2087 = vperm.xlu2 %5450, %v2021_v62   ;;  %v4746_v44 = vld [vmem:[#allocation3 + $0x234] sm:$0xf0]  ;;  %3154 = vmatpush.bf16.msrb.mxu1 %v4881_v26  ;;  %v6910_v13 = vor.u32 %v5285_v49, %v4744_v31  ;;  %v5344_v49 = vld [vmem:[%s5716_s6 + $0x1cc] sm:$0xf]  ;;  %v4990_v26 = vld [vmem:[%s5716_s6 + $0x1d8] sm:$0xf0] }
 0x23a   : > { %7532 = vst [vmem:[#allocation66_spill] sm:$0xff] %v6895_v38  ;;  %v1663_v9 = vadd.f32 %v1662_v28, %v6570_v55  ;;  %v5286_v28 = vld [vmem:[#allocation3 + $0x238] sm:$0xf0]  ;;  %3105 = vmatpush.bf16.msrb.mxu0 %v5133_v50  ;;  %v4993_v53 = vor.u32 %v5344_v49, %v4990_v26  ;;  %v5300_v38 = vld [vmem:[%s5716_s6 + $0x6c] sm:$0xf] }
 0x23b   : > { %v1808_v39 = vadd.f32 %v1807_v47, %v1759_v19  ;;  %v4752_v47 = vld [vmem:[#allocation3 + $0x230] sm:$0xf] }
 0x23c   : > { %v1712_v8 = vadd.f32 %v1711_v27, %v1663_v9  ;;  %v6918_v5 = vor.u32 %v5286_v28, %v4752_v47  ;;  %3204 = vmatpush.bf16.msrb.mxu2 %v4993_v53 }
 0x23d   : > { %v3796_v14 = vmul.f32 %v3792_v29, %v1808_v39 }
 0x23e   : > { %v3799_v19 = vmul.f32 %v3791_v25, %v1712_v8  ;;  %v6916_v25 = vor.u32 %v5284_v61, %v4746_v44 }
 0x23f   : > { %v6908_v41 = vadd.f32 %v3796_v14, %v6825_v7  ;;  %v5118_v14 = vld [vmem:[%s5716_s6 + $0x2d8] sm:$0xf0] }
 0x240   : > { %v1760_v22 = vpop.f32.mrf.mxu2  ;;  %v6913_v9 = vadd.f32 %v3799_v19, %v6831_v43  ;;  %v1809_v39 = vpop.f32.mrf.mxu3  ;;  %v3819_v43 = vperm.slane %v6828_v54, 2  ;;  %v5121_v44 = vor.u32 %v5376_v0, %v5118_v14 }
 0x241   : > { %7533 = vst [vmem:[#allocation67_spill] sm:$0xff] %v6908_v41  ;;  %v1761_v27 = vadd.f32 %v1760_v22, %v6570_v55  ;;  %v1665_v2 = vpop.f32.mrf.mxu0  ;;  %v1714_v62 = vpop.f32.mrf.mxu1  ;;  %v5370_v41 = vld [vmem:[%s5716_s6 + $0x294] sm:$0xf0] }
 0x242   : > { %7534 = vst [vmem:[#allocation68_spill] sm:$0xff] %v6913_v9  ;;  %v1666_v7 = vadd.f32 %v1665_v2, %v6582_v35  ;;  %3253 = vmatpush.bf16.msrb.mxu3 %v5121_v44  ;;  %v3820_v2 = vperm.slane %v6852_v21, 2  ;;  %v6949_v0 = vpop.permute.xlu2 %2077  ;;  %v6951_v14 = vpop.permute.xlu1 %2027 }
 0x243   : > { %v1810_v31 = vadd.f32 %v1809_v39, %v1761_v27  ;;  %2756 = vmatmul.bf16.gmra.mxu0 %v6910_v13 }
 0x244   : > { %v1715_v8 = vadd.f32 %v1714_v62, %v1666_v7  ;;  %2805 = vmatmul.bf16.gmra.mxu1 %v6916_v25  ;;  %v5312_v7 = vld [vmem:[%s5716_s6 + $0xcc] sm:$0xf]  ;;  %v4862_v62 = vld [vmem:[%s5716_s6 + $0xd8] sm:$0xf0] }
 0x245   : > { %v3800_v55 = vmul.f32 %v3792_v29, %v1810_v31  ;;  %2854 = vmatmul.bf16.gmra.mxu2 %v6918_v5  ;;  %2903 = vmatmul.bf16.gmra.mxu3 %v6910_v13  ;;  %v4865_v31 = vor.u32 %v5312_v7, %v4862_v62  ;;  %v6960_v7 = vpop.permute.xlu0 %2082  ;;  %v4974_v62 = vld [vmem:[%s5716_s6 + $0x1b8] sm:$0xf0] }
 0x246   : > { %v6925_v22 = vmul.f32 %v3819_v43, %v1715_v8  ;;  %v5116_v8 = vld [vmem:[%s5716_s6 + $0x2c8] sm:$0xf] }
 0x247   : > { %v6933_v61 = vadd.f32 %v3800_v55, %v6855_v4  ;;  %v5378_v55 = vld [vmem:[%s5716_s6 + $0x2d4] sm:$0xf0]  ;;  %3155 = vmatpush.bf16.msrb.mxu1 %v4865_v31 }
 0x248   : > { %7535 = vst [vmem:[#allocation69_spill] sm:$0xff] %v6925_v22  ;;  %v1763_v29 = vpop.f32.mrf.mxu2  ;;  %v1812_v19 = vpop.f32.mrf.mxu3  ;;  %v5117_v26 = vor.u32 %v5378_v55, %v5116_v8  ;;  %v5102_v8 = vld [vmem:[%s5716_s6 + $0x2b8] sm:$0xf0] }
 0x249   : > { %7536 = vst [vmem:[#allocation70_spill] sm:$0xff] %v6933_v61  ;;  %v1764_v50 = vadd.f32 %v1763_v29, %v6582_v35  ;;  %v1667_v47 = vpop.f32.mrf.mxu0  ;;  %v1716_v27 = vpop.f32.mrf.mxu1  ;;  %v2024_v35 = vld [vmem:[%s7429_s1 + $0x178] sm:$0xff]  ;;  %v5084_v61 = vld [vmem:[%s5716_s6 + $0x288] sm:$0xf] }
 0x24a   : > { %v1668_v28 = vadd.f32 %v1667_v47, %v6603_v3  ;;  %2102 = vperm.xlu2 %5450, %v2024_v35   ;;  %3106 = vmatpush.bf16.msrb.mxu0 %v5117_v26  ;;  %v5085_v9 = vor.u32 %v5370_v41, %v5084_v61  ;;  %v5364_v61 = vld [vmem:[%s5716_s6 + $0x26c] sm:$0xf] }
 0x24b   : > { %v1813_v39 = vadd.f32 %v1812_v19, %v1764_v50 }
 0x24c   : > { %v1717_v4 = vadd.f32 %v1716_v27, %v1668_v28 }
 0x24d   : > { %v6945_v49 = vmul.f32 %v3820_v2, %v1813_v39 }
 0x24e   : > { %v6947_v53 = vmul.f32 %v3819_v43, %v1717_v4  ;;  %v5372_v4 = vld [vmem:[%s5716_s6 + $0x2ac] sm:$0xf] }
 0x24f   : > { %7537 = vst [vmem:[#allocation71_spill] sm:$0xff] %v6945_v49  ;;  %v5105_v35 = vor.u32 %v5372_v4, %v5102_v8  ;;  %v5374_v49 = vld [vmem:[%s5716_s6 + $0x2b4] sm:$0xf0]  ;;  %v6980_v8 = vpop.permute.xlu0 %2037 }
 0x250   : > { %7538 = vst [vmem:[#allocation72_spill] sm:$0xff] %v6947_v53  ;;  %v1765_v29 = vpop.f32.mrf.mxu2  ;;  %v1814_v50 = vpop.f32.mrf.mxu3 }
 0x251   : > { %v1766_v44 = vadd.f32 %v1765_v29, %v6603_v3  ;;  %v2722_v19 = vpop.f32.mrf.mxu0  ;;  %v2771_v47 = vpop.f32.mrf.mxu1  ;;  %v5340_v3 = vld [vmem:[%s5716_s6 + $0x1ac] sm:$0xf]  ;;  %v3845_v29 = vperm.slane %v6522_v6, 3  ;;  %3254 = vmatpush.bf16.msrb.mxu3 %v5105_v35 }
 0x252   : > { %v2723_v28 = vadd.f32 %v2722_v19, %v6951_v14  ;;  %v4977_v31 = vor.u32 %v5340_v3, %v4974_v62  ;;  %v4846_v3 = vld [vmem:[%s5716_s6 + $0xb8] sm:$0xf0] }
 0x253   : > { %v1815_v43 = vadd.f32 %v1814_v50, %v1766_v44  ;;  %2917 = vmatmul.bf16.vlgmr.msra.gmra.mxu0 %v6632_v15 }
 0x254   : > { %2966 = vmatmul.bf16.vlgmr.msra.gmra.mxu1 %v6634_v51  ;;  %v2772_v39 = vadd.f32 %v2771_v47, %v2723_v28  ;;  %3205 = vmatpush.bf16.msrb.mxu2 %v4977_v31 }
 0x255   : > { %v6956_v27 = vmul.f32 %v3820_v2, %v1815_v43  ;;  %3015 = vmatmul.bf16.vlgmr.msra.gmra.mxu2 %v6629_v12  ;;  %3064 = vmatmul.bf16.vlgmr.msra.gmra.mxu3 %v6632_v15  ;;  %v6967_v2 = vpop.permute.xlu2 %2032  ;;  %v5308_v43 = vld [vmem:[%s5716_s6 + $0xac] sm:$0xf] }
 0x256   : > { %v4849_v62 = vor.u32 %v5308_v43, %v4846_v3  ;;  %v5086_v3 = vld [vmem:[%s5716_s6 + $0x298] sm:$0xf0] }
 0x257   : > { %7539 = vst [vmem:[#allocation73_spill] sm:$0xff] %v6956_v27  ;;  %v5100_v27 = vld [vmem:[%s5716_s6 + $0x2a8] sm:$0xf] }
 0x258   : > { %v2820_v55 = vpop.f32.mrf.mxu2  ;;  %v6970_v44 = vpop.f32.mrf.mxu3  ;;  %v5101_v53 = vor.u32 %v5374_v49, %v5100_v27  ;;  %3156 = vmatpush.bf16.msrb.mxu1 %v4849_v62 }
 0x259   : > { %v2821_v26 = vadd.f32 %v2820_v55, %v2772_v39  ;;  %v2724_v50 = vpop.f32.mrf.mxu0  ;;  %v2773_v19 = vpop.f32.mrf.mxu1 }
 0x25a   : > { %v2725_v28 = vadd.f32 %v2724_v50, %v6967_v2  ;;  %3107 = vmatpush.bf16.msrb.mxu0 %v5101_v53  ;;  %v6996_v62 = vpop.permute.xlu1 %2042 }
 0x25b   : > { %v3849_v47 = vmul.f32 %v3845_v29, %v2821_v26 }
 0x25c   : > { %v2774_v39 = vadd.f32 %v2773_v19, %v2725_v28  ;;  %v5336_v19 = vld [vmem:[%s5716_s6 + $0x18c] sm:$0xf] }
 0x25d   : > { %v6978_v4 = vadd.f32 %v3849_v47, %v6573_v56  ;;  %v4958_v47 = vld [vmem:[%s5716_s6 + $0x198] sm:$0xf0]  ;;  %v5368_v28 = vld [vmem:[%s5716_s6 + $0x28c] sm:$0xf] }
 0x25e   : > { %v4961_v43 = vor.u32 %v5336_v19, %v4958_v47  ;;  %v4830_v19 = vld [vmem:[%s5716_s6 + $0x98] sm:$0xf0]  ;;  %3108 = vmatpush.bf16.msrb.mxu0 %v5085_v9  ;;  %v5332_v9 = vld [vmem:[%s5716_s6 + $0x16c] sm:$0xf] }
 0x260   : > { %v2822_v31 = vpop.f32.mrf.mxu2  ;;  %v6982_v35 = vpop.f32.mrf.mxu3  ;;  %3206 = vmatpush.bf16.msrb.mxu2 %v4961_v43 }
 0x261   : > { %v2823_v55 = vadd.f32 %v2822_v31, %v2774_v39  ;;  %v2727_v26 = vpop.f32.mrf.mxu0  ;;  %v2776_v50 = vpop.f32.mrf.mxu1  ;;  %v5089_v39 = vor.u32 %v5368_v28, %v5086_v3 }
 0x262   : > { %v2728_v49 = vadd.f32 %v2727_v26, %v6980_v8  ;;  %v3873_v26 = vperm.slane %v6522_v6, 4  ;;  %v7008_v28 = vpop.permute.xlu2 %2047 }
 0x263   : > { %v3853_v27 = vmul.f32 %v3845_v29, %v2823_v55  ;;  %2922 = vmatmul.bf16.gmra.mxu0 %v6676_v23  ;;  %3255 = vmatpush.bf16.msrb.mxu3 %v5089_v39 }
 0x264   : > { %2971 = vmatmul.bf16.gmra.mxu1 %v6678_v32  ;;  %v2777_v56 = vadd.f32 %v2776_v50, %v2728_v49 }
 0x265   : > { %3020 = vmatmul.bf16.gmra.mxu2 %v6671_v20  ;;  %v6989_v53 = vadd.f32 %v3853_v27, %v6592_v60  ;;  %3069 = vmatmul.bf16.gmra.mxu3 %v6676_v23  ;;  %v5304_v27 = vld [vmem:[%s5716_s6 + $0x8c] sm:$0xf] }
 0x266   : > { %v4833_v22 = vor.u32 %v5304_v27, %v4830_v19 }
 0x268   : > { %v2825_v29 = vpop.f32.mrf.mxu2  ;;  %v6998_v55 = vpop.f32.mrf.mxu3  ;;  %3157 = vmatpush.bf16.msrb.mxu1 %v4833_v22  ;;  %v4942_v22 = vld [vmem:[%s5716_s6 + $0x178] sm:$0xf0] }
 0x269   : > { %v2826_v31 = vadd.f32 %v2825_v29, %v2777_v56  ;;  %v2729_v60 = vpop.f32.mrf.mxu0  ;;  %v2778_v50 = vpop.f32.mrf.mxu1 }
 0x26a   : > { %v2730_v49 = vadd.f32 %v2729_v60, %v6996_v62 }
 0x26b   : > { %v7004_v47 = vmul.f32 %v3873_v26, %v2826_v31 }
 0x26c   : > { %v2779_v56 = vadd.f32 %v2778_v50, %v2730_v49  ;;  %v4945_v50 = vor.u32 %v5332_v9, %v4942_v22  ;;  %v5070_v49 = vld [vmem:[%s5716_s6 + $0x278] sm:$0xf0] }
 0x26d   : > { %v4814_v9 = vld [vmem:[%s5716_s6 + $0x78] sm:$0xf0] }
 0x26e   : > { %3207 = vmatpush.bf16.msrb.mxu2 %v4945_v50  ;;  %v4817_v54 = vor.u32 %v5300_v38, %v4814_v9  ;;  %v7036_v50 = vpop.permute.xlu1 %2057  ;;  %v5054_v9 = vld [vmem:[%s5716_s6 + $0x258] sm:$0xf0] }
 0x270   : > { %v2827_v43 = vpop.f32.mrf.mxu2  ;;  %v7010_v29 = vpop.f32.mrf.mxu3  ;;  %3158 = vmatpush.bf16.msrb.mxu1 %v4817_v54 }
 0x271   : > { %v2828_v3 = vadd.f32 %v2827_v43, %v2779_v56  ;;  %v2732_v39 = vpop.f32.mrf.mxu0  ;;  %v2781_v31 = vpop.f32.mrf.mxu1  ;;  %v5073_v56 = vor.u32 %v5364_v61, %v5070_v49 }
 0x272   : > { %v2733_v60 = vadd.f32 %v2732_v39, %v7008_v28 }
 0x273   : > { %v7013_v27 = vmul.f32 %v3873_v26, %v2828_v3  ;;  %2927 = vmatmul.bf16.gmra.mxu0 %v6715_v11  ;;  %v7023_v26 = vpop.permute.xlu0 %2052  ;;  %3256 = vmatpush.bf16.msrb.mxu3 %v5073_v56 }
 0x274   : > { %2976 = vmatmul.bf16.gmra.mxu1 %v6717_v57  ;;  %v2782_v41 = vadd.f32 %v2781_v31, %v2733_v60  ;;  %v3901_v31 = vperm.slane %v6522_v6, 5 }
 0x275   : > { %3025 = vmatmul.bf16.gmra.mxu2 %v6712_v17  ;;  %3074 = vmatmul.bf16.gmra.mxu3 %v6715_v11  ;;  %v5068_v11 = vld [vmem:[%s5716_s6 + $0x268] sm:$0xf]  ;;  %v5366_v17 = vld [vmem:[%s5716_s6 + $0x274] sm:$0xf0] }
 0x276   : > { %v5069_v57 = vor.u32 %v5366_v17, %v5068_v11 }
 0x278   : > { %v2830_v19 = vpop.f32.mrf.mxu2  ;;  %v7025_v3 = vpop.f32.mrf.mxu3  ;;  %3109 = vmatpush.bf16.msrb.mxu0 %v5069_v57 }
 0x279   : > { %v2831_v43 = vadd.f32 %v2830_v19, %v2782_v41  ;;  %v2734_v39 = vpop.f32.mrf.mxu0  ;;  %v2783_v60 = vpop.f32.mrf.mxu1 }
 0x27a   : > { %v2735_v21 = vadd.f32 %v2734_v39, %v7023_v26  ;;  %v5360_v39 = vld [vmem:[%s5716_s6 + $0x24c] sm:$0xf] }
 0x27b   : > { %v3905_v22 = vmul.f32 %v3901_v31, %v2831_v43 }
 0x27c   : > { %v2784_v41 = vadd.f32 %v2783_v60, %v2735_v21  ;;  %v5328_v21 = vld [vmem:[%s5716_s6 + $0x14c] sm:$0xf] }
 0x27d   : > { %v7034_v61 = vadd.f32 %v3905_v22, %v6978_v4  ;;  %v4926_v4 = vld [vmem:[%s5716_s6 + $0x158] sm:$0xf0]  ;;  %v7052_v22 = vpop.permute.xlu2 %2062 }
 0x27e   : > { %v4929_v60 = vor.u32 %v5328_v21, %v4926_v4  ;;  %v5296_v21 = vld [vmem:[%s5716_s6 + $0x4c] sm:$0xf]  ;;  %v4798_v4 = vld [vmem:[%s5716_s6 + $0x58] sm:$0xf0] }
 0x280   : > { %v2832_v49 = vpop.f32.mrf.mxu2  ;;  %v7038_v56 = vpop.f32.mrf.mxu3  ;;  %3208 = vmatpush.bf16.msrb.mxu2 %v4929_v60 }
 0x281   : > { %v2833_v19 = vadd.f32 %v2832_v49, %v2784_v41  ;;  %v2737_v38 = vpop.f32.mrf.mxu0  ;;  %v2786_v43 = vpop.f32.mrf.mxu1  ;;  %v5057_v41 = vor.u32 %v5360_v39, %v5054_v9  ;;  %v5362_v39 = vld [vmem:[%s5716_s6 + $0x254] sm:$0xf0] }
 0x282   : > { %v2738_v17 = vadd.f32 %v2737_v38, %v7036_v50 }
 0x283   : > { %v3909_v11 = vmul.f32 %v3901_v31, %v2833_v19  ;;  %2932 = vmatmul.bf16.gmra.mxu0 %v6756_v37  ;;  %3257 = vmatpush.bf16.msrb.mxu3 %v5057_v41 }
 0x284   : > { %2981 = vmatmul.bf16.gmra.mxu1 %v6758_v1  ;;  %v2787_v54 = vadd.f32 %v2786_v43, %v2738_v17  ;;  %v4801_v1 = vor.u32 %v5296_v21, %v4798_v4  ;;  %v5038_v21 = vld [vmem:[%s5716_s6 + $0x238] sm:$0xf0] }
 0x285   : > { %3030 = vmatmul.bf16.gmra.mxu2 %v6751_v52  ;;  %v7045_v57 = vadd.f32 %v3909_v11, %v6989_v53  ;;  %3079 = vmatmul.bf16.gmra.mxu3 %v6756_v37  ;;  %v7057_v11 = vpop.permute.xlu0 %2067  ;;  %v5052_v37 = vld [vmem:[%s5716_s6 + $0x248] sm:$0xf] }
 0x286   : > { %7540 = vst [vmem:[#allocation74_spill] sm:$0xff] %v7057_v11  ;;  %3159 = vmatpush.bf16.msrb.mxu1 %v4801_v1 }
 0x288   : > { %v2835_v31 = vpop.f32.mrf.mxu2  ;;  %v7054_v19 = vpop.f32.mrf.mxu3 }
 0x289   : > { %v2836_v49 = vadd.f32 %v2835_v31, %v2787_v54  ;;  %v2739_v53 = vpop.f32.mrf.mxu0  ;;  %v2788_v38 = vpop.f32.mrf.mxu1  ;;  %v5053_v31 = vor.u32 %v5362_v39, %v5052_v37  ;;  %v5356_v37 = vld [vmem:[%s5716_s6 + $0x22c] sm:$0xf] }
 0x28a   : > { %v2740_v43 = vadd.f32 %v2739_v53, %v7052_v22 }
 0x28b   : > { %3325 = vst [vmem:[#allocation2 + $0x4c0] sm:$0xff] %v2836_v49  ;;  %3110 = vmatpush.bf16.msrb.mxu0 %v5053_v31 }
 0x28c   : > { %v2789_v17 = vadd.f32 %v2788_v38, %v2740_v43  ;;  %v4910_v38 = vld [vmem:[%s5716_s6 + $0x138] sm:$0xf0] }
 0x290   : > { %v2837_v52 = vpop.f32.mrf.mxu2  ;;  %v7063_v9 = vpop.f32.mrf.mxu3 }
 0x291   : > { %v2838_v54 = vadd.f32 %v2837_v52, %v2789_v17  ;;  %7541 = vst [vmem:[#allocation75_spill] sm:$0xff] %v7063_v9  ;;  %v2742_v60 = vpop.f32.mrf.mxu0  ;;  %v2791_v41 = vpop.f32.mrf.mxu1  ;;  %v5324_v52 = vld [vmem:[%s5716_s6 + $0x12c] sm:$0xf] }
 0x292   : > { %v2743_v49 = vadd.f32 %v2742_v60, %v7057_v11  ;;  %v7073_v17 = vpop.permute.xlu1 %2072  ;;  %v4913_v1 = vor.u32 %v5324_v52, %v4910_v38  ;;  %v5041_v60 = vor.u32 %v5356_v37, %v5038_v21  ;;  %v5358_v11 = vld [vmem:[%s5716_s6 + $0x234] sm:$0xf0] }
 0x293   : > { %3329 = vst [vmem:[#allocation2 + $0x4e0] sm:$0xff] %v2838_v54  ;;  %2937 = vmatmul.bf16.gmra.mxu0 %v6798_v63 }
 0x294   : > { %2986 = vmatmul.bf16.gmra.mxu1 %v6800_v42  ;;  %v2792_v53 = vadd.f32 %v2791_v41, %v2743_v49  ;;  %3209 = vmatpush.bf16.msrb.mxu2 %v4913_v1  ;;  %v5292_v49 = vld [vmem:[%s5716_s6 + $0x2c] sm:$0xf]  ;;  %v5036_v42 = vld [vmem:[%s5716_s6 + $0x228] sm:$0xf]  ;;  %v3957_v1 = vperm.slane %v6522_v6, 7 }
 0x295   : > { %3035 = vmatmul.bf16.gmra.mxu2 %v6795_v10  ;;  %3084 = vmatmul.bf16.gmra.mxu3 %v6798_v63  ;;  %v4782_v63 = vld [vmem:[%s5716_s6 + $0x38] sm:$0xf0]  ;;  %v5037_v9 = vor.u32 %v5358_v11, %v5036_v42 }
 0x296   : > { %3258 = vmatpush.bf16.msrb.mxu3 %v5041_v60  ;;  %v4785_v10 = vor.u32 %v5292_v49, %v4782_v63  ;;  %v5352_v60 = vld [vmem:[%s5716_s6 + $0x20c] sm:$0xf] }
 0x297   : > { %3111 = vmatpush.bf16.msrb.mxu0 %v5037_v9  ;;  %v5320_v9 = vld [vmem:[%s5716_s6 + $0x10c] sm:$0xf] }
 0x298   : > { %v2840_v43 = vpop.f32.mrf.mxu2  ;;  %v7076_v39 = vpop.f32.mrf.mxu3  ;;  %3160 = vmatpush.bf16.msrb.mxu1 %v4785_v10 }
 0x299   : > { %v2841_v4 = vadd.f32 %v2840_v43, %v2792_v53  ;;  %v2744_v54 = vpop.f32.mrf.mxu0  ;;  %v2793_v31 = vpop.f32.mrf.mxu1 }
 0x29a   : > { %v2745_v41 = vadd.f32 %v2744_v54, %v7073_v17  ;;  %v4894_v54 = vld [vmem:[%s5716_s6 + $0x118] sm:$0xf0] }
 0x29b   : > { %3333 = vst [vmem:[#allocation2 + $0x500] sm:$0xff] %v2841_v4 }
 0x29c   : > { %v2794_v52 = vadd.f32 %v2793_v31, %v2745_v41  ;;  %v4897_v31 = vor.u32 %v5320_v9, %v4894_v54  ;;  %v5022_v41 = vld [vmem:[%s5716_s6 + $0x218] sm:$0xf0] }
 0x29e   : > { %3210 = vmatpush.bf16.msrb.mxu2 %v4897_v31 }
 0x2a0   : > { %v2842_v53 = vpop.f32.mrf.mxu2  ;;  %v7083_v37 = vpop.f32.mrf.mxu3 }
 0x2a1   : > { %v2843_v38 = vadd.f32 %v2842_v53, %v2794_v52  ;;  %v2747_v43 = vpop.f32.mrf.mxu0  ;;  %v2796_v63 = vpop.f32.mrf.mxu1  ;;  %v5025_v52 = vor.u32 %v5352_v60, %v5022_v41 }
 0x2a2   : > { %v2748_v21 = vadd.f32 %v2747_v43, %v6949_v0  ;;  %v3949_v4 = vld [vmem:[#allocation2 + $0x500] sm:$0xff] }
 0x2a3   : > { %3337 = vst [vmem:[#allocation2 + $0x520] sm:$0xff] %v2843_v38  ;;  %v3961_v42 = vmul.f32 %v3957_v1, %v3949_v4  ;;  %2942 = vmatmul.bf16.gmra.mxu0 %v6836_v58  ;;  %3259 = vmatpush.bf16.msrb.mxu3 %v5025_v52  ;;  %v7109_v52 = vpop.permute.xlu2 %2087 }
 0x2a4   : > { %v2797_v10 = vadd.f32 %v2796_v63, %v2748_v21  ;;  %2991 = vmatmul.bf16.gmra.mxu1 %v6838_v33  ;;  %v5354_v33 = vld [vmem:[%s5716_s6 + $0x214] sm:$0xf0] }
 0x2a5   : > { %3040 = vmatmul.bf16.gmra.mxu2 %v6833_v40  ;;  %v7091_v11 = vadd.f32 %v3961_v42, %v7034_v61  ;;  %3089 = vmatmul.bf16.gmra.mxu3 %v6836_v58  ;;  %v5288_v42 = vld [vmem:[%s5716_s6 + $0xc] sm:$0xf]  ;;  %v4766_v58 = vld [vmem:[%s5716_s6 + $0x18] sm:$0xf0]  ;;  %v5020_v40 = vld [vmem:[%s5716_s6 + $0x208] sm:$0xf] }
 0x2a6   : > { %v4769_v54 = vor.u32 %v5288_v42, %v4766_v58  ;;  %v7543_v42 = vld [vmem:[#allocation29_spill] sm:$0xff]  ;;  %s4177_s6 = sshll.u32 %s5712_s25, 2 }
 0x2a7   : > { %s234_s19 = scalar_lea.vmem [#allocation8], %s4177_s6 }
 0x2a8   : > { %v2845_v49 = vpop.f32.mrf.mxu2  ;;  %v7098_v38 = vpop.f32.mrf.mxu3  ;;  %3161 = vmatpush.bf16.msrb.mxu1 %v4769_v54  ;;  %s4084_s5 = sshll.u32 %s234_s19, 4  ;;  %s4085_s5 = int_to_ptr.vmem [resolvable:$true] %s4084_s5 }
 0x2a9   : > { %v2846_v53 = vadd.f32 %v2845_v49, %v2797_v10  ;;  %v2749_v43 = vpop.f32.mrf.mxu0  ;;  %v2798_v61 = vpop.f32.mrf.mxu1  ;;  %v5021_v10 = vor.u32 %v5354_v33, %v5020_v40 }
 0x2aa   : > { %v3953_v21 = vld [vmem:[#allocation2 + $0x520] sm:$0xff]  ;;  %v2750_v4 = vadd.f32 %v2749_v43, %v6960_v7 }
 0x2ab   : > { %v3557_v63 = vadd.f32 %v6240_v48, %v2846_v53  ;;  %v3965_v9 = vmul.f32 %v3957_v1, %v3953_v21  ;;  %3112 = vmatpush.bf16.msrb.mxu0 %v5021_v10 }
 0x2ac   : > { %v2799_v49 = vadd.f32 %v2798_v61, %v2750_v4 }
 0x2ad   : > { %v3605_v60 = vadd.f32 %v6334_v36, %v3557_v63  ;;  %v3973_v41 = vadd.f32 %v3965_v9, %v7045_v57  ;;  %v7542_v63 = vld [vmem:[#allocation35_spill] sm:$0xff] }
 0x2af   : > { %v3661_v31 = vadd.f32 %v6402_v30, %v3605_v60  ;;  %v3921_v30 = vld [vmem:[#allocation2 + $0x4c0] sm:$0xff]  ;;  %v7126_v60 = vpop.permute.xlu0 %2092 }
 0x2b0   : > { %v2847_v48 = vpop.f32.mrf.mxu2  ;;  %v7111_v43 = vpop.f32.mrf.mxu3 }
 0x2b1   : > { %v2848_v53 = vadd.f32 %v2847_v48, %v2799_v49  ;;  %v2752_v1 = vpop.f32.mrf.mxu0  ;;  %v3717_v58 = vadd.f32 %v6466_v18, %v3661_v31  ;;  %v2801_v21 = vpop.f32.mrf.mxu1  ;;  %v3929_v18 = vperm.slane %v6522_v6, 6  ;;  %v7544_v49 = vld [vmem:[#allocation14_spill] sm:$0xff] }
 0x2b2   : > { %v2753_v36 = vadd.f32 %v2752_v1, %v7109_v52 }
 0x2b3   : > { %v3561_v40 = vadd.f32 %v6271_v45, %v2848_v53  ;;  %v3773_v33 = vadd.f32 %v6533_v46, %v3717_v58  ;;  %2947 = vmatmul.bf16.gmra.mxu0 %v6875_v34  ;;  %v3933_v9 = vmul.f32 %v3929_v18, %v3921_v30  ;;  %v7545_v58 = vld [vmem:[#allocation32_spill] sm:$0xff] }
 0x2b4   : > { %2996 = vmatmul.bf16.gmra.mxu1 %v6877_v59  ;;  %v2802_v61 = vadd.f32 %v2801_v21, %v2753_v36 }
 0x2b5   : > { %v3609_v57 = vadd.f32 %v6352_v24, %v3561_v40  ;;  %3045 = vmatmul.bf16.gmra.mxu2 %v6872_v16  ;;  %v3829_v4 = vadd.f32 %v7542_v63, %v3773_v33  ;;  %3094 = vmatmul.bf16.gmra.mxu3 %v6875_v34  ;;  %v7546_v40 = vld [vmem:[#allocation38_spill] sm:$0xff] }
 0x2b7   : > { %v3665_v45 = vadd.f32 %v7543_v42, %v3609_v57  ;;  %v3885_v46 = vadd.f32 %v7004_v47, %v3829_v4  ;;  %v3925_v47 = vld [vmem:[#allocation2 + $0x4e0] sm:$0xff]  ;;  %v7135_v57 = vpop.permute.xlu1 %2097 }
 0x2b8   : > { %v2850_v54 = vpop.f32.mrf.mxu2  ;;  %v7128_v10 = vpop.f32.mrf.mxu3  ;;  %v3937_v63 = vmul.f32 %v3929_v18, %v3925_v47 }
 0x2b9   : > { %v2851_v24 = vadd.f32 %v2850_v54, %v2802_v61  ;;  %v2754_v31 = vpop.f32.mrf.mxu0  ;;  %v3721_v48 = vadd.f32 %v7544_v49, %v3665_v45  ;;  %v3941_v53 = vadd.f32 %v3933_v9, %v3885_v46  ;;  %v2803_v1 = vpop.f32.mrf.mxu1 }
 0x2ba   : > { %v2755_v6 = vadd.f32 %v2754_v31, %v7126_v60  ;;  %v2103_v18 = vpop.permute.xlu2 %2102 }
 0x2bb   : > { %3349 = vst [vmem:[#allocation2 + $0x580] sm:$0xff] %v2851_v24  ;;  %v3777_v21 = vadd.f32 %v7545_v58, %v3721_v48  ;;  %v3977_v36 = vadd.f32 %v7091_v11, %v3941_v53 }
 0x2bc   : > { %v2804_v30 = vadd.f32 %v2803_v1, %v2755_v6 }
 0x2bd   : > { %v3833_v33 = vadd.f32 %v7546_v40, %v3777_v21  ;;  %v3985_v6 = vmax.f32 %v3977_v36, 0.0 }
 0x2bf   : > { %v3889_v61 = vadd.f32 %v7013_v27, %v3833_v33 }
 0x2c0   : > { %v2852_v4 = vpop.f32.mrf.mxu2  ;;  %v7138_v45 = vpop.f32.mrf.mxu3 }
 0x2c1   : > { %v2853_v42 = vadd.f32 %v2852_v4, %v2804_v30  ;;  %v2757_v46 = vpop.f32.mrf.mxu0  ;;  %v3945_v9 = vadd.f32 %v3937_v63, %v3889_v61  ;;  %v2806_v54 = vpop.f32.mrf.mxu1  ;;  %v2870_v30 = vadd.f32 %v6970_v44, %v6951_v14  ;;  %v2872_v44 = vadd.f32 %v6982_v35, %v6967_v2 }
 0x2c2   : > { %v2758_v24 = vadd.f32 %v2757_v46, %v7135_v57  ;;  %v3995_v49 = vld [vmem:[#allocation2 + $0x580] sm:$0xff] }
 0x2c3   : > { %3353 = vst [vmem:[#allocation2 + $0x5a0] sm:$0xff] %v2853_v42  ;;  %v3981_v11 = vadd.f32 %v3973_v41, %v3945_v9  ;;  %2952 = vmatmul.bf16.gmra.mxu0 %v6916_v25  ;;  %v4003_v47 = vmul.f32 %v3995_v49, %v3985_v6 }
 0x2c4   : > { %3001 = vmatmul.bf16.gmra.mxu1 %v6918_v5  ;;  %v2807_v31 = vadd.f32 %v2806_v54, %v2758_v24  ;;  %v7547_v54 = vld [vmem:[#allocation30_spill] sm:$0xff] }
 0x2c5   : > { %3050 = vmatmul.bf16.gmra.mxu2 %v6910_v13  ;;  %3099 = vmatmul.bf16.gmra.mxu3 %v6916_v25  ;;  %v3989_v58 = vmax.f32 %v3981_v11, 0.0  ;;  %v3846_v24 = vperm.slane %v7547_v54, 3 }
 0x2c8   : > { %v2855_v27 = vpop.f32.mrf.mxu2  ;;  %v7145_v53 = vpop.f32.mrf.mxu3 }
 0x2c9   : > { %v2856_v48 = vadd.f32 %v2855_v27, %v2807_v31  ;;  %v2759_v1 = vpop.f32.mrf.mxu0  ;;  %v2808_v21 = vpop.f32.mrf.mxu1  ;;  %v7548_v31 = vld [vmem:[#allocation34_spill] sm:$0xff] }
 0x2ca   : > { %v3999_v41 = vld [vmem:[#allocation2 + $0x5a0] sm:$0xff] }
 0x2cb   : > { %3357 = vst [vmem:[#allocation2 + $0x5c0] sm:$0xff] %v2856_v48  ;;  %v4007_v40 = vmul.f32 %v3999_v41, %v3989_v58  ;;  %v7549_v41 = vld [vmem:[#allocation36_spill] sm:$0xff] }
 0x2cd   : > { %v7147_v33 = vadd.f32 %v4007_v40, %v4003_v47 }
 0x2d0   : > { %v2857_v61 = vpop.f32.mrf.mxu2  ;;  %v2906_v63 = vpop.f32.mrf.mxu3 }
 0x2d1   : > { %v2918_v4 = vpop.f32.mrf.mxu0  ;;  %v2967_v46 = vpop.f32.mrf.mxu1 }
 0x2d2   : > { %v2919_v42 = vadd.f32 %v2918_v4, %v2870_v30 }
 0x2d3   : > { %3113 = vmatmul.bf16.vlgmr.msrb.gmra.mxu0 %v6634_v51 }
 0x2d4   : > { %v2968_v9 = vadd.f32 %v2967_v46, %v2919_v42  ;;  %3162 = vmatmul.bf16.vlgmr.msrb.gmra.mxu1 %v6629_v12  ;;  %v3874_v46 = vperm.slane %v7547_v54, 4 }
 0x2d5   : > { %3211 = vmatmul.bf16.vlgmr.msrb.gmra.mxu2 %v6632_v15  ;;  %3260 = vmatmul.bf16.vlgmr.msrb.gmra.mxu3 %v6634_v51  ;;  %v2875_v15 = vadd.f32 %v6998_v55, %v6980_v8 }
 0x2d6   : > { %v3850_v36 = vmul.f32 %v3846_v24, %v2968_v9  ;;  %v2877_v9 = vadd.f32 %v7010_v29, %v6996_v62 }
 0x2d8   : > { %v3016_v11 = vpop.f32.mrf.mxu2  ;;  %v3858_v27 = vadd.f32 %v3850_v36, %v7548_v31  ;;  %v3065_v49 = vpop.f32.mrf.mxu3 }
 0x2d9   : > { %v3017_v18 = vadd.f32 %v3016_v11, %v6951_v14  ;;  %v2920_v48 = vpop.f32.mrf.mxu0  ;;  %v2969_v6 = vpop.f32.mrf.mxu1 }
 0x2da   : > { %v2921_v1 = vadd.f32 %v2920_v48, %v2872_v44 }
 0x2db   : > { %v7160_v58 = vadd.f32 %v3065_v49, %v3017_v18 }
 0x2dc   : > { %v2970_v12 = vadd.f32 %v2969_v6, %v2921_v1 }
 0x2de   : > { %v3854_v21 = vmul.f32 %v3846_v24, %v2970_v12 }
 0x2e0   : > { %v3018_v51 = vpop.f32.mrf.mxu2  ;;  %v3862_v47 = vadd.f32 %v3854_v21, %v7549_v41  ;;  %v3067_v40 = vpop.f32.mrf.mxu3  ;;  %v7550_v41 = vld [vmem:[#allocation45_spill] sm:$0xff] }
 0x2e1   : > { %v3019_v35 = vadd.f32 %v3018_v51, %v6967_v2  ;;  %v2923_v30 = vpop.f32.mrf.mxu0  ;;  %v2972_v63 = vpop.f32.mrf.mxu1 }
 0x2e2   : > { %v2924_v61 = vadd.f32 %v2923_v30, %v2875_v15  ;;  %v7552_v30 = vld [vmem:[#allocation44_spill] sm:$0xff] }
 0x2e3   : > { %v7166_v4 = vadd.f32 %v3067_v40, %v3019_v35  ;;  %3118 = vmatmul.bf16.gmra.mxu0 %v6678_v32  ;;  %v3902_v35 = vperm.slane %v7547_v54, 5  ;;  %v7551_v40 = vld [vmem:[#allocation43_spill] sm:$0xff] }
 0x2e4   : > { %v2973_v42 = vadd.f32 %v2972_v63, %v2924_v61  ;;  %3167 = vmatmul.bf16.gmra.mxu1 %v6671_v20  ;;  %v2882_v61 = vadd.f32 %v7038_v56, %v7023_v26 }
 0x2e5   : > { %3216 = vmatmul.bf16.gmra.mxu2 %v6676_v23  ;;  %3265 = vmatmul.bf16.gmra.mxu3 %v6678_v32  ;;  %v2880_v23 = vadd.f32 %v7025_v3, %v7008_v28 }
 0x2e6   : > { %v7173_v55 = vmul.f32 %v3874_v46, %v2973_v42 }
 0x2e8   : > { %v3021_v24 = vpop.f32.mrf.mxu2  ;;  %v3070_v44 = vpop.f32.mrf.mxu3 }
 0x2e9   : > { %v3022_v36 = vadd.f32 %v3021_v24, %v6980_v8  ;;  %v2925_v11 = vpop.f32.mrf.mxu0  ;;  %v2974_v18 = vpop.f32.mrf.mxu1 }
 0x2ea   : > { %v2926_v31 = vadd.f32 %v2925_v11, %v2877_v9 }
 0x2eb   : > { %v7178_v49 = vadd.f32 %v3070_v44, %v3022_v36 }
 0x2ec   : > { %v2975_v48 = vadd.f32 %v2974_v18, %v2926_v31 }
 0x2ee   : > { %v7180_v20 = vmul.f32 %v3874_v46, %v2975_v48  ;;  %v2885_v48 = vadd.f32 %v7054_v19, %v7036_v50 }
 0x2f0   : > { %v3023_v32 = vpop.f32.mrf.mxu2  ;;  %v3072_v6 = vpop.f32.mrf.mxu3 }
 0x2f1   : > { %v3024_v1 = vadd.f32 %v3023_v32, %v6996_v62  ;;  %v2928_v29 = vpop.f32.mrf.mxu0  ;;  %v2977_v21 = vpop.f32.mrf.mxu1 }
 0x2f2   : > { %v2929_v12 = vadd.f32 %v2928_v29, %v2880_v23 }
 0x2f3   : > { %v7185_v15 = vadd.f32 %v3072_v6, %v3024_v1  ;;  %3123 = vmatmul.bf16.gmra.mxu0 %v7550_v41 }
 0x2f4   : > { %v2978_v51 = vadd.f32 %v2977_v21, %v2929_v12  ;;  %3172 = vmatmul.bf16.gmra.mxu1 %v7551_v40  ;;  %v7554_v40 = vld [vmem:[#allocation47_spill] sm:$0xff] }
 0x2f5   : > { %3221 = vmatmul.bf16.gmra.mxu2 %v7552_v30  ;;  %3270 = vmatmul.bf16.gmra.mxu3 %v7550_v41  ;;  %v3930_v41 = vperm.slane %v7547_v54, 6 }
 0x2f6   : > { %v3906_v3 = vmul.f32 %v3902_v35, %v2978_v51  ;;  %v7553_v51 = vld [vmem:[#allocation49_spill] sm:$0xff] }
 0x2f8   : > { %v3026_v63 = vpop.f32.mrf.mxu2  ;;  %v3914_v42 = vadd.f32 %v3906_v3, %v3858_v27  ;;  %v3075_v9 = vpop.f32.mrf.mxu3 }
 0x2f9   : > { %v3027_v46 = vadd.f32 %v3026_v63, %v7008_v28  ;;  %v2930_v24 = vpop.f32.mrf.mxu0  ;;  %v2979_v44 = vpop.f32.mrf.mxu1 }
 0x2fa   : > { %v2931_v36 = vadd.f32 %v2930_v24, %v2882_v61 }
 0x2fb   : > { %v7195_v11 = vadd.f32 %v3075_v9, %v3027_v46 }
 0x2fc   : > { %v2980_v31 = vadd.f32 %v2979_v44, %v2931_v36 }
 0x2fe   : > { %v3910_v18 = vmul.f32 %v3902_v35, %v2980_v31  ;;  %v7555_v35 = vld [vmem:[#allocation48_spill] sm:$0xff] }
 0x300   : > { %v3028_v23 = vpop.f32.mrf.mxu2  ;;  %v3918_v32 = vadd.f32 %v3910_v18, %v3862_v47  ;;  %v3077_v56 = vpop.f32.mrf.mxu3  ;;  %v7556_v47 = vld [vmem:[#allocation75_spill] sm:$0xff]  ;;  %v7557_v18 = vld [vmem:[#allocation74_spill] sm:$0xff] }
 0x301   : > { %v3029_v1 = vadd.f32 %v3028_v23, %v7023_v26  ;;  %v2933_v6 = vpop.f32.mrf.mxu0  ;;  %v2982_v29 = vpop.f32.mrf.mxu1  ;;  %v2887_v30 = vadd.f32 %v7556_v47, %v7052_v22  ;;  %v7559_v47 = vld [vmem:[#allocation53_spill] sm:$0xff] }
 0x302   : > { %v2934_v27 = vadd.f32 %v2933_v6, %v2885_v48  ;;  %v2890_v48 = vadd.f32 %v7076_v39, %v7557_v18 }
 0x303   : > { %v7200_v12 = vadd.f32 %v3077_v56, %v3029_v1  ;;  %3128 = vmatmul.bf16.gmra.mxu0 %v7553_v51 }
 0x304   : > { %v2983_v21 = vadd.f32 %v2982_v29, %v2934_v27  ;;  %3177 = vmatmul.bf16.gmra.mxu1 %v7554_v40  ;;  %v7558_v40 = vld [vmem:[#allocation55_spill] sm:$0xff] }
 0x305   : > { %3226 = vmatmul.bf16.gmra.mxu2 %v7555_v35  ;;  %3275 = vmatmul.bf16.gmra.mxu3 %v7553_v51  ;;  %v3958_v35 = vperm.slane %v7547_v54, 7 }
 0x306   : > { %v7207_v19 = vmul.f32 %v3930_v41, %v2983_v21 }
 0x308   : > { %v3031_v3 = vpop.f32.mrf.mxu2  ;;  %v3080_v63 = vpop.f32.mrf.mxu3 }
 0x309   : > { %v3032_v61 = vadd.f32 %v3031_v3, %v7036_v50  ;;  %v2935_v46 = vpop.f32.mrf.mxu0  ;;  %v2984_v24 = vpop.f32.mrf.mxu1 }
 0x30a   : > { %v2936_v9 = vadd.f32 %v2935_v46, %v2887_v30  ;;  %v2892_v30 = vadd.f32 %v7083_v37, %v7073_v17 }
 0x30b   : > { %v7212_v36 = vadd.f32 %v3080_v63, %v3032_v61 }
 0x30c   : > { %v2985_v44 = vadd.f32 %v2984_v24, %v2936_v9 }
 0x30e   : > { %v7214_v31 = vmul.f32 %v3930_v41, %v2985_v44  ;;  %v7560_v41 = vld [vmem:[#allocation54_spill] sm:$0xff] }
 0x310   : > { %v3033_v23 = vpop.f32.mrf.mxu2  ;;  %v3082_v56 = vpop.f32.mrf.mxu3 }
 0x311   : > { %v3034_v1 = vadd.f32 %v3033_v23, %v7052_v22  ;;  %v2938_v6 = vpop.f32.mrf.mxu0  ;;  %v2987_v29 = vpop.f32.mrf.mxu1 }
 0x312   : > { %v2939_v27 = vadd.f32 %v2938_v6, %v2890_v48 }
 0x313   : > { %v7219_v21 = vadd.f32 %v3082_v56, %v3034_v1  ;;  %3133 = vmatmul.bf16.gmra.mxu0 %v7558_v40  ;;  %v2895_v1 = vadd.f32 %v7098_v38, %v6949_v0  ;;  %v2897_v38 = vadd.f32 %v7111_v43, %v6960_v7 }
 0x314   : > { %v2988_v51 = vadd.f32 %v2987_v29, %v2939_v27  ;;  %3182 = vmatmul.bf16.gmra.mxu1 %v7559_v47 }
 0x315   : > { %3231 = vmatmul.bf16.gmra.mxu2 %v7560_v41  ;;  %3280 = vmatmul.bf16.gmra.mxu3 %v7558_v40  ;;  %v7561_v41 = vld [vmem:[#allocation60_spill] sm:$0xff] }
 0x316   : > { %v3962_v39 = vmul.f32 %v3958_v35, %v2988_v51 }
 0x318   : > { %v3036_v3 = vpop.f32.mrf.mxu2  ;;  %v3970_v61 = vadd.f32 %v3962_v39, %v3914_v42  ;;  %v3085_v46 = vpop.f32.mrf.mxu3  ;;  %v7562_v39 = vld [vmem:[#allocation58_spill] sm:$0xff] }
 0x319   : > { %v3037_v63 = vadd.f32 %v3036_v3, %v7557_v18  ;;  %v2940_v9 = vpop.f32.mrf.mxu0  ;;  %v2989_v44 = vpop.f32.mrf.mxu1 }
 0x31a   : > { %v2941_v24 = vadd.f32 %v2940_v9, %v2892_v30  ;;  %v7563_v30 = vld [vmem:[#allocation59_spill] sm:$0xff] }
 0x31b   : > { %v7229_v48 = vadd.f32 %v3085_v46, %v3037_v63 }
 0x31c   : > { %v2990_v54 = vadd.f32 %v2989_v44, %v2941_v24 }
 0x31e   : > { %v3966_v23 = vmul.f32 %v3958_v35, %v2990_v54  ;;  %v7564_v35 = vld [vmem:[#allocation16_spill] sm:$0xff] }
 0x31f   : > { %v7566_v54 = vld [vmem:[#allocation28_spill] sm:$0xff] }
 0x320   : > { %v3038_v56 = vpop.f32.mrf.mxu2  ;;  %v3974_v6 = vadd.f32 %v3966_v23, %v3918_v32  ;;  %v3087_v37 = vpop.f32.mrf.mxu3  ;;  %v7565_v32 = vld [vmem:[#allocation22_spill] sm:$0xff] }
 0x321   : > { %v3039_v27 = vadd.f32 %v3038_v56, %v7073_v17  ;;  %v2943_v29 = vpop.f32.mrf.mxu0  ;;  %v2992_v51 = vpop.f32.mrf.mxu1 }
 0x322   : > { %v2944_v42 = vadd.f32 %v2943_v29, %v2895_v1  ;;  %v7567_v29 = vld [vmem:[#allocation13_spill] sm:$0xff] }
 0x323   : > { %v7234_v40 = vadd.f32 %v3087_v37, %v3039_v27  ;;  %3138 = vmatmul.bf16.gmra.mxu0 %v7561_v41 }
 0x324   : > { %v2993_v47 = vadd.f32 %v2992_v51, %v2944_v42  ;;  %3187 = vmatmul.bf16.gmra.mxu1 %v7562_v39  ;;  %v7568_v51 = vld [vmem:[#allocation19_spill] sm:$0xff]  ;;  %v2900_v39 = vadd.f32 %v7128_v10, %v7109_v52 }
 0x325   : > { %3236 = vmatmul.bf16.gmra.mxu2 %v7563_v30  ;;  %3285 = vmatmul.bf16.gmra.mxu3 %v7561_v41  ;;  %v7569_v41 = vld [vmem:[#allocation31_spill] sm:$0xff]  ;;  %v7570_v30 = vld [vmem:[#allocation25_spill] sm:$0xff] }
 0x326   : > { %v3558_v3 = vadd.f32 %v7564_v35, %v2993_v47  ;;  %v7573_v10 = vld [vmem:[#allocation15_spill] sm:$0xff] }
 0x328   : > { %v3606_v63 = vadd.f32 %v7565_v32, %v3558_v3  ;;  %v3041_v46 = vpop.f32.mrf.mxu2  ;;  %v3090_v24 = vpop.f32.mrf.mxu3  ;;  %v7571_v32 = vld [vmem:[#allocation37_spill] sm:$0xff] }
 0x329   : > { %v3042_v9 = vadd.f32 %v3041_v46, %v6949_v0  ;;  %v2945_v44 = vpop.f32.mrf.mxu0  ;;  %v2994_v56 = vpop.f32.mrf.mxu1 }
 0x32a   : > { %v3662_v23 = vadd.f32 %v7566_v54, %v3606_v63  ;;  %v2946_v1 = vadd.f32 %v2945_v44, %v2897_v38 }
 0x32b   : > { %v7246_v27 = vadd.f32 %v3090_v24, %v3042_v9  ;;  %v7572_v24 = vld [vmem:[#allocation12_spill] sm:$0xff] }
 0x32c   : > { %v2995_v37 = vadd.f32 %v2994_v56, %v2946_v1  ;;  %v3718_v42 = vadd.f32 %v7567_v29, %v3662_v23 }
 0x32e   : > { %v3562_v47 = vadd.f32 %v7568_v51, %v2995_v37  ;;  %v3774_v43 = vadd.f32 %v7569_v41, %v3718_v42  ;;  %v7574_v51 = vld [vmem:[#allocation33_spill] sm:$0xff] }
 0x330   : > { %v3610_v35 = vadd.f32 %v7570_v30, %v3562_v47  ;;  %v3043_v3 = vpop.f32.mrf.mxu2  ;;  %v3830_v46 = vadd.f32 %v7571_v32, %v3774_v43  ;;  %v3092_v63 = vpop.f32.mrf.mxu3 }
 0x331   : > { %v3044_v38 = vadd.f32 %v3043_v3, %v6960_v7  ;;  %v2948_v9 = vpop.f32.mrf.mxu0  ;;  %v2997_v23 = vpop.f32.mrf.mxu1 }
 0x332   : > { %v3666_v44 = vadd.f32 %v7572_v24, %v3610_v35  ;;  %v2949_v54 = vadd.f32 %v2948_v9, %v2900_v39  ;;  %v3886_v1 = vadd.f32 %v7173_v55, %v3830_v46  ;;  %v2902_v55 = vadd.f32 %v7138_v45, %v7126_v60  ;;  %v7575_v39 = vld [vmem:[#allocation39_spill] sm:$0xff] }
 0x333   : > { %v7258_v56 = vadd.f32 %v3092_v63, %v3044_v38  ;;  %3143 = vmatmul.bf16.gmra.mxu0 %v6877_v59  ;;  %v2905_v45 = vadd.f32 %v7145_v53, %v7135_v57 }
 0x334   : > { %v2998_v37 = vadd.f32 %v2997_v23, %v2949_v54  ;;  %v3722_v29 = vadd.f32 %v7573_v10, %v3666_v44  ;;  %v3942_v42 = vadd.f32 %v7207_v19, %v3886_v1  ;;  %3192 = vmatmul.bf16.gmra.mxu1 %v6872_v16 }
 0x335   : > { %3241 = vmatmul.bf16.gmra.mxu2 %v6875_v34  ;;  %3290 = vmatmul.bf16.gmra.mxu3 %v6877_v59 }
 0x336   : > { %v3778_v47 = vadd.f32 %v7574_v51, %v3722_v29  ;;  %v3978_v41 = vadd.f32 %v3970_v61, %v3942_v42 }
 0x338   : > { %v3046_v43 = vpop.f32.mrf.mxu2  ;;  %v3834_v30 = vadd.f32 %v7575_v39, %v3778_v47  ;;  %v3986_v35 = vmax.f32 %v3978_v41, 0.0  ;;  %v3095_v32 = vpop.f32.mrf.mxu3 }
 0x339   : > { %v3047_v3 = vadd.f32 %v3046_v43, %v7109_v52  ;;  %v2950_v19 = vpop.f32.mrf.mxu0  ;;  %v2999_v16 = vpop.f32.mrf.mxu1 }
 0x33a   : > { %v2951_v46 = vadd.f32 %v2950_v19, %v2902_v55  ;;  %v3890_v34 = vadd.f32 %v7180_v20, %v3834_v30  ;;  %v4004_v38 = vmul.f32 %v3986_v35, %v2998_v37  ;;  %v7577_v19 = vld [vmem:[#allocation66_spill] sm:$0xff] }
 0x33b   : > { %v7272_v59 = vadd.f32 %v3095_v32, %v3047_v3  ;;  %v7576_v3 = vld [vmem:[#allocation57_spill] sm:$0xff] }
 0x33c   : > { %v3000_v63 = vadd.f32 %v2999_v16, %v2951_v46  ;;  %v3946_v61 = vadd.f32 %v7214_v31, %v3890_v34 }
 0x33e   : > { %v3982_v9 = vadd.f32 %v3974_v6, %v3946_v61 }
 0x340   : > { %v3048_v24 = vpop.f32.mrf.mxu2  ;;  %v3990_v44 = vmax.f32 %v3982_v9, 0.0  ;;  %v3097_v23 = vpop.f32.mrf.mxu3 }
 0x341   : > { %v3049_v54 = vadd.f32 %v3048_v24, %v7126_v60  ;;  %v2953_v1 = vpop.f32.mrf.mxu0  ;;  %v3002_v29 = vpop.f32.mrf.mxu1  ;;  %v7578_v24 = vld [vmem:[#allocation62_spill] sm:$0xff] }
 0x342   : > { %v2954_v10 = vadd.f32 %v2953_v1, %v2905_v45  ;;  %v4008_v42 = vmul.f32 %v3990_v44, %v3000_v63  ;;  %v3848_v44 = vperm.slane %v7578_v24, 3 }
 0x343   : > { %v7278_v20 = vadd.f32 %v3097_v23, %v3049_v54  ;;  %3148 = vmatmul.bf16.gmra.mxu0 %v6918_v5  ;;  %v7579_v23 = vld [vmem:[#allocation68_spill] sm:$0xff] }
 0x344   : > { %v3003_v37 = vadd.f32 %v3002_v29, %v2954_v10  ;;  %v7281_v51 = vadd.f32 %v4008_v42, %v4004_v38  ;;  %3197 = vmatmul.bf16.gmra.mxu1 %v6910_v13  ;;  %v3847_v13 = vperm.slane %v7576_v3, 3  ;;  %v7580_v29 = vld [vmem:[#allocation67_spill] sm:$0xff] }
 0x345   : > { %3246 = vmatmul.bf16.gmra.mxu2 %v6916_v25  ;;  %3295 = vmatmul.bf16.gmra.mxu3 %v6918_v5 }
 0x346   : > { %3358 = vst [vmem:[#allocation2 + $0x5c8] sm:$0xff] %v3003_v37 }
 0x348   : > { %v3051_v53 = vpop.f32.mrf.mxu2  ;;  %v3100_v6 = vpop.f32.mrf.mxu3 }
 0x349   : > { %v3052_v31 = vadd.f32 %v3051_v53, %v7135_v57  ;;  %v2955_v47 = vpop.f32.mrf.mxu0  ;;  %v3004_v41 = vpop.f32.mrf.mxu1 }
 0x34b   : > { %v7287_v55 = vadd.f32 %v3100_v6, %v3052_v31 }
 0x350   : > { %v3053_v43 = vpop.f32.mrf.mxu2  ;;  %v3102_v39 = vpop.f32.mrf.mxu3 }
 0x351   : > { %v3114_v30 = vpop.f32.mrf.mxu0  ;;  %v3163_v32 = vpop.f32.mrf.mxu1 }
 0x352   : > { %v3115_v35 = vadd.f32 %v3114_v30, %v7160_v58  ;;  %v3164_v5 = vadd.f32 %v3163_v32, %v6951_v14 }
 0x354   : > { %v3851_v25 = vmul.f32 %v3847_v13, %v3115_v35  ;;  %v7581_v35 = vld [vmem:[#allocation70_spill] sm:$0xff] }
 0x356   : > { %v3859_v46 = vadd.f32 %v3851_v25, %v7577_v19 }
 0x358   : > { %v3212_v16 = vpop.f32.mrf.mxu2  ;;  %v3261_v38 = vpop.f32.mrf.mxu3 }
 0x359   : > { %v3213_v34 = vadd.f32 %v3212_v16, %v3164_v5  ;;  %v3116_v63 = vpop.f32.mrf.mxu0  ;;  %v3165_v9 = vpop.f32.mrf.mxu1 }
 0x35a   : > { %v3117_v61 = vadd.f32 %v3116_v63, %v7166_v4  ;;  %v3166_v10 = vadd.f32 %v3165_v9, %v6967_v2  ;;  %v3875_v4 = vperm.slane %v7576_v3, 4 }
 0x35b   : > { %v3262_v45 = vadd.f32 %v3261_v38, %v3213_v34 }
 0x35c   : > { %v3855_v54 = vmul.f32 %v3847_v13, %v3117_v61 }
 0x35d   : > { %v3852_v58 = vmul.f32 %v3848_v44, %v3262_v45 }
 0x35e   : > { %v3863_v1 = vadd.f32 %v3855_v54, %v7579_v23  ;;  %v3903_v23 = vperm.slane %v7576_v3, 5 }
 0x35f   : > { %v3860_v42 = vadd.f32 %v3852_v58, %v7580_v29 }
 0x360   : > { %v3214_v37 = vpop.f32.mrf.mxu2  ;;  %v3263_v53 = vpop.f32.mrf.mxu3 }
 0x361   : > { %v3215_v14 = vadd.f32 %v3214_v37, %v3166_v10  ;;  %v3119_v31 = vpop.f32.mrf.mxu0  ;;  %v3168_v47 = vpop.f32.mrf.mxu1 }
 0x362   : > { %v3120_v6 = vadd.f32 %v3119_v31, %v7178_v49  ;;  %v3169_v30 = vadd.f32 %v3168_v47, %v6980_v8  ;;  %v3876_v49 = vperm.slane %v7578_v24, 4 }
 0x363   : > { %v3264_v41 = vadd.f32 %v3263_v53, %v3215_v14 }
 0x364   : > { %v7300_v43 = vmul.f32 %v3875_v4, %v3120_v6 }
 0x365   : > { %v3856_v39 = vmul.f32 %v3848_v44, %v3264_v41 }
 0x367   : > { %v3864_v13 = vadd.f32 %v3856_v39, %v7581_v35 }
 0x368   : > { %v3217_v2 = vpop.f32.mrf.mxu2  ;;  %v3266_v25 = vpop.f32.mrf.mxu3 }
 0x369   : > { %v3218_v32 = vadd.f32 %v3217_v2, %v3169_v30  ;;  %v3121_v19 = vpop.f32.mrf.mxu0  ;;  %v3170_v16 = vpop.f32.mrf.mxu1 }
 0x36a   : > { %v3122_v5 = vadd.f32 %v3121_v19, %v7185_v15  ;;  %v3171_v61 = vadd.f32 %v3170_v16, %v6996_v62 }
 0x36b   : > { %v3267_v34 = vadd.f32 %v3266_v25, %v3218_v32 }
 0x36c   : > { %v7306_v38 = vmul.f32 %v3875_v4, %v3122_v5 }
 0x36d   : > { %v7308_v63 = vmul.f32 %v3876_v49, %v3267_v34  ;;  %v3931_v34 = vperm.slane %v7576_v3, 6 }
 0x370   : > { %v3219_v9 = vpop.f32.mrf.mxu2  ;;  %v3268_v45 = vpop.f32.mrf.mxu3 }
 0x371   : > { %v3220_v8 = vadd.f32 %v3219_v9, %v3171_v61  ;;  %v3124_v44 = vpop.f32.mrf.mxu0  ;;  %v3173_v58 = vpop.f32.mrf.mxu1 }
 0x372   : > { %v3125_v54 = vadd.f32 %v3124_v44, %v7195_v11  ;;  %v3174_v14 = vadd.f32 %v3173_v58, %v7008_v28  ;;  %v3904_v11 = vperm.slane %v7578_v24, 5 }
 0x373   : > { %v3269_v15 = vadd.f32 %v3268_v45, %v3220_v8 }
 0x374   : > { %v3907_v10 = vmul.f32 %v3903_v23, %v3125_v54 }
 0x375   : > { %v7313_v29 = vmul.f32 %v3876_v49, %v3269_v15 }
 0x376   : > { %v3915_v37 = vadd.f32 %v3907_v10, %v3859_v46 }
 0x378   : > { %v3222_v53 = vpop.f32.mrf.mxu2  ;;  %v3271_v6 = vpop.f32.mrf.mxu3 }
 0x379   : > { %v3223_v31 = vadd.f32 %v3222_v53, %v3174_v14  ;;  %v3126_v62 = vpop.f32.mrf.mxu0  ;;  %v3175_v4 = vpop.f32.mrf.mxu1 }
 0x37a   : > { %v3127_v47 = vadd.f32 %v3126_v62, %v7200_v12  ;;  %v3176_v2 = vadd.f32 %v3175_v4, %v7023_v26 }
 0x37b   : > { %v3272_v41 = vadd.f32 %v3271_v6, %v3223_v31  ;;  %v3959_v31 = vperm.slane %v7576_v3, 7 }
 0x37c   : > { %v3911_v39 = vmul.f32 %v3903_v23, %v3127_v47 }
 0x37d   : > { %v3908_v30 = vmul.f32 %v3904_v11, %v3272_v41 }
 0x37e   : > { %v3919_v35 = vadd.f32 %v3911_v39, %v3863_v1 }
 0x37f   : > { %v3916_v32 = vadd.f32 %v3908_v30, %v3860_v42 }
 0x380   : > { %v3224_v25 = vpop.f32.mrf.mxu2  ;;  %v3273_v19 = vpop.f32.mrf.mxu3 }
 0x381   : > { %v3225_v46 = vadd.f32 %v3224_v25, %v3176_v2  ;;  %v3129_v28 = vpop.f32.mrf.mxu0  ;;  %v3178_v16 = vpop.f32.mrf.mxu1  ;;  %v3960_v25 = vperm.slane %v7578_v24, 7 }
 0x382   : > { %v3130_v5 = vadd.f32 %v3129_v28, %v7212_v36  ;;  %v3179_v9 = vadd.f32 %v3178_v16, %v7036_v50 }
 0x383   : > { %v3274_v12 = vadd.f32 %v3273_v19, %v3225_v46 }
 0x384   : > { %v7321_v49 = vmul.f32 %v3931_v34, %v3130_v5 }
 0x385   : > { %v3912_v61 = vmul.f32 %v3904_v11, %v3274_v12 }
 0x387   : > { %v3920_v8 = vadd.f32 %v3912_v61, %v3864_v13  ;;  %v7582_v61 = vld [vmem:[#allocation17_spill] sm:$0xff] }
 0x388   : > { %v3227_v1 = vpop.f32.mrf.mxu2  ;;  %v3276_v26 = vpop.f32.mrf.mxu3 }
 0x389   : > { %v3228_v45 = vadd.f32 %v3227_v1, %v3179_v9  ;;  %v3131_v42 = vpop.f32.mrf.mxu0  ;;  %v3180_v54 = vpop.f32.mrf.mxu1 }
 0x38a   : > { %v3132_v44 = vadd.f32 %v3131_v42, %v7219_v21  ;;  %v3181_v23 = vadd.f32 %v3180_v54, %v7052_v22 }
 0x38b   : > { %v7325_v58 = vadd.f32 %v3276_v26, %v3228_v45  ;;  %v7583_v45 = vld [vmem:[#allocation23_spill] sm:$0xff] }
 0x38c   : > { %v7327_v36 = vmul.f32 %v3931_v34, %v3132_v44 }
 0x390   : > { %v3229_v15 = vpop.f32.mrf.mxu2  ;;  %v3278_v14 = vpop.f32.mrf.mxu3 }
 0x391   : > { %v3230_v10 = vadd.f32 %v3229_v15, %v3181_v23  ;;  %v3134_v53 = vpop.f32.mrf.mxu0  ;;  %v3183_v13 = vpop.f32.mrf.mxu1 }
 0x392   : > { %v3135_v50 = vadd.f32 %v3134_v53, %v7229_v48  ;;  %v3184_v47 = vadd.f32 %v3183_v13, %v7557_v18  ;;  %v7586_v13 = vld [vmem:[#allocation20_spill] sm:$0xff] }
 0x393   : > { %v7332_v6 = vadd.f32 %v3278_v14, %v3230_v10  ;;  %v7585_v14 = vld [vmem:[#allocation50_spill] sm:$0xff] }
 0x394   : > { %v3963_v62 = vmul.f32 %v3959_v31, %v3135_v50 }
 0x396   : > { %v3971_v21 = vadd.f32 %v3963_v62, %v3915_v37  ;;  %v7587_v62 = vld [vmem:[#allocation61_spill] sm:$0xff] }
 0x398   : > { %v3232_v4 = vpop.f32.mrf.mxu2  ;;  %v3281_v11 = vpop.f32.mrf.mxu3 }
 0x399   : > { %v3233_v41 = vadd.f32 %v3232_v4, %v3184_v47  ;;  %v3136_v39 = vpop.f32.mrf.mxu0  ;;  %v3185_v30 = vpop.f32.mrf.mxu1  ;;  %v7588_v4 = vld [vmem:[#allocation18_spill] sm:$0xff] }
 0x39a   : > { %v3137_v22 = vadd.f32 %v3136_v39, %v7234_v40  ;;  %v3186_v3 = vadd.f32 %v3185_v30, %v7073_v17  ;;  %v7584_v17 = vld [vmem:[#allocation40_spill] sm:$0xff] }
 0x39b   : > { %v3282_v2 = vadd.f32 %v3281_v11, %v3233_v41  ;;  %v7590_v11 = vld [vmem:[#allocation69_spill] sm:$0xff] }
 0x39c   : > { %v3967_v48 = vmul.f32 %v3959_v31, %v3137_v22  ;;  %v7591_v22 = vld [vmem:[#allocation24_spill] sm:$0xff] }
 0x39d   : > { %v3964_v46 = vmul.f32 %v3960_v25, %v3282_v2 }
 0x39e   : > { %v7337_v19 = vadd.f32 %v3967_v48, %v3919_v35 }
 0x39f   : > { %v7340_v28 = vadd.f32 %v3964_v46, %v3916_v32 }
 0x3a0   : > { %v3234_v37 = vpop.f32.mrf.mxu2  ;;  %v3283_v5 = vpop.f32.mrf.mxu3 }
 0x3a1   : > { %v3235_v18 = vadd.f32 %v3234_v37, %v3186_v3  ;;  %v3139_v16 = vpop.f32.mrf.mxu0  ;;  %v3188_v12 = vpop.f32.mrf.mxu1  ;;  %v7593_v3 = vld [vmem:[#allocation41_spill] sm:$0xff] }
 0x3a2   : > { %v3140_v34 = vadd.f32 %v3139_v16, %v7246_v27  ;;  %v3189_v35 = vadd.f32 %v3188_v12, %v6949_v0 }
 0x3a3   : > { %v3284_v40 = vadd.f32 %v3283_v5, %v3235_v18 }
 0x3a4   : > { %v3559_v9 = vadd.f32 %v7582_v61, %v3140_v34 }
 0x3a5   : > { %v3968_v1 = vmul.f32 %v3960_v25, %v3284_v40  ;;  %v7592_v25 = vld [vmem:[#allocation42_spill] sm:$0xff]  ;;  %v7594_v40 = vld [vmem:[#allocation52_spill] sm:$0xff] }
 0x3a6   : > { %v3607_v26 = vadd.f32 %v7583_v45, %v3559_v9  ;;  %v7595_v45 = vld [vmem:[#allocation51_spill] sm:$0xff] }
 0x3a7   : > { %v7346_v42 = vadd.f32 %v3968_v1, %v3920_v8  ;;  %v7589_v8 = vld [vmem:[#allocation26_spill] sm:$0xff] }
 0x3a8   : > { %v3663_v32 = vadd.f32 %v7584_v17, %v3607_v26  ;;  %v3237_v44 = vpop.f32.mrf.mxu2  ;;  %v3286_v23 = vpop.f32.mrf.mxu3  ;;  %v7596_v26 = vld [vmem:[#allocation64_spill] sm:$0xff] }
 0x3a9   : > { %v3238_v54 = vadd.f32 %v3237_v44, %v3189_v35  ;;  %v3141_v15 = vpop.f32.mrf.mxu0  ;;  %v3190_v27 = vpop.f32.mrf.mxu1  ;;  %v7598_v44 = vld [vmem:[#allocation63_spill] sm:$0xff] }
 0x3aa   : > { %v3142_v10 = vadd.f32 %v3141_v15, %v7258_v56  ;;  %v3719_v53 = vadd.f32 %v7585_v14, %v3663_v32  ;;  %v3191_v2 = vadd.f32 %v3190_v27, %v6960_v7  ;;  %v7597_v32 = vld [vmem:[#allocation21_spill] sm:$0xff]  ;;  %v7600_v27 = vld [vmem:[#allocation27_spill] sm:$0xff] }
 0x3ab   : > { %v3287_v50 = vadd.f32 %v3286_v23, %v3238_v54  ;;  %v7599_v23 = vld [vmem:[#allocation72_spill] sm:$0xff] }
 0x3ac   : > { %v3563_v31 = vadd.f32 %v7586_v13, %v3142_v10  ;;  %v3775_v47 = vadd.f32 %v7587_v62, %v3719_v53  ;;  %v7601_v53 = vld [vmem:[#allocation71_spill] sm:$0xff] }
 0x3ad   : > { %v3560_v0 = vadd.f32 %v7588_v4, %v3287_v50 }
 0x3ae   : > { %v3611_v41 = vadd.f32 %v7589_v8, %v3563_v31  ;;  %v3831_v39 = vadd.f32 %v7590_v11, %v3775_v47 }
 0x3af   : > { %v3608_v30 = vadd.f32 %v7591_v22, %v3560_v0 }
 0x3b0   : > { %v3667_v56 = vadd.f32 %v7592_v25, %v3611_v41  ;;  %v3239_v48 = vpop.f32.mrf.mxu2  ;;  %v3887_v46 = vadd.f32 %v7300_v43, %v3831_v39  ;;  %v3288_v5 = vpop.f32.mrf.mxu3 }
 0x3b1   : > { %v3664_v37 = vadd.f32 %v7593_v3, %v3608_v30  ;;  %v3240_v18 = vadd.f32 %v3239_v48, %v3191_v2  ;;  %v3144_v16 = vpop.f32.mrf.mxu0  ;;  %v3193_v12 = vpop.f32.mrf.mxu1 }
 0x3b2   : > { %v3145_v34 = vadd.f32 %v3144_v16, %v7272_v59  ;;  %v3723_v61 = vadd.f32 %v7594_v40, %v3667_v56  ;;  %v3943_v9 = vadd.f32 %v7321_v49, %v3887_v46  ;;  %v3194_v14 = vadd.f32 %v3193_v12, %v7109_v52  ;;  %v7604_v56 = vld [vmem:[#allocation65_spill] sm:$0xff] }
 0x3b3   : > { %v3289_v1 = vadd.f32 %v3288_v5, %v3240_v18  ;;  %v3720_v7 = vadd.f32 %v7595_v45, %v3664_v37  ;;  %v3932_v49 = vperm.slane %v7578_v24, 6  ;;  %v7603_v24 = vld [vmem:[#allocation56_spill] sm:$0xff]  ;;  %v7605_v37 = vld [vmem:[#allocation73_spill] sm:$0xff]  ;;  %v4019_v5 = vrot.slane %v7281_v51, 4 }
 0x3b4   : > { %v3779_v35 = vadd.f32 %v7596_v26, %v3723_v61  ;;  %v3979_v17 = vadd.f32 %v3971_v21, %v3943_v9  ;;  %v7602_v21 = vld [vmem:[#allocation46_spill] sm:$0xff] }
 0x3b5   : > { %v3564_v43 = vadd.f32 %v7597_v32, %v3289_v1  ;;  %v3776_v54 = vadd.f32 %v7598_v44, %v3720_v7  ;;  %v3936_v11 = vmul.f32 %v3932_v49, %v7325_v58  ;;  %v4020_v45 = vadd.f32 %v4019_v5, %v7281_v51 }
 0x3b6   : > { %v3835_v15 = vadd.f32 %v7599_v23, %v3779_v35  ;;  %v3987_v10 = vmax.f32 %v3979_v17, 0.0 }
 0x3b7   : > { %v3612_v59 = vadd.f32 %v7600_v27, %v3564_v43  ;;  %v3832_v50 = vadd.f32 %v7601_v53, %v3776_v54  ;;  %v4021_v43 = vrot.slane %v4020_v45, 2 }
 0x3b8   : > { %v3242_v13 = vpop.f32.mrf.mxu2  ;;  %v3891_v31 = vadd.f32 %v7306_v38, %v3835_v15  ;;  %v4005_v62 = vmul.f32 %v3987_v10, %v3145_v34  ;;  %v3291_v0 = vpop.f32.mrf.mxu3 }
 0x3b9   : > { %v3668_v47 = vadd.f32 %v7602_v21, %v3612_v59  ;;  %v3243_v4 = vadd.f32 %v3242_v13, %v3194_v14  ;;  %v3146_v8 = vpop.f32.mrf.mxu0  ;;  %v3888_v41 = vadd.f32 %v7308_v63, %v3832_v50  ;;  %v3195_v52 = vpop.f32.mrf.mxu1  ;;  %v4022_v53 = vadd.f32 %v4021_v43, %v4020_v45 }
 0x3ba   : > { %v3147_v39 = vadd.f32 %v3146_v8, %v7278_v20  ;;  %v3947_v22 = vadd.f32 %v7327_v36, %v3891_v31  ;;  %v3196_v63 = vadd.f32 %v3195_v52, %v7126_v60 }
 0x3bb   : > { %v3292_v30 = vadd.f32 %v3291_v0, %v3243_v4  ;;  %v3724_v2 = vadd.f32 %v7603_v24, %v3668_v47  ;;  %v3944_v25 = vadd.f32 %v3936_v11, %v3888_v41  ;;  %v4023_v31 = vrot.slane %v4022_v53, 1 }
 0x3bc   : > { %v3983_v38 = vadd.f32 %v7337_v19, %v3947_v22  ;;  %v3940_v19 = vmul.f32 %v3932_v49, %v7332_v6 }
 0x3bd   : > { %v3780_v48 = vadd.f32 %v7604_v56, %v3724_v2  ;;  %v3980_v46 = vadd.f32 %v7340_v28, %v3944_v25  ;;  %v4012_v28 = vrot.slane %v7147_v33, 4  ;;  %v4024_v41 = vadd.f32 %v4023_v31, %v4022_v53 }
 0x3be   : > { %v3991_v3 = vmax.f32 %v3983_v38, 0.0 }
 0x3bf   : > { %v3836_v58 = vadd.f32 %v7605_v37, %v3780_v48  ;;  %v3988_v35 = vmax.f32 %v3980_v46, 0.0  ;;  %v4013_v17 = vadd.f32 %v4012_v28, %v7147_v33  ;;  %v4066_v48 = vlaneseq }
 0x3c0   : > { %v3244_v18 = vpop.f32.mrf.mxu2  ;;  %v4009_v20 = vmul.f32 %v3991_v3, %v3147_v39  ;;  %v3293_v16 = vpop.f32.mrf.mxu3 }
 0x3c1   : > { %v3245_v36 = vadd.f32 %v3244_v18, %v3196_v63  ;;  %v3149_v34 = vpop.f32.mrf.mxu0  ;;  %v3892_v12 = vadd.f32 %v7313_v29, %v3836_v58  ;;  %v3198_v61 = vpop.f32.mrf.mxu1  ;;  %v4006_v10 = vmul.f32 %v3988_v35, %v3292_v30  ;;  %v4014_v59 = vrot.slane %v4013_v17, 2 }
 0x3c2   : > { %v3150_v40 = vadd.f32 %v3149_v34, %v7287_v55  ;;  %v4025_v9 = vadd.f32 %v4009_v20, %v4005_v62  ;;  %v3199_v6 = vadd.f32 %v3198_v61, %v7135_v57  ;;  %vm4068_vm3 = vcmp.lt.s32.totalorder %v4066_v48, 512 }
 0x3c3   : > { %v3294_v60 = vadd.f32 %v3293_v16, %v3245_v36  ;;  %v3948_v1 = vadd.f32 %v3940_v19, %v3892_v12  ;;  %v4015_v57 = vadd.f32 %v4014_v59, %v4013_v17 }
 0x3c4   : > { %3359 = vst [vmem:[#allocation2 + $0x5d0] sm:$0xff] %v3150_v40  ;;  %v4026_v7 = vrot.slane %v4025_v9, 4 }
 0x3c5   : > { %v3984_v26 = vadd.f32 %v7346_v42, %v3948_v1  ;;  %v4016_v4 = vrot.slane %v4015_v57, 1 }
 0x3c6   : > { %v4027_v29 = vadd.f32 %v4026_v7, %v4025_v9 }
 0x3c7   : > { %v3992_v32 = vmax.f32 %v3984_v26, 0.0  ;;  %v4017_v24 = vadd.f32 %v4016_v4, %v4015_v57 }
 0x3c8   : > { %v3247_v55 = vpop.f32.mrf.mxu2  ;;  %v4028_v44 = vrot.slane %v4027_v29, 2  ;;  %v3296_v15 = vpop.f32.mrf.mxu3 }
 0x3c9   : > { %v3248_v54 = vadd.f32 %v3247_v55, %v3199_v6  ;;  %v3151_v23 = vpop.f32.mrf.mxu0  ;;  %v4010_v27 = vmul.f32 %v3992_v32, %v3294_v60  ;;  %v3200_v42 = vpop.f32.mrf.mxu1 }
 0x3ca   : > { %v4029_v50 = vadd.f32 %v4028_v44, %v4027_v29 }
 0x3cb   : > { %v3297_v51 = vadd.f32 %v3296_v15, %v3248_v54  ;;  %v4032_v14 = vadd.f32 %v4010_v27, %v4006_v10 }
 0x3cc   : > { %v4030_v62 = vrot.slane %v4029_v50, 1 }
 0x3cd   : > { %3360 = vst [vmem:[#allocation2 + $0x5d8] sm:$0xff] %v3297_v51  ;;  %v4033_v33 = vrot.slane %v4032_v14, 4 }
 0x3ce   : > { %v4031_v11 = vadd.f32 %v4030_v62, %v4029_v50 }
 0x3cf   : > { %v4034_v49 = vadd.f32 %v4033_v33, %v4032_v14 }
 0x3d0   : > { %v3249_v13 = vpop.f32.mrf.mxu2  ;;  %v3298_v47 = vpop.f32.mrf.mxu3 }
 0x3d1   : > { %v4035_v21 = vrot.slane %v4034_v49, 2 }
 0x3d3   : > { %v4036_v0 = vadd.f32 %v4035_v21, %v4034_v49 }
 0x3d4   : > { %v3994_v8 = vld [vmem:[#allocation2 + $0x5c0] ss:$8 sm:$0xf] }
 0x3d5   : > { %v4037_v39 = vrot.slane %v4036_v0, 1  ;;  %v4040_v52 = vperm.slane %v3994_v8, 0  ;;  %v4041_v22 = vperm.slane %v3994_v8, 1  ;;  %v4042_v30 = vperm.slane %v3994_v8, 2 }
 0x3d6   : > { %v4043_v25 = vperm.slane %v3994_v8, 3 }
 0x3d7   : > { %v4038_v2 = vadd.f32 %v4037_v39, %v4036_v0  ;;  %v4049_v38 = vadd.f32 %v4041_v22, %v4024_v41  ;;  %v4050_v56 = vadd.f32 %v4042_v30, %v4031_v11  ;;  %v4048_v46 = vadd.f32 %v4040_v52, %v4017_v24 }
 0x3d9   : > { %v4051_v3 = vadd.f32 %v4043_v25, %v4038_v2  ;;  %v4056_v63 = vrot.slane %v4049_v38, 7  ;;  %v4057_v37 = vrot.slane %v4050_v56, 6 }
 0x3db   : > { %v4058_v58 = vrot.slane %v4051_v3, 5  ;;  %v4060_v18 = vsel %vm4059_vm0, %v4048_v46, %v4056_v63 }
 0x3dd   : > { %v4062_v20 = vsel %vm4061_vm1, %v4057_v37, %v4058_v58 }
 0x3de   : > { %v4064_v5 = vsel %vm4063_vm2, %v4060_v18, %v4062_v20 }
 0x3df   : > { %4070 = vst.msk [vmem:[%s234_s19] sm:$0xf] %vm4068_vm3, %v4064_v5 }
 0x3e0   : > { %5538 = shalt.err (!%p5535_p10)
}
 0x3e1   : > { %5391 = dma.vmem_to_hbm [thread:$0]  (%p5682_p7), %s4085_s5, 64, %s4087_s21, %s4072_s26  }
 0x3e2 PF: > { %s4098_s25 = sand.u32 1, %s5569_s15   ;;  %p7606_p12 = scmp.ge.s32.totalorder %s5581_s18, 2 }
 0x3e3   : > { %s4099_s14 = scalar_lea.sflag [#allocation5], %s4098_s25 }
 0x3e4   : > { %p5402_p13 = pnand %p7606_p12, %p5650_p6 }
 0x3e6   : > { %p5403_p0 = pneg %p5402_p13 }
 0x3e8   : > { %5564 = dma.done.wait (%p5403_p0), %s4099_s14, 64  }
 0x3e9   : > { %5566 = vsyncadd (%p5403_p0), %s4099_s14, 4294967232  ;;  %p18_p3 = scmp.ge.s32.totalorder %s5668_s29, 4   ;;  %s7607_s15 = smov %s5573_s16 }
 0x3ea   : > { %s7608_s16 = smov %s5577_s17  ;;  %s7609_s17 = smov %s5678_s8 }
 0x3eb   : > { %s7610_s18 = smov %s5668_s29  ;;  %20 = sbr.rel (!%p18_p3) target bundleno = 6 (0x6), region = 87 }
 0x3f0   :  { %4105 = vsyncpa [#allocation4], 1 }
 0x3f1   :  { %4107 = vsyncpa [#allocation4 + $0x1], 1 }
 0x3f2   :  { %4108 = vsyncpa [#allocation7], 1 }
 0x3f3   :  { %4110 = vsyncpa [#allocation7 + $0x1], 1 }
 0x3f4   :  { %4111 = vsyncpa [#allocation5], 1 }
 0x3f5   :  { %4113 = vsyncpa [#allocation5 + $0x1], 1 }

</bundles_post_ra>
